<compile_context>
chip_gen: v7x
topology: tpu7x:2x2x1
jax: 0.10.0
libtpu: 0.0.40
codegen_flags: <defaults>
</compile_context>

<pallas_src>
import functools

import jax
import jax.numpy as jnp
from jax.experimental import pallas as pl
from jax.experimental.pallas import tpu as pltpu


# Contraction width at/above which a pointwise conv is run on the MXU.
_MXU_MIN_CONTRACT = 8
# Raise the scoped-VMEM default (16 MiB on v5e / 32 MiB on v6e & v7x).
_VMEM_LIMIT_BYTES = 64 * 1024 * 1024


def _compiler_params():
    return pltpu.CompilerParams(
        dimension_semantics=("parallel",),
        vmem_limit_bytes=_VMEM_LIMIT_BYTES)


# ----------------------------------------------------------------------------
# In-kernel helpers
# ----------------------------------------------------------------------------
def _fill_padded(ref, val, ph, pw, H, W):
    """Write `val` into the interior of a halo-padded VMEM buffer.

    Only the halo strips (top/bottom rows, left/right columns) are zeroed —
    no full-plane clear followed by a full interior overwrite.
    """
    C = ref.shape[-1]
    Wp = W + 2 * pw
    zrow = jnp.zeros((1, ph, Wp, C), ref.dtype)
    ref[:, 0:ph, :, :] = zrow
    ref[:, ph + H:, :, :] = zrow
    zcol = jnp.zeros((1, H, pw, C), ref.dtype)
    ref[:, ph:ph + H, 0:pw, :] = zcol
    ref[:, ph:ph + H, pw + W:, :] = zcol
    # TODO(synk): offset the interior to a multiple-of-8 sublane start so the
    # interior fill lowers to full-width (unmasked) stores.
    ref[:, ph:ph + H, pw:pw + W, :] = val.astype(ref.dtype)


def _load_phases(pad1_ref, H, W):
    """De-interleave the padded input into its 4 stride-2 phase planes ONCE.

    Every one of the 25 stride-2 taps (and the avgpool taps in the stride-2
    kernel) then becomes a unit-stride slice of these planes.
    """
    Hp, Wp = H + 4, W + 4
    return [[pad1_ref[:, pl.ds(a, Hp // 2, 2), pl.ds(b, Wp // 2, 2), :]
             .astype(jnp.float32)
             for b in (0, 1)] for a in (0, 1)]


def _pointwise(y, w):
    """Pointwise (1x1) conv: y (1,Ho,Wo,Cin) f32 x w (Cin,Cout) -> f32.

    MXU matmul for Cin >= _MXU_MIN_CONTRACT (contraction runs in the matmul
    slot, freeing the 4 VALU slots); VPU broadcast-MAC for tiny widths.
    """
    _, Ho, Wo, Cin = y.shape
    Cout = w.shape[-1]
    if Cin >= _MXU_MIN_CONTRACT:
        z = jnp.dot(y.reshape(Ho * Wo, Cin), w,
                    preferred_element_type=jnp.float32)
        return z.reshape(1, Ho, Wo, Cout)
    z = y[..., 0:1] * w[0]
    for c in range(1, Cin):
        z = z + y[..., c:c + 1] * w[c]
    return z


# ----------------------------------------------------------------------------
# Fused `self.conv` stages (shared by the stride-1 and stride-2 kernels).
# `phases` are the pre-loaded f32 stride-2 phase planes of the padded input.
# Returns the f32 value (1, Ho, Wo, half).
# ----------------------------------------------------------------------------
def _conv_stages(phases, dw1, s1, b1, pw1, s2, b2, dw2, s3, b3, pw2, s4, b4,
                 pad2_ref, *, Ho, Wo):
    # ---- depthwise 5x5, stride 2, pad 2, + folded BN (no activation) -------
    w1 = dw1[...]

    def tap(di, dj):
        p = phases[di % 2][dj % 2]
        return p[:, di // 2:di // 2 + Ho, dj // 2:dj // 2 + Wo, :]

    acc = tap(0, 0) * w1[0]                  # init with first tap product
    for t in range(1, 25):
        acc = acc + tap(t // 5, t % 5) * w1[t]
    y = acc * s1[...] + b1[...]

    # ---- pointwise Cin -> E, + BN + ReLU6 -----------------------------------
    z = jnp.clip(_pointwise(y, pw1[...]) * s2[...] + b2[...], 0.0, 6.0)

    # ---- depthwise 3x3, stride 1, pad 1, + BN + ReLU6 -----------------------
    _fill_padded(pad2_ref, z, 1, 1, Ho, Wo)
    w2 = dw2[...]
    acc = pad2_ref[:, 0:Ho, 0:Wo, :].astype(jnp.float32) * w2[0]
    for t in range(1, 9):
        di, dj = t // 3, t % 3
        acc = acc + (pad2_ref[:, di:di + Ho, dj:dj + Wo, :]
                     .astype(jnp.float32) * w2[t])
    y = jnp.clip(acc * s3[...] + b3[...], 0.0, 6.0)

    # ---- pointwise E -> half, + BN (no activation) --------------------------
    return _pointwise(y, pw2[...]) * s4[...] + b4[...]


# ----------------------------------------------------------------------------
# Kernel bodies
# ----------------------------------------------------------------------------
def _conv_kernel(x_ref, dw1, s1, b1, pw1, s2, b2, dw2, s3, b3, pw2, s4, b4,
                 o_ref, pad1_ref, pad2_ref, *, H, W, Ho, Wo):
    _fill_padded(pad1_ref, x_ref[...], 2, 2, H, W)
    phases = _load_phases(pad1_ref, H, W)
    h = _conv_stages(phases, dw1, s1, b1, pw1, s2, b2, dw2, s3, b3, pw2, s4,
                     b4, pad2_ref, Ho=Ho, Wo=Wo)
    o_ref[...] = h.astype(o_ref.dtype)


def _conv_pool_concat_kernel(x_ref, dw1, s1, b1, pw1, s2, b2, dw2, s3, b3,
                             pw2, s4, b4, o_ref, pad1_ref, pad2_ref,
                             *, H, W, Ho, Wo, rest):
    # stride == 2 path:  out = concat(avgpool2(x[..., -rest:]), conv(x))
    Cin = x_ref.shape[-1]
    _fill_padded(pad1_ref, x_ref[...], 2, 2, H, W)
    phases = _load_phases(pad1_ref, H, W)
    h = _conv_stages(phases, dw1, s1, b1, pw1, s2, b2, dw2, s3, b3, pw2, s4,
                     b4, pad2_ref, Ho=Ho, Wo=Wo)

    # AvgPool2d(2) reuses the four phase planes at +1 block offset
    # (padded index a+2 <=> input index a); no extra strided reads of x.
    pooled = (phases[0][0][:, 1:1 + Ho, 1:1 + Wo, :]
              + phases[0][1][:, 1:1 + Ho, 1:1 + Wo, :]
              + phases[1][0][:, 1:1 + Ho, 1:1 + Wo, :]
              + phases[1][1][:, 1:1 + Ho, 1:1 + Wo, :])
    pooled = pooled[..., Cin - rest:] * 0.25

    # channel concat as two sliced stores (no lane-axis concatenate temp)
    o_ref[:, :, :, :rest] = pooled.astype(o_ref.dtype)
    o_ref[:, :, :, rest:] = h.astype(o_ref.dtype)


def _branch_concat_kernel(x_ref, up_ref, wu, s5, b5, o_ref, pad_ref,
                          *, H, W, half, rest):
    # stride == 1 path:
    #   out = concat(x[..., -rest:], upconv(x[..., :half] + up))
    Cin = x_ref.shape[-1]
    xv = x_ref[...]
    s = xv[..., :half].astype(jnp.float32) + up_ref[...].astype(jnp.float32)

    _fill_padded(pad_ref, s, 2, 2, H, W)
    w = wu[...]
    acc = pad_ref[:, 0:H, 0:W, :].astype(jnp.float32) * w[0]
    for t in range(1, 25):
        di, dj = t // 5, t % 5
        acc = acc + (pad_ref[:, di:di + H, dj:dj + W, :]
                     .astype(jnp.float32) * w[t])
    branch = acc * s5[...] + b5[...]

    o_ref[:, :, :, :rest] = xv[..., Cin - rest:].astype(o_ref.dtype)
    o_ref[:, :, :, rest:] = branch.astype(o_ref.dtype)


# ----------------------------------------------------------------------------
# pallas_call wrappers
# ----------------------------------------------------------------------------
_CONV_PARAM_KEYS = ("dw1_w", "bn1_s", "bn1_b", "pw1_w", "bn2_s", "bn2_b",
                    "dw2_w", "bn3_s", "bn3_b", "pw2_w", "bn4_s", "bn4_b")


def _param_specs(arrays):
    # weights / folded-BN vectors are small rank-2 arrays, resident every step
    return [pl.BlockSpec(a.shape, lambda n: (0, 0)) for a in arrays]


def _conv_scratch(H, W, Ho, Wo, Cin, E, dtype):
    # pad buffers kept in the input dtype; accumulation stays f32 in vregs.
    return [pltpu.VMEM((1, H + 4, W + 4, Cin), dtype),    # 5x5 pad halo
            pltpu.VMEM((1, Ho + 2, Wo + 2, E), dtype)]    # 3x3 pad halo


def conv_block(x, p):
    """h = self.conv(x) as ONE fused pallas_call.  x: (N, H, W, Cin) NHWC."""
    N, H, W, Cin = x.shape
    E = p["dw2_w"].shape[-1]
    half = p["pw2_w"].shape[-1]
    Ho, Wo = (H + 4 - 5) // 2 + 1, (W + 4 - 5) // 2 + 1
    params = [p[k] for k in _CONV_PARAM_KEYS]
    return pl.pallas_call(
        functools.partial(_conv_kernel, H=H, W=W, Ho=Ho, Wo=Wo),
        out_shape=jax.ShapeDtypeStruct((N, Ho, Wo, half), x.dtype),
        grid=(N,),
        in_specs=[pl.BlockSpec((1, H, W, Cin), lambda n: (n, 0, 0, 0))]
                 + _param_specs(params),
        out_specs=pl.BlockSpec((1, Ho, Wo, half), lambda n: (n, 0, 0, 0)),
        scratch_shapes=_conv_scratch(H, W, Ho, Wo, Cin, E, x.dtype),
        compiler_params=_compiler_params(),
    )(x, *params)


def conv_pool_concat(x, p, *, oup):
    """stride==2 forward: one fused pallas_call (conv + avgpool(keep) + cat)."""
    N, H, W, Cin = x.shape
    E = p["dw2_w"].shape[-1]
    half = p["pw2_w"].shape[-1]
    rest = oup - half
    Ho, Wo = (H + 4 - 5) // 2 + 1, (W + 4 - 5) // 2 + 1
    params = [p[k] for k in _CONV_PARAM_KEYS]
    return pl.pallas_call(
        functools.partial(_conv_pool_concat_kernel,
                          H=H, W=W, Ho=Ho, Wo=Wo, rest=rest),
        out_shape=jax.ShapeDtypeStruct((N, Ho, Wo, oup), x.dtype),
        grid=(N,),
        in_specs=[pl.BlockSpec((1, H, W, Cin), lambda n: (n, 0, 0, 0))]
                 + _param_specs(params),
        out_specs=pl.BlockSpec((1, Ho, Wo, oup), lambda n: (n, 0, 0, 0)),
        scratch_shapes=_conv_scratch(H, W, Ho, Wo, Cin, E, x.dtype),
        compiler_params=_compiler_params(),
    )(x, *params)


def branch_concat(x, up, p, *, oup):
    """stride==1 tail: fused add + dw5x5 upconv + BN + channel concat."""
    N, H, W, Cin = x.shape
    half = oup // 2
    rest = oup - half
    params = [p["up_w"], p["bn5_s"], p["bn5_b"]]
    return pl.pallas_call(
        functools.partial(_branch_concat_kernel, H=H, W=W, half=half, rest=rest),
        out_shape=jax.ShapeDtypeStruct((N, H, W, oup), x.dtype),
        grid=(N,),
        in_specs=[pl.BlockSpec((1, H, W, Cin), lambda n: (n, 0, 0, 0)),
                  pl.BlockSpec((1, H, W, half), lambda n: (n, 0, 0, 0))]
                 + _param_specs(params),
        out_specs=pl.BlockSpec((1, H, W, oup), lambda n: (n, 0, 0, 0)),
        scratch_shapes=[pltpu.VMEM((1, H + 4, W + 4, half), x.dtype)],
        compiler_params=_compiler_params(),
    )(x, up, *params)


# ----------------------------------------------------------------------------
# Full HarmoniousBottleneck_2x forward (NCHW in / NCHW out, like PyTorch)
# ----------------------------------------------------------------------------
def hbn2x_forward(x_nchw, p, *, stride, oup):
    assert stride in (1, 2)
    x = jnp.transpose(x_nchw, (0, 2, 3, 1))       # NCHW -> NHWC
    N, H, W, Cin = x.shape
    assert H % 2 == 0 and W % 2 == 0
    half = oup // 2
    rest = oup - half
    assert Cin >= rest and (stride == 2 or Cin >= half)

    if stride == 2:
        out = conv_pool_concat(x, p, oup=oup)     # single pallas_call
    else:
        h = conv_block(x, p)                      # (N, H/2, W/2, half)
        # TODO(synk): fuse the nearest-2x upsample into _branch_concat_kernel
        # (needs an in-kernel sublane interleave / strided store); kept in XLA
        # glue so the kernel lowering stays clean.
        up = jnp.repeat(jnp.repeat(h, 2, axis=1), 2, axis=2)
        out = branch_concat(x, up, p, oup=oup)
    return jnp.transpose(out, (0, 3, 1, 2))       # NHWC -> NCHW


# ----------------------------------------------------------------------------
# Deterministic synthetic parameters (shapes follow the module __init__)
# ----------------------------------------------------------------------------
def make_params(key, inp, oup, expand_ratio):
    er = inp * expand_ratio
    half = oup // 2
    keys = iter(jax.random.split(key, 16))

    def conv_w(shape):
        return 0.2 * jax.random.normal(next(keys), shape, jnp.float32)

    def bn_fold(c):
        # eval-mode BN: running_mean=0, running_var=1, eps=1e-5, random affine
        gamma = 1.0 + 0.1 * jax.random.normal(next(keys), (1, c), jnp.float32)
        beta = 0.1 * jax.random.normal(next(keys), (1, c), jnp.float32)
        return gamma / jnp.sqrt(1.0 + 1e-5), beta

    p = {}
    p["dw1_w"] = conv_w((25, inp));   p["bn1_s"], p["bn1_b"] = bn_fold(inp)
    p["pw1_w"] = conv_w((inp, er));   p["bn2_s"], p["bn2_b"] = bn_fold(er)
    p["dw2_w"] = conv_w((9, er));     p["bn3_s"], p["bn3_b"] = bn_fold(er)
    p["pw2_w"] = conv_w((er, half));  p["bn4_s"], p["bn4_b"] = bn_fold(half)
    p["up_w"] = conv_w((25, half));   p["bn5_s"], p["bn5_b"] = bn_fold(half)
    return p


# ----------------------------------------------------------------------------
# Pure-JAX reference (numeric sanity check of the fused kernels)
# ----------------------------------------------------------------------------
def _ref_dw(x, w_flat, k, stride):
    C = x.shape[-1]
    w = w_flat.reshape(k, k, 1, C)
    return jax.lax.conv_general_dilated(
        x, w, window_strides=(stride, stride),
        padding=((k // 2, k // 2), (k // 2, k // 2)),
        dimension_numbers=("NHWC", "HWIO", "NHWC"), feature_group_count=C)


def reference_forward(x_nchw, p, *, stride, oup):
    x = jnp.transpose(x_nchw, (0, 2, 3, 1))
    bn = lambda v, s, b: v * s + b
    h = bn(_ref_dw(x, p["dw1_w"], 5, 2), p["bn1_s"], p["bn1_b"])
    h = jnp.clip(bn(h @ p["pw1_w"], p["bn2_s"], p["bn2_b"]), 0.0, 6.0)
    h = jnp.clip(bn(_ref_dw(h, p["dw2_w"], 3, 1), p["bn3_s"], p["bn3_b"]), 0.0, 6.0)
    h = bn(h @ p["pw2_w"], p["bn4_s"], p["bn4_b"])
    half = oup // 2
    rest = oup - half
    Cin = x.shape[-1]
    if stride == 1:
        up = jnp.repeat(jnp.repeat(h, 2, axis=1), 2, axis=2)
        branch = bn(_ref_dw(x[..., :half] + up, p["up_w"], 5, 1),
                    p["bn5_s"], p["bn5_b"])
        out = jnp.concatenate([x[..., Cin - rest:], branch], axis=-1)
    else:
        keep = x[..., Cin - rest:]
        keep = 0.25 * (keep[:, 0::2, 0::2] + keep[:, 1::2, 0::2]
                       + keep[:, 0::2, 1::2] + keep[:, 1::2, 1::2])
        out = jnp.concatenate([keep, h], axis=-1)
    return jnp.transpose(out, (0, 3, 1, 2))


if __name__ == "__main__":
    key = jax.random.PRNGKey(0)
    kx, kp1, kp2 = jax.random.split(key, 3)

    N, H, W = 2, 16, 16

    # ---- stride = 1 (inp == oup, non-downsampling block) --------------------
    inp1, oup1, er1 = 4, 4, 2
    x1 = jax.random.normal(kx, (N, inp1, H, W), jnp.float32)   # NCHW like torch
    p1 = make_params(kp1, inp1, oup1, er1)
    y1 = hbn2x_forward(x1, p1, stride=1, oup=oup1)
    jax.block_until_ready(y1)
    assert y1.shape == (N, oup1, H, W), y1.shape
    r1 = reference_forward(x1, p1, stride=1, oup=oup1)
    assert float(jnp.max(jnp.abs(y1 - r1))) < 1e-4

    # ---- stride = 2 (downsampling block) ------------------------------------
    inp2, oup2, er2 = 4, 8, 2
    x2 = jax.random.normal(kx, (N, inp2, H, W), jnp.float32)
    p2 = make_params(kp2, inp2, oup2, er2)
    y2 = hbn2x_forward(x2, p2, stride=2, oup=oup2)
    jax.block_until_ready(y2)
    assert y2.shape == (N, oup2, H // 2, W // 2), y2.shape
    r2 = reference_forward(x2, p2, stride=2, oup=oup2)
    assert float(jnp.max(jnp.abs(y2 - r2))) < 1e-4

    print("KERNEL_OK")
</pallas_src>

<mosaic_0001>
module attributes {stable_mosaic.version = 11 : i64} {
  func.func @_conv_kernel(%arg0: i32, %arg1: memref<1x16x16x4xf32, #tpu.memory_space<vmem>>, %arg2: memref<25x4xf32, #tpu.memory_space<vmem>>, %arg3: memref<1x4xf32, #tpu.memory_space<vmem>>, %arg4: memref<1x4xf32, #tpu.memory_space<vmem>>, %arg5: memref<4x8xf32, #tpu.memory_space<vmem>>, %arg6: memref<1x8xf32, #tpu.memory_space<vmem>>, %arg7: memref<1x8xf32, #tpu.memory_space<vmem>>, %arg8: memref<9x8xf32, #tpu.memory_space<vmem>>, %arg9: memref<1x8xf32, #tpu.memory_space<vmem>>, %arg10: memref<1x8xf32, #tpu.memory_space<vmem>>, %arg11: memref<8x2xf32, #tpu.memory_space<vmem>>, %arg12: memref<1x2xf32, #tpu.memory_space<vmem>>, %arg13: memref<1x2xf32, #tpu.memory_space<vmem>>, %arg14: memref<1x8x8x2xf32, #tpu.memory_space<vmem>>, %arg15: memref<1x20x20x4xf32, #tpu.memory_space<vmem>>, %arg16: memref<1x10x10x8xf32, #tpu.memory_space<vmem>>) attributes {dimension_semantics = [#tpu.dimension_semantics<parallel>], iteration_bounds = array<i64: 2>, scalar_prefetch = 0 : i64, scratch_operands = 2 : i64, tpu.core_type = #tpu.core_type<tc>, window_params = [{transform_indices = @transform_0, window_bounds = array<i64: 1, 16, 16, 4>}, {pipeline_mode = #tpu.pipeline_mode<synchronous>, transform_indices = @transform_1, window_bounds = array<i64: 25, 4>}, {pipeline_mode = #tpu.pipeline_mode<synchronous>, transform_indices = @transform_2, window_bounds = array<i64: 1, 4>}, {pipeline_mode = #tpu.pipeline_mode<synchronous>, transform_indices = @transform_3, window_bounds = array<i64: 1, 4>}, {pipeline_mode = #tpu.pipeline_mode<synchronous>, transform_indices = @transform_4, window_bounds = array<i64: 4, 8>}, {pipeline_mode = #tpu.pipeline_mode<synchronous>, transform_indices = @transform_5, window_bounds = array<i64: 1, 8>}, {pipeline_mode = #tpu.pipeline_mode<synchronous>, transform_indices = @transform_6, window_bounds = array<i64: 1, 8>}, {pipeline_mode = #tpu.pipeline_mode<synchronous>, transform_indices = @transform_7, window_bounds = array<i64: 9, 8>}, {pipeline_mode = #tpu.pipeline_mode<synchronous>, transform_indices = @transform_8, window_bounds = array<i64: 1, 8>}, {pipeline_mode = #tpu.pipeline_mode<synchronous>, transform_indices = @transform_9, window_bounds = array<i64: 1, 8>}, {pipeline_mode = #tpu.pipeline_mode<synchronous>, transform_indices = @transform_10, window_bounds = array<i64: 8, 2>}, {pipeline_mode = #tpu.pipeline_mode<synchronous>, transform_indices = @transform_11, window_bounds = array<i64: 1, 2>}, {pipeline_mode = #tpu.pipeline_mode<synchronous>, transform_indices = @transform_12, window_bounds = array<i64: 1, 2>}, {transform_indices = @transform_13, window_bounds = array<i64: 1, 8, 8, 2>}]} {
    %c0 = arith.constant 0 : index
    %c0_0 = arith.constant 0 : index
    %c0_1 = arith.constant 0 : index
    %c0_2 = arith.constant 0 : index
    %0 = vector.load %arg1[%c0, %c0_0, %c0_1, %c0_2] : memref<1x16x16x4xf32, #tpu.memory_space<vmem>>, vector<1x16x16x4xf32>
    %cst = arith.constant 0.000000e+00 : f32
    %1 = vector.broadcast %cst : f32 to vector<1x2x20x4xf32>
    %c0_3 = arith.constant 0 : index
    %c0_4 = arith.constant 0 : index
    %c0_5 = arith.constant 0 : index
    %c0_6 = arith.constant 0 : index
    %2 = vector.load %arg15[%c0_3, %c0_4, %c0_5, %c0_6] : memref<1x20x20x4xf32, #tpu.memory_space<vmem>>, vector<1x2x20x4xf32>
    tpu.vector_store %arg15[%c0_3, %c0_4, %c0_5, %c0_6], %1 {strides = array<i32>} : memref<1x20x20x4xf32, #tpu.memory_space<vmem>>, vector<1x2x20x4xf32>,
    %c0_7 = arith.constant 0 : index
    %c18 = arith.constant 18 : index
    %c0_8 = arith.constant 0 : index
    %c0_9 = arith.constant 0 : index
    %3 = vector.load %arg15[%c0_7, %c18, %c0_8, %c0_9] : memref<1x20x20x4xf32, #tpu.memory_space<vmem>>, vector<1x2x20x4xf32>
    tpu.vector_store %arg15[%c0_7, %c18, %c0_8, %c0_9], %1 {strides = array<i32>} : memref<1x20x20x4xf32, #tpu.memory_space<vmem>>, vector<1x2x20x4xf32>,
    %cst_10 = arith.constant 0.000000e+00 : f32
    %4 = vector.broadcast %cst_10 : f32 to vector<1x16x2x4xf32>
    %c0_11 = arith.constant 0 : index
    %c2 = arith.constant 2 : index
    %c0_12 = arith.constant 0 : index
    %c0_13 = arith.constant 0 : index
    %5 = vector.load %arg15[%c0_11, %c2, %c0_12, %c0_13] : memref<1x20x20x4xf32, #tpu.memory_space<vmem>>, vector<1x16x2x4xf32>
    tpu.vector_store %arg15[%c0_11, %c2, %c0_12, %c0_13], %4 {strides = array<i32>} : memref<1x20x20x4xf32, #tpu.memory_space<vmem>>, vector<1x16x2x4xf32>,
    %c0_14 = arith.constant 0 : index
    %c2_15 = arith.constant 2 : index
    %c18_16 = arith.constant 18 : index
    %c0_17 = arith.constant 0 : index
    %6 = vector.load %arg15[%c0_14, %c2_15, %c18_16, %c0_17] : memref<1x20x20x4xf32, #tpu.memory_space<vmem>>, vector<1x16x2x4xf32>
    tpu.vector_store %arg15[%c0_14, %c2_15, %c18_16, %c0_17], %4 {strides = array<i32>} : memref<1x20x20x4xf32, #tpu.memory_space<vmem>>, vector<1x16x2x4xf32>,
    %c0_18 = arith.constant 0 : index
    %c2_19 = arith.constant 2 : index
    %c2_20 = arith.constant 2 : index
    %c0_21 = arith.constant 0 : index
    %7 = vector.load %arg15[%c0_18, %c2_19, %c2_20, %c0_21] : memref<1x20x20x4xf32, #tpu.memory_space<vmem>>, vector<1x16x16x4xf32>
    tpu.vector_store %arg15[%c0_18, %c2_19, %c2_20, %c0_21], %0 {strides = array<i32>} : memref<1x20x20x4xf32, #tpu.memory_space<vmem>>, vector<1x16x16x4xf32>,
    %c0_22 = arith.constant 0 : index
    %c0_23 = arith.constant 0 : index
    %c0_24 = arith.constant 0 : index
    %c0_25 = arith.constant 0 : index
    %8 = tpu.strided_load %arg15[%c0_22, %c0_23, %c0_24, %c0_25] {strides = array<i32: 1, 2, 2, 1>} : memref<1x20x20x4xf32, #tpu.memory_space<vmem>>, vector<1x10x10x4xf32>
    %c0_26 = arith.constant 0 : index
    %c0_27 = arith.constant 0 : index
    %c1 = arith.constant 1 : index
    %c0_28 = arith.constant 0 : index
    %9 = tpu.strided_load %arg15[%c0_26, %c0_27, %c1, %c0_28] {strides = array<i32: 1, 2, 2, 1>} : memref<1x20x20x4xf32, #tpu.memory_space<vmem>>, vector<1x10x10x4xf32>
    %c0_29 = arith.constant 0 : index
    %c1_30 = arith.constant 1 : index
    %c0_31 = arith.constant 0 : index
    %c0_32 = arith.constant 0 : index
    %10 = tpu.strided_load %arg15[%c0_29, %c1_30, %c0_31, %c0_32] {strides = array<i32: 1, 2, 2, 1>} : memref<1x20x20x4xf32, #tpu.memory_space<vmem>>, vector<1x10x10x4xf32>
    %c0_33 = arith.constant 0 : index
    %c1_34 = arith.constant 1 : index
    %c1_35 = arith.constant 1 : index
    %c0_36 = arith.constant 0 : index
    %11 = tpu.strided_load %arg15[%c0_33, %c1_34, %c1_35, %c0_36] {strides = array<i32: 1, 2, 2, 1>} : memref<1x20x20x4xf32, #tpu.memory_space<vmem>>, vector<1x10x10x4xf32>
    %c0_37 = arith.constant 0 : index
    %c0_38 = arith.constant 0 : index
    %12 = vector.load %arg2[%c0_37, %c0_38] : memref<25x4xf32, #tpu.memory_space<vmem>>, vector<25x4xf32>
    %13 = vector.extract_strided_slice %8 {offsets = [0, 0, 0, 0], sizes = [1, 8, 8, 4], strides = [1, 1, 1, 1]} : vector<1x10x10x4xf32> to vector<1x8x8x4xf32>
    %14 = vector.extract_strided_slice %12 {offsets = [0, 0], sizes = [1, 4], strides = [1, 1]} : vector<25x4xf32> to vector<1x4xf32>
    %15 = vector.shape_cast %14 : vector<1x4xf32> to vector<4xf32>
    %16 = vector.shape_cast %15 : vector<4xf32> to vector<1x1x1x4xf32>
    %17 = vector.broadcast %16 : vector<1x1x1x4xf32> to vector<1x8x8x4xf32>
    %18 = arith.mulf %13, %17 : vector<1x8x8x4xf32>
    %19 = vector.extract_strided_slice %9 {offsets = [0, 0, 0, 0], sizes = [1, 8, 8, 4], strides = [1, 1, 1, 1]} : vector<1x10x10x4xf32> to vector<1x8x8x4xf32>
    %20 = vector.extract_strided_slice %12 {offsets = [1, 0], sizes = [1, 4], strides = [1, 1]} : vector<25x4xf32> to vector<1x4xf32>
    %21 = vector.shape_cast %20 : vector<1x4xf32> to vector<4xf32>
    %22 = vector.shape_cast %21 : vector<4xf32> to vector<1x1x1x4xf32>
    %23 = vector.broadcast %22 : vector<1x1x1x4xf32> to vector<1x8x8x4xf32>
    %24 = arith.mulf %19, %23 : vector<1x8x8x4xf32>
    %25 = arith.addf %18, %24 : vector<1x8x8x4xf32>
    %26 = vector.extract_strided_slice %8 {offsets = [0, 0, 1, 0], sizes = [1, 8, 8, 4], strides = [1, 1, 1, 1]} : vector<1x10x10x4xf32> to vector<1x8x8x4xf32>
    %27 = vector.extract_strided_slice %12 {offsets = [2, 0], sizes = [1, 4], strides = [1, 1]} : vector<25x4xf32> to vector<1x4xf32>
    %28 = vector.shape_cast %27 : vector<1x4xf32> to vector<4xf32>
    %29 = vector.shape_cast %28 : vector<4xf32> to vector<1x1x1x4xf32>
    %30 = vector.broadcast %29 : vector<1x1x1x4xf32> to vector<1x8x8x4xf32>
    %31 = arith.mulf %26, %30 : vector<1x8x8x4xf32>
    %32 = arith.addf %25, %31 : vector<1x8x8x4xf32>
    %33 = vector.extract_strided_slice %9 {offsets = [0, 0, 1, 0], sizes = [1, 8, 8, 4], strides = [1, 1, 1, 1]} : vector<1x10x10x4xf32> to vector<1x8x8x4xf32>
    %34 = vector.extract_strided_slice %12 {offsets = [3, 0], sizes = [1, 4], strides = [1, 1]} : vector<25x4xf32> to vector<1x4xf32>
    %35 = vector.shape_cast %34 : vector<1x4xf32> to vector<4xf32>
    %36 = vector.shape_cast %35 : vector<4xf32> to vector<1x1x1x4xf32>
    %37 = vector.broadcast %36 : vector<1x1x1x4xf32> to vector<1x8x8x4xf32>
    %38 = arith.mulf %33, %37 : vector<1x8x8x4xf32>
    %39 = arith.addf %32, %38 : vector<1x8x8x4xf32>
    %40 = vector.extract_strided_slice %8 {offsets = [0, 0, 2, 0], sizes = [1, 8, 8, 4], strides = [1, 1, 1, 1]} : vector<1x10x10x4xf32> to vector<1x8x8x4xf32>
    %41 = vector.extract_strided_slice %12 {offsets = [4, 0], sizes = [1, 4], strides = [1, 1]} : vector<25x4xf32> to vector<1x4xf32>
    %42 = vector.shape_cast %41 : vector<1x4xf32> to vector<4xf32>
    %43 = vector.shape_cast %42 : vector<4xf32> to vector<1x1x1x4xf32>
    %44 = vector.broadcast %43 : vector<1x1x1x4xf32> to vector<1x8x8x4xf32>
    %45 = arith.mulf %40, %44 : vector<1x8x8x4xf32>
    %46 = arith.addf %39, %45 : vector<1x8x8x4xf32>
    %47 = vector.extract_strided_slice %10 {offsets = [0, 0, 0, 0], sizes = [1, 8, 8, 4], strides = [1, 1, 1, 1]} : vector<1x10x10x4xf32> to vector<1x8x8x4xf32>
    %48 = vector.extract_strided_slice %12 {offsets = [5, 0], sizes = [1, 4], strides = [1, 1]} : vector<25x4xf32> to vector<1x4xf32>
    %49 = vector.shape_cast %48 : vector<1x4xf32> to vector<4xf32>
    %50 = vector.shape_cast %49 : vector<4xf32> to vector<1x1x1x4xf32>
    %51 = vector.broadcast %50 : vector<1x1x1x4xf32> to vector<1x8x8x4xf32>
    %52 = arith.mulf %47, %51 : vector<1x8x8x4xf32>
    %53 = arith.addf %46, %52 : vector<1x8x8x4xf32>
    %54 = vector.extract_strided_slice %11 {offsets = [0, 0, 0, 0], sizes = [1, 8, 8, 4], strides = [1, 1, 1, 1]} : vector<1x10x10x4xf32> to vector<1x8x8x4xf32>
    %55 = vector.extract_strided_slice %12 {offsets = [6, 0], sizes = [1, 4], strides = [1, 1]} : vector<25x4xf32> to vector<1x4xf32>
    %56 = vector.shape_cast %55 : vector<1x4xf32> to vector<4xf32>
    %57 = vector.shape_cast %56 : vector<4xf32> to vector<1x1x1x4xf32>
    %58 = vector.broadcast %57 : vector<1x1x1x4xf32> to vector<1x8x8x4xf32>
    %59 = arith.mulf %54, %58 : vector<1x8x8x4xf32>
    %60 = arith.addf %53, %59 : vector<1x8x8x4xf32>
    %61 = vector.extract_strided_slice %10 {offsets = [0, 0, 1, 0], sizes = [1, 8, 8, 4], strides = [1, 1, 1, 1]} : vector<1x10x10x4xf32> to vector<1x8x8x4xf32>
    %62 = vector.extract_strided_slice %12 {offsets = [7, 0], sizes = [1, 4], strides = [1, 1]} : vector<25x4xf32> to vector<1x4xf32>
    %63 = vector.shape_cast %62 : vector<1x4xf32> to vector<4xf32>
    %64 = vector.shape_cast %63 : vector<4xf32> to vector<1x1x1x4xf32>
    %65 = vector.broadcast %64 : vector<1x1x1x4xf32> to vector<1x8x8x4xf32>
    %66 = arith.mulf %61, %65 : vector<1x8x8x4xf32>
    %67 = arith.addf %60, %66 : vector<1x8x8x4xf32>
    %68 = vector.extract_strided_slice %11 {offsets = [0, 0, 1, 0], sizes = [1, 8, 8, 4], strides = [1, 1, 1, 1]} : vector<1x10x10x4xf32> to vector<1x8x8x4xf32>
    %69 = vector.extract_strided_slice %12 {offsets = [8, 0], sizes = [1, 4], strides = [1, 1]} : vector<25x4xf32> to vector<1x4xf32>
    %70 = vector.shape_cast %69 : vector<1x4xf32> to vector<4xf32>
    %71 = vector.shape_cast %70 : vector<4xf32> to vector<1x1x1x4xf32>
    %72 = vector.broadcast %71 : vector<1x1x1x4xf32> to vector<1x8x8x4xf32>
    %73 = arith.mulf %68, %72 : vector<1x8x8x4xf32>
    %74 = arith.addf %67, %73 : vector<1x8x8x4xf32>
    %75 = vector.extract_strided_slice %10 {offsets = [0, 0, 2, 0], sizes = [1, 8, 8, 4], strides = [1, 1, 1, 1]} : vector<1x10x10x4xf32> to vector<1x8x8x4xf32>
    %76 = vector.extract_strided_slice %12 {offsets = [9, 0], sizes = [1, 4], strides = [1, 1]} : vector<25x4xf32> to vector<1x4xf32>
    %77 = vector.shape_cast %76 : vector<1x4xf32> to vector<4xf32>
    %78 = vector.shape_cast %77 : vector<4xf32> to vector<1x1x1x4xf32>
    %79 = vector.broadcast %78 : vector<1x1x1x4xf32> to vector<1x8x8x4xf32>
    %80 = arith.mulf %75, %79 : vector<1x8x8x4xf32>
    %81 = arith.addf %74, %80 : vector<1x8x8x4xf32>
    %82 = vector.extract_strided_slice %8 {offsets = [0, 1, 0, 0], sizes = [1, 8, 8, 4], strides = [1, 1, 1, 1]} : vector<1x10x10x4xf32> to vector<1x8x8x4xf32>
    %83 = vector.extract_strided_slice %12 {offsets = [10, 0], sizes = [1, 4], strides = [1, 1]} : vector<25x4xf32> to vector<1x4xf32>
    %84 = vector.shape_cast %83 : vector<1x4xf32> to vector<4xf32>
    %85 = vector.shape_cast %84 : vector<4xf32> to vector<1x1x1x4xf32>
    %86 = vector.broadcast %85 : vector<1x1x1x4xf32> to vector<1x8x8x4xf32>
    %87 = arith.mulf %82, %86 : vector<1x8x8x4xf32>
    %88 = arith.addf %81, %87 : vector<1x8x8x4xf32>
    %89 = vector.extract_strided_slice %9 {offsets = [0, 1, 0, 0], sizes = [1, 8, 8, 4], strides = [1, 1, 1, 1]} : vector<1x10x10x4xf32> to vector<1x8x8x4xf32>
    %90 = vector.extract_strided_slice %12 {offsets = [11, 0], sizes = [1, 4], strides = [1, 1]} : vector<25x4xf32> to vector<1x4xf32>
    %91 = vector.shape_cast %90 : vector<1x4xf32> to vector<4xf32>
    %92 = vector.shape_cast %91 : vector<4xf32> to vector<1x1x1x4xf32>
    %93 = vector.broadcast %92 : vector<1x1x1x4xf32> to vector<1x8x8x4xf32>
    %94 = arith.mulf %89, %93 : vector<1x8x8x4xf32>
    %95 = arith.addf %88, %94 : vector<1x8x8x4xf32>
    %96 = vector.extract_strided_slice %8 {offsets = [0, 1, 1, 0], sizes = [1, 8, 8, 4], strides = [1, 1, 1, 1]} : vector<1x10x10x4xf32> to vector<1x8x8x4xf32>
    %97 = vector.extract_strided_slice %12 {offsets = [12, 0], sizes = [1, 4], strides = [1, 1]} : vector<25x4xf32> to vector<1x4xf32>
    %98 = vector.shape_cast %97 : vector<1x4xf32> to vector<4xf32>
    %99 = vector.shape_cast %98 : vector<4xf32> to vector<1x1x1x4xf32>
    %100 = vector.broadcast %99 : vector<1x1x1x4xf32> to vector<1x8x8x4xf32>
    %101 = arith.mulf %96, %100 : vector<1x8x8x4xf32>
    %102 = arith.addf %95, %101 : vector<1x8x8x4xf32>
    %103 = vector.extract_strided_slice %9 {offsets = [0, 1, 1, 0], sizes = [1, 8, 8, 4], strides = [1, 1, 1, 1]} : vector<1x10x10x4xf32> to vector<1x8x8x4xf32>
    %104 = vector.extract_strided_slice %12 {offsets = [13, 0], sizes = [1, 4], strides = [1, 1]} : vector<25x4xf32> to vector<1x4xf32>
    %105 = vector.shape_cast %104 : vector<1x4xf32> to vector<4xf32>
    %106 = vector.shape_cast %105 : vector<4xf32> to vector<1x1x1x4xf32>
    %107 = vector.broadcast %106 : vector<1x1x1x4xf32> to vector<1x8x8x4xf32>
    %108 = arith.mulf %103, %107 : vector<1x8x8x4xf32>
    %109 = arith.addf %102, %108 : vector<1x8x8x4xf32>
    %110 = vector.extract_strided_slice %8 {offsets = [0, 1, 2, 0], sizes = [1, 8, 8, 4], strides = [1, 1, 1, 1]} : vector<1x10x10x4xf32> to vector<1x8x8x4xf32>
    %111 = vector.extract_strided_slice %12 {offsets = [14, 0], sizes = [1, 4], strides = [1, 1]} : vector<25x4xf32> to vector<1x4xf32>
    %112 = vector.shape_cast %111 : vector<1x4xf32> to vector<4xf32>
    %113 = vector.shape_cast %112 : vector<4xf32> to vector<1x1x1x4xf32>
    %114 = vector.broadcast %113 : vector<1x1x1x4xf32> to vector<1x8x8x4xf32>
    %115 = arith.mulf %110, %114 : vector<1x8x8x4xf32>
    %116 = arith.addf %109, %115 : vector<1x8x8x4xf32>
    %117 = vector.extract_strided_slice %10 {offsets = [0, 1, 0, 0], sizes = [1, 8, 8, 4], strides = [1, 1, 1, 1]} : vector<1x10x10x4xf32> to vector<1x8x8x4xf32>
    %118 = vector.extract_strided_slice %12 {offsets = [15, 0], sizes = [1, 4], strides = [1, 1]} : vector<25x4xf32> to vector<1x4xf32>
    %119 = vector.shape_cast %118 : vector<1x4xf32> to vector<4xf32>
    %120 = vector.shape_cast %119 : vector<4xf32> to vector<1x1x1x4xf32>
    %121 = vector.broadcast %120 : vector<1x1x1x4xf32> to vector<1x8x8x4xf32>
    %122 = arith.mulf %117, %121 : vector<1x8x8x4xf32>
    %123 = arith.addf %116, %122 : vector<1x8x8x4xf32>
    %124 = vector.extract_strided_slice %11 {offsets = [0, 1, 0, 0], sizes = [1, 8, 8, 4], strides = [1, 1, 1, 1]} : vector<1x10x10x4xf32> to vector<1x8x8x4xf32>
    %125 = vector.extract_strided_slice %12 {offsets = [16, 0], sizes = [1, 4], strides = [1, 1]} : vector<25x4xf32> to vector<1x4xf32>
    %126 = vector.shape_cast %125 : vector<1x4xf32> to vector<4xf32>
    %127 = vector.shape_cast %126 : vector<4xf32> to vector<1x1x1x4xf32>
    %128 = vector.broadcast %127 : vector<1x1x1x4xf32> to vector<1x8x8x4xf32>
    %129 = arith.mulf %124, %128 : vector<1x8x8x4xf32>
    %130 = arith.addf %123, %129 : vector<1x8x8x4xf32>
    %131 = vector.extract_strided_slice %10 {offsets = [0, 1, 1, 0], sizes = [1, 8, 8, 4], strides = [1, 1, 1, 1]} : vector<1x10x10x4xf32> to vector<1x8x8x4xf32>
    %132 = vector.extract_strided_slice %12 {offsets = [17, 0], sizes = [1, 4], strides = [1, 1]} : vector<25x4xf32> to vector<1x4xf32>
    %133 = vector.shape_cast %132 : vector<1x4xf32> to vector<4xf32>
    %134 = vector.shape_cast %133 : vector<4xf32> to vector<1x1x1x4xf32>
    %135 = vector.broadcast %134 : vector<1x1x1x4xf32> to vector<1x8x8x4xf32>
    %136 = arith.mulf %131, %135 : vector<1x8x8x4xf32>
    %137 = arith.addf %130, %136 : vector<1x8x8x4xf32>
    %138 = vector.extract_strided_slice %11 {offsets = [0, 1, 1, 0], sizes = [1, 8, 8, 4], strides = [1, 1, 1, 1]} : vector<1x10x10x4xf32> to vector<1x8x8x4xf32>
    %139 = vector.extract_strided_slice %12 {offsets = [18, 0], sizes = [1, 4], strides = [1, 1]} : vector<25x4xf32> to vector<1x4xf32>
    %140 = vector.shape_cast %139 : vector<1x4xf32> to vector<4xf32>
    %141 = vector.shape_cast %140 : vector<4xf32> to vector<1x1x1x4xf32>
    %142 = vector.broadcast %141 : vector<1x1x1x4xf32> to vector<1x8x8x4xf32>
    %143 = arith.mulf %138, %142 : vector<1x8x8x4xf32>
    %144 = arith.addf %137, %143 : vector<1x8x8x4xf32>
    %145 = vector.extract_strided_slice %10 {offsets = [0, 1, 2, 0], sizes = [1, 8, 8, 4], strides = [1, 1, 1, 1]} : vector<1x10x10x4xf32> to vector<1x8x8x4xf32>
    %146 = vector.extract_strided_slice %12 {offsets = [19, 0], sizes = [1, 4], strides = [1, 1]} : vector<25x4xf32> to vector<1x4xf32>
    %147 = vector.shape_cast %146 : vector<1x4xf32> to vector<4xf32>
    %148 = vector.shape_cast %147 : vector<4xf32> to vector<1x1x1x4xf32>
    %149 = vector.broadcast %148 : vector<1x1x1x4xf32> to vector<1x8x8x4xf32>
    %150 = arith.mulf %145, %149 : vector<1x8x8x4xf32>
    %151 = arith.addf %144, %150 : vector<1x8x8x4xf32>
    %152 = vector.extract_strided_slice %8 {offsets = [0, 2, 0, 0], sizes = [1, 8, 8, 4], strides = [1, 1, 1, 1]} : vector<1x10x10x4xf32> to vector<1x8x8x4xf32>
    %153 = vector.extract_strided_slice %12 {offsets = [20, 0], sizes = [1, 4], strides = [1, 1]} : vector<25x4xf32> to vector<1x4xf32>
    %154 = vector.shape_cast %153 : vector<1x4xf32> to vector<4xf32>
    %155 = vector.shape_cast %154 : vector<4xf32> to vector<1x1x1x4xf32>
    %156 = vector.broadcast %155 : vector<1x1x1x4xf32> to vector<1x8x8x4xf32>
    %157 = arith.mulf %152, %156 : vector<1x8x8x4xf32>
    %158 = arith.addf %151, %157 : vector<1x8x8x4xf32>
    %159 = vector.extract_strided_slice %9 {offsets = [0, 2, 0, 0], sizes = [1, 8, 8, 4], strides = [1, 1, 1, 1]} : vector<1x10x10x4xf32> to vector<1x8x8x4xf32>
    %160 = vector.extract_strided_slice %12 {offsets = [21, 0], sizes = [1, 4], strides = [1, 1]} : vector<25x4xf32> to vector<1x4xf32>
    %161 = vector.shape_cast %160 : vector<1x4xf32> to vector<4xf32>
    %162 = vector.shape_cast %161 : vector<4xf32> to vector<1x1x1x4xf32>
    %163 = vector.broadcast %162 : vector<1x1x1x4xf32> to vector<1x8x8x4xf32>
    %164 = arith.mulf %159, %163 : vector<1x8x8x4xf32>
    %165 = arith.addf %158, %164 : vector<1x8x8x4xf32>
    %166 = vector.extract_strided_slice %8 {offsets = [0, 2, 1, 0], sizes = [1, 8, 8, 4], strides = [1, 1, 1, 1]} : vector<1x10x10x4xf32> to vector<1x8x8x4xf32>
    %167 = vector.extract_strided_slice %12 {offsets = [22, 0], sizes = [1, 4], strides = [1, 1]} : vector<25x4xf32> to vector<1x4xf32>
    %168 = vector.shape_cast %167 : vector<1x4xf32> to vector<4xf32>
    %169 = vector.shape_cast %168 : vector<4xf32> to vector<1x1x1x4xf32>
    %170 = vector.broadcast %169 : vector<1x1x1x4xf32> to vector<1x8x8x4xf32>
    %171 = arith.mulf %166, %170 : vector<1x8x8x4xf32>
    %172 = arith.addf %165, %171 : vector<1x8x8x4xf32>
    %173 = vector.extract_strided_slice %9 {offsets = [0, 2, 1, 0], sizes = [1, 8, 8, 4], strides = [1, 1, 1, 1]} : vector<1x10x10x4xf32> to vector<1x8x8x4xf32>
    %174 = vector.extract_strided_slice %12 {offsets = [23, 0], sizes = [1, 4], strides = [1, 1]} : vector<25x4xf32> to vector<1x4xf32>
    %175 = vector.shape_cast %174 : vector<1x4xf32> to vector<4xf32>
    %176 = vector.shape_cast %175 : vector<4xf32> to vector<1x1x1x4xf32>
    %177 = vector.broadcast %176 : vector<1x1x1x4xf32> to vector<1x8x8x4xf32>
    %178 = arith.mulf %173, %177 : vector<1x8x8x4xf32>
    %179 = arith.addf %172, %178 : vector<1x8x8x4xf32>
    %180 = vector.extract_strided_slice %8 {offsets = [0, 2, 2, 0], sizes = [1, 8, 8, 4], strides = [1, 1, 1, 1]} : vector<1x10x10x4xf32> to vector<1x8x8x4xf32>
    %181 = vector.extract_strided_slice %12 {offsets = [24, 0], sizes = [1, 4], strides = [1, 1]} : vector<25x4xf32> to vector<1x4xf32>
    %182 = vector.shape_cast %181 : vector<1x4xf32> to vector<4xf32>
    %183 = vector.shape_cast %182 : vector<4xf32> to vector<1x1x1x4xf32>
    %184 = vector.broadcast %183 : vector<1x1x1x4xf32> to vector<1x8x8x4xf32>
    %185 = arith.mulf %180, %184 : vector<1x8x8x4xf32>
    %186 = arith.addf %179, %185 : vector<1x8x8x4xf32>
    %c0_39 = arith.constant 0 : index
    %c0_40 = arith.constant 0 : index
    %187 = vector.load %arg3[%c0_39, %c0_40] : memref<1x4xf32, #tpu.memory_space<vmem>>, vector<1x4xf32>
    %188 = vector.shape_cast %187 : vector<1x4xf32> to vector<1x1x1x4xf32>
    %189 = vector.broadcast %188 : vector<1x1x1x4xf32> to vector<1x8x8x4xf32>
    %190 = arith.mulf %186, %189 : vector<1x8x8x4xf32>
    %c0_41 = arith.constant 0 : index
    %c0_42 = arith.constant 0 : index
    %191 = vector.load %arg4[%c0_41, %c0_42] : memref<1x4xf32, #tpu.memory_space<vmem>>, vector<1x4xf32>
    %192 = vector.shape_cast %191 : vector<1x4xf32> to vector<1x1x1x4xf32>
    %193 = vector.broadcast %192 : vector<1x1x1x4xf32> to vector<1x8x8x4xf32>
    %194 = arith.addf %190, %193 : vector<1x8x8x4xf32>
    %c0_43 = arith.constant 0 : index
    %c0_44 = arith.constant 0 : index
    %195 = vector.load %arg5[%c0_43, %c0_44] : memref<4x8xf32, #tpu.memory_space<vmem>>, vector<4x8xf32>
    %196 = vector.extract_strided_slice %194 {offsets = [0, 0, 0, 0], sizes = [1, 8, 8, 1], strides = [1, 1, 1, 1]} : vector<1x8x8x4xf32> to vector<1x8x8x1xf32>
    %197 = vector.extract_strided_slice %195 {offsets = [0, 0], sizes = [1, 8], strides = [1, 1]} : vector<4x8xf32> to vector<1x8xf32>
    %198 = vector.shape_cast %197 : vector<1x8xf32> to vector<8xf32>
    %199 = vector.shape_cast %198 : vector<8xf32> to vector<1x1x1x8xf32>
    %200 = vector.broadcast %196 : vector<1x8x8x1xf32> to vector<1x8x8x8xf32>
    %201 = vector.broadcast %199 : vector<1x1x1x8xf32> to vector<1x8x8x8xf32>
    %202 = arith.mulf %200, %201 : vector<1x8x8x8xf32>
    %203 = vector.extract_strided_slice %194 {offsets = [0, 0, 0, 1], sizes = [1, 8, 8, 1], strides = [1, 1, 1, 1]} : vector<1x8x8x4xf32> to vector<1x8x8x1xf32>
    %204 = vector.extract_strided_slice %195 {offsets = [1, 0], sizes = [1, 8], strides = [1, 1]} : vector<4x8xf32> to vector<1x8xf32>
    %205 = vector.shape_cast %204 : vector<1x8xf32> to vector<8xf32>
    %206 = vector.shape_cast %205 : vector<8xf32> to vector<1x1x1x8xf32>
    %207 = vector.broadcast %203 : vector<1x8x8x1xf32> to vector<1x8x8x8xf32>
    %208 = vector.broadcast %206 : vector<1x1x1x8xf32> to vector<1x8x8x8xf32>
    %209 = arith.mulf %207, %208 : vector<1x8x8x8xf32>
    %210 = arith.addf %202, %209 : vector<1x8x8x8xf32>
    %211 = vector.extract_strided_slice %194 {offsets = [0, 0, 0, 2], sizes = [1, 8, 8, 1], strides = [1, 1, 1, 1]} : vector<1x8x8x4xf32> to vector<1x8x8x1xf32>
    %212 = vector.extract_strided_slice %195 {offsets = [2, 0], sizes = [1, 8], strides = [1, 1]} : vector<4x8xf32> to vector<1x8xf32>
    %213 = vector.shape_cast %212 : vector<1x8xf32> to vector<8xf32>
    %214 = vector.shape_cast %213 : vector<8xf32> to vector<1x1x1x8xf32>
    %215 = vector.broadcast %211 : vector<1x8x8x1xf32> to vector<1x8x8x8xf32>
    %216 = vector.broadcast %214 : vector<1x1x1x8xf32> to vector<1x8x8x8xf32>
    %217 = arith.mulf %215, %216 : vector<1x8x8x8xf32>
    %218 = arith.addf %210, %217 : vector<1x8x8x8xf32>
    %219 = vector.extract_strided_slice %194 {offsets = [0, 0, 0, 3], sizes = [1, 8, 8, 1], strides = [1, 1, 1, 1]} : vector<1x8x8x4xf32> to vector<1x8x8x1xf32>
    %220 = vector.extract_strided_slice %195 {offsets = [3, 0], sizes = [1, 8], strides = [1, 1]} : vector<4x8xf32> to vector<1x8xf32>
    %221 = vector.shape_cast %220 : vector<1x8xf32> to vector<8xf32>
    %222 = vector.shape_cast %221 : vector<8xf32> to vector<1x1x1x8xf32>
    %223 = vector.broadcast %219 : vector<1x8x8x1xf32> to vector<1x8x8x8xf32>
    %224 = vector.broadcast %222 : vector<1x1x1x8xf32> to vector<1x8x8x8xf32>
    %225 = arith.mulf %223, %224 : vector<1x8x8x8xf32>
    %226 = arith.addf %218, %225 : vector<1x8x8x8xf32>
    %c0_45 = arith.constant 0 : index
    %c0_46 = arith.constant 0 : index
    %227 = vector.load %arg6[%c0_45, %c0_46] : memref<1x8xf32, #tpu.memory_space<vmem>>, vector<1x8xf32>
    %228 = vector.shape_cast %227 : vector<1x8xf32> to vector<1x1x1x8xf32>
    %229 = vector.broadcast %228 : vector<1x1x1x8xf32> to vector<1x8x8x8xf32>
    %230 = arith.mulf %226, %229 : vector<1x8x8x8xf32>
    %c0_47 = arith.constant 0 : index
    %c0_48 = arith.constant 0 : index
    %231 = vector.load %arg7[%c0_47, %c0_48] : memref<1x8xf32, #tpu.memory_space<vmem>>, vector<1x8xf32>
    %232 = vector.shape_cast %231 : vector<1x8xf32> to vector<1x1x1x8xf32>
    %233 = vector.broadcast %232 : vector<1x1x1x8xf32> to vector<1x8x8x8xf32>
    %234 = arith.addf %230, %233 : vector<1x8x8x8xf32>
    %cst_49 = arith.constant 0.000000e+00 : f32
    %cst_50 = arith.constant 6.000000e+00 : f32
    %235 = vector.broadcast %cst_49 : f32 to vector<1x8x8x8xf32>
    %236 = arith.maximumf %235, %234 : vector<1x8x8x8xf32>
    %237 = vector.broadcast %cst_50 : f32 to vector<1x8x8x8xf32>
    %238 = arith.minimumf %237, %236 : vector<1x8x8x8xf32>
    %cst_51 = arith.constant 0.000000e+00 : f32
    %239 = vector.broadcast %cst_51 : f32 to vector<1x1x10x8xf32>
    %c0_52 = arith.constant 0 : index
    %c0_53 = arith.constant 0 : index
    %c0_54 = arith.constant 0 : index
    %c0_55 = arith.constant 0 : index
    %240 = vector.load %arg16[%c0_52, %c0_53, %c0_54, %c0_55] : memref<1x10x10x8xf32, #tpu.memory_space<vmem>>, vector<1x1x10x8xf32>
    tpu.vector_store %arg16[%c0_52, %c0_53, %c0_54, %c0_55], %239 {strides = array<i32>} : memref<1x10x10x8xf32, #tpu.memory_space<vmem>>, vector<1x1x10x8xf32>,
    %c0_56 = arith.constant 0 : index
    %c9 = arith.constant 9 : index
    %c0_57 = arith.constant 0 : index
    %c0_58 = arith.constant 0 : index
    %241 = vector.load %arg16[%c0_56, %c9, %c0_57, %c0_58] : memref<1x10x10x8xf32, #tpu.memory_space<vmem>>, vector<1x1x10x8xf32>
    tpu.vector_store %arg16[%c0_56, %c9, %c0_57, %c0_58], %239 {strides = array<i32>} : memref<1x10x10x8xf32, #tpu.memory_space<vmem>>, vector<1x1x10x8xf32>,
    %cst_59 = arith.constant 0.000000e+00 : f32
    %242 = vector.broadcast %cst_59 : f32 to vector<1x8x1x8xf32>
    %c0_60 = arith.constant 0 : index
    %c1_61 = arith.constant 1 : index
    %c0_62 = arith.constant 0 : index
    %c0_63 = arith.constant 0 : index
    %243 = vector.load %arg16[%c0_60, %c1_61, %c0_62, %c0_63] : memref<1x10x10x8xf32, #tpu.memory_space<vmem>>, vector<1x8x1x8xf32>
    tpu.vector_store %arg16[%c0_60, %c1_61, %c0_62, %c0_63], %242 {strides = array<i32>} : memref<1x10x10x8xf32, #tpu.memory_space<vmem>>, vector<1x8x1x8xf32>,
    %c0_64 = arith.constant 0 : index
    %c1_65 = arith.constant 1 : index
    %c9_66 = arith.constant 9 : index
    %c0_67 = arith.constant 0 : index
    %244 = vector.load %arg16[%c0_64, %c1_65, %c9_66, %c0_67] : memref<1x10x10x8xf32, #tpu.memory_space<vmem>>, vector<1x8x1x8xf32>
    tpu.vector_store %arg16[%c0_64, %c1_65, %c9_66, %c0_67], %242 {strides = array<i32>} : memref<1x10x10x8xf32, #tpu.memory_space<vmem>>, vector<1x8x1x8xf32>,
    %c0_68 = arith.constant 0 : index
    %c1_69 = arith.constant 1 : index
    %c1_70 = arith.constant 1 : index
    %c0_71 = arith.constant 0 : index
    %245 = vector.load %arg16[%c0_68, %c1_69, %c1_70, %c0_71] : memref<1x10x10x8xf32, #tpu.memory_space<vmem>>, vector<1x8x8x8xf32>
    tpu.vector_store %arg16[%c0_68, %c1_69, %c1_70, %c0_71], %238 {strides = array<i32>} : memref<1x10x10x8xf32, #tpu.memory_space<vmem>>, vector<1x8x8x8xf32>,
    %c0_72 = arith.constant 0 : index
    %c0_73 = arith.constant 0 : index
    %246 = vector.load %arg8[%c0_72, %c0_73] : memref<9x8xf32, #tpu.memory_space<vmem>>, vector<9x8xf32>
    %c0_74 = arith.constant 0 : index
    %c0_75 = arith.constant 0 : index
    %c0_76 = arith.constant 0 : index
    %c0_77 = arith.constant 0 : index
    %247 = vector.load %arg16[%c0_74, %c0_75, %c0_76, %c0_77] : memref<1x10x10x8xf32, #tpu.memory_space<vmem>>, vector<1x8x8x8xf32>
    %248 = vector.extract_strided_slice %246 {offsets = [0, 0], sizes = [1, 8], strides = [1, 1]} : vector<9x8xf32> to vector<1x8xf32>
    %249 = vector.shape_cast %248 : vector<1x8xf32> to vector<8xf32>
    %250 = vector.shape_cast %249 : vector<8xf32> to vector<1x1x1x8xf32>
    %251 = vector.broadcast %250 : vector<1x1x1x8xf32> to vector<1x8x8x8xf32>
    %252 = arith.mulf %247, %251 : vector<1x8x8x8xf32>
    %c0_78 = arith.constant 0 : index
    %c0_79 = arith.constant 0 : index
    %c1_80 = arith.constant 1 : index
    %c0_81 = arith.constant 0 : index
    %253 = vector.load %arg16[%c0_78, %c0_79, %c1_80, %c0_81] : memref<1x10x10x8xf32, #tpu.memory_space<vmem>>, vector<1x8x8x8xf32>
    %254 = vector.extract_strided_slice %246 {offsets = [1, 0], sizes = [1, 8], strides = [1, 1]} : vector<9x8xf32> to vector<1x8xf32>
    %255 = vector.shape_cast %254 : vector<1x8xf32> to vector<8xf32>
    %256 = vector.shape_cast %255 : vector<8xf32> to vector<1x1x1x8xf32>
    %257 = vector.broadcast %256 : vector<1x1x1x8xf32> to vector<1x8x8x8xf32>
    %258 = arith.mulf %253, %257 : vector<1x8x8x8xf32>
    %259 = arith.addf %252, %258 : vector<1x8x8x8xf32>
    %c0_82 = arith.constant 0 : index
    %c0_83 = arith.constant 0 : index
    %c2_84 = arith.constant 2 : index
    %c0_85 = arith.constant 0 : index
    %260 = vector.load %arg16[%c0_82, %c0_83, %c2_84, %c0_85] : memref<1x10x10x8xf32, #tpu.memory_space<vmem>>, vector<1x8x8x8xf32>
    %261 = vector.extract_strided_slice %246 {offsets = [2, 0], sizes = [1, 8], strides = [1, 1]} : vector<9x8xf32> to vector<1x8xf32>
    %262 = vector.shape_cast %261 : vector<1x8xf32> to vector<8xf32>
    %263 = vector.shape_cast %262 : vector<8xf32> to vector<1x1x1x8xf32>
    %264 = vector.broadcast %263 : vector<1x1x1x8xf32> to vector<1x8x8x8xf32>
    %265 = arith.mulf %260, %264 : vector<1x8x8x8xf32>
    %266 = arith.addf %259, %265 : vector<1x8x8x8xf32>
    %c0_86 = arith.constant 0 : index
    %c1_87 = arith.constant 1 : index
    %c0_88 = arith.constant 0 : index
    %c0_89 = arith.constant 0 : index
    %267 = vector.load %arg16[%c0_86, %c1_87, %c0_88, %c0_89] : memref<1x10x10x8xf32, #tpu.memory_space<vmem>>, vector<1x8x8x8xf32>
    %268 = vector.extract_strided_slice %246 {offsets = [3, 0], sizes = [1, 8], strides = [1, 1]} : vector<9x8xf32> to vector<1x8xf32>
    %269 = vector.shape_cast %268 : vector<1x8xf32> to vector<8xf32>
    %270 = vector.shape_cast %269 : vector<8xf32> to vector<1x1x1x8xf32>
    %271 = vector.broadcast %270 : vector<1x1x1x8xf32> to vector<1x8x8x8xf32>
    %272 = arith.mulf %267, %271 : vector<1x8x8x8xf32>
    %273 = arith.addf %266, %272 : vector<1x8x8x8xf32>
    %c0_90 = arith.constant 0 : index
    %c1_91 = arith.constant 1 : index
    %c1_92 = arith.constant 1 : index
    %c0_93 = arith.constant 0 : index
    %274 = vector.load %arg16[%c0_90, %c1_91, %c1_92, %c0_93] : memref<1x10x10x8xf32, #tpu.memory_space<vmem>>, vector<1x8x8x8xf32>
    %275 = vector.extract_strided_slice %246 {offsets = [4, 0], sizes = [1, 8], strides = [1, 1]} : vector<9x8xf32> to vector<1x8xf32>
    %276 = vector.shape_cast %275 : vector<1x8xf32> to vector<8xf32>
    %277 = vector.shape_cast %276 : vector<8xf32> to vector<1x1x1x8xf32>
    %278 = vector.broadcast %277 : vector<1x1x1x8xf32> to vector<1x8x8x8xf32>
    %279 = arith.mulf %274, %278 : vector<1x8x8x8xf32>
    %280 = arith.addf %273, %279 : vector<1x8x8x8xf32>
    %c0_94 = arith.constant 0 : index
    %c1_95 = arith.constant 1 : index
    %c2_96 = arith.constant 2 : index
    %c0_97 = arith.constant 0 : index
    %281 = vector.load %arg16[%c0_94, %c1_95, %c2_96, %c0_97] : memref<1x10x10x8xf32, #tpu.memory_space<vmem>>, vector<1x8x8x8xf32>
    %282 = vector.extract_strided_slice %246 {offsets = [5, 0], sizes = [1, 8], strides = [1, 1]} : vector<9x8xf32> to vector<1x8xf32>
    %283 = vector.shape_cast %282 : vector<1x8xf32> to vector<8xf32>
    %284 = vector.shape_cast %283 : vector<8xf32> to vector<1x1x1x8xf32>
    %285 = vector.broadcast %284 : vector<1x1x1x8xf32> to vector<1x8x8x8xf32>
    %286 = arith.mulf %281, %285 : vector<1x8x8x8xf32>
    %287 = arith.addf %280, %286 : vector<1x8x8x8xf32>
    %c0_98 = arith.constant 0 : index
    %c2_99 = arith.constant 2 : index
    %c0_100 = arith.constant 0 : index
    %c0_101 = arith.constant 0 : index
    %288 = vector.load %arg16[%c0_98, %c2_99, %c0_100, %c0_101] : memref<1x10x10x8xf32, #tpu.memory_space<vmem>>, vector<1x8x8x8xf32>
    %289 = vector.extract_strided_slice %246 {offsets = [6, 0], sizes = [1, 8], strides = [1, 1]} : vector<9x8xf32> to vector<1x8xf32>
    %290 = vector.shape_cast %289 : vector<1x8xf32> to vector<8xf32>
    %291 = vector.shape_cast %290 : vector<8xf32> to vector<1x1x1x8xf32>
    %292 = vector.broadcast %291 : vector<1x1x1x8xf32> to vector<1x8x8x8xf32>
    %293 = arith.mulf %288, %292 : vector<1x8x8x8xf32>
    %294 = arith.addf %287, %293 : vector<1x8x8x8xf32>
    %c0_102 = arith.constant 0 : index
    %c2_103 = arith.constant 2 : index
    %c1_104 = arith.constant 1 : index
    %c0_105 = arith.constant 0 : index
    %295 = vector.load %arg16[%c0_102, %c2_103, %c1_104, %c0_105] : memref<1x10x10x8xf32, #tpu.memory_space<vmem>>, vector<1x8x8x8xf32>
    %296 = vector.extract_strided_slice %246 {offsets = [7, 0], sizes = [1, 8], strides = [1, 1]} : vector<9x8xf32> to vector<1x8xf32>
    %297 = vector.shape_cast %296 : vector<1x8xf32> to vector<8xf32>
    %298 = vector.shape_cast %297 : vector<8xf32> to vector<1x1x1x8xf32>
    %299 = vector.broadcast %298 : vector<1x1x1x8xf32> to vector<1x8x8x8xf32>
    %300 = arith.mulf %295, %299 : vector<1x8x8x8xf32>
    %301 = arith.addf %294, %300 : vector<1x8x8x8xf32>
    %c0_106 = arith.constant 0 : index
    %c2_107 = arith.constant 2 : index
    %c2_108 = arith.constant 2 : index
    %c0_109 = arith.constant 0 : index
    %302 = vector.load %arg16[%c0_106, %c2_107, %c2_108, %c0_109] : memref<1x10x10x8xf32, #tpu.memory_space<vmem>>, vector<1x8x8x8xf32>
    %303 = vector.extract_strided_slice %246 {offsets = [8, 0], sizes = [1, 8], strides = [1, 1]} : vector<9x8xf32> to vector<1x8xf32>
    %304 = vector.shape_cast %303 : vector<1x8xf32> to vector<8xf32>
    %305 = vector.shape_cast %304 : vector<8xf32> to vector<1x1x1x8xf32>
    %306 = vector.broadcast %305 : vector<1x1x1x8xf32> to vector<1x8x8x8xf32>
    %307 = arith.mulf %302, %306 : vector<1x8x8x8xf32>
    %308 = arith.addf %301, %307 : vector<1x8x8x8xf32>
    %c0_110 = arith.constant 0 : index
    %c0_111 = arith.constant 0 : index
    %309 = vector.load %arg9[%c0_110, %c0_111] : memref<1x8xf32, #tpu.memory_space<vmem>>, vector<1x8xf32>
    %310 = vector.shape_cast %309 : vector<1x8xf32> to vector<1x1x1x8xf32>
    %311 = vector.broadcast %310 : vector<1x1x1x8xf32> to vector<1x8x8x8xf32>
    %312 = arith.mulf %308, %311 : vector<1x8x8x8xf32>
    %c0_112 = arith.constant 0 : index
    %c0_113 = arith.constant 0 : index
    %313 = vector.load %arg10[%c0_112, %c0_113] : memref<1x8xf32, #tpu.memory_space<vmem>>, vector<1x8xf32>
    %314 = vector.shape_cast %313 : vector<1x8xf32> to vector<1x1x1x8xf32>
    %315 = vector.broadcast %314 : vector<1x1x1x8xf32> to vector<1x8x8x8xf32>
    %316 = arith.addf %312, %315 : vector<1x8x8x8xf32>
    %cst_114 = arith.constant 0.000000e+00 : f32
    %cst_115 = arith.constant 6.000000e+00 : f32
    %317 = vector.broadcast %cst_114 : f32 to vector<1x8x8x8xf32>
    %318 = arith.maximumf %317, %316 : vector<1x8x8x8xf32>
    %319 = vector.broadcast %cst_115 : f32 to vector<1x8x8x8xf32>
    %320 = arith.minimumf %319, %318 : vector<1x8x8x8xf32>
    %c0_116 = arith.constant 0 : index
    %c0_117 = arith.constant 0 : index
    %321 = vector.load %arg11[%c0_116, %c0_117] : memref<8x2xf32, #tpu.memory_space<vmem>>, vector<8x2xf32>
    %322 = vector.shape_cast %320 : vector<1x8x8x8xf32> to vector<64x8xf32>
    %cst_118 = arith.constant dense<0.000000e+00> : vector<64x2xf32>
    %323 = tpu.matmul %322, %321, %cst_118 {dimension_numbers = #tpu.dot_dimension_numbers<[1], [0], [0], [1], [0, 0, 1, 1], [], []>} : vector<64x8xf32>, vector<8x2xf32>, vector<64x2xf32> -> vector<64x2xf32>
    %324 = vector.shape_cast %323 : vector<64x2xf32> to vector<1x8x8x2xf32>
    %c0_119 = arith.constant 0 : index
    %c0_120 = arith.constant 0 : index
    %325 = vector.load %arg12[%c0_119, %c0_120] : memref<1x2xf32, #tpu.memory_space<vmem>>, vector<1x2xf32>
    %326 = vector.shape_cast %325 : vector<1x2xf32> to vector<1x1x1x2xf32>
    %327 = vector.broadcast %326 : vector<1x1x1x2xf32> to vector<1x8x8x2xf32>
    %328 = arith.mulf %324, %327 : vector<1x8x8x2xf32>
    %c0_121 = arith.constant 0 : index
    %c0_122 = arith.constant 0 : index
    %329 = vector.load %arg13[%c0_121, %c0_122] : memref<1x2xf32, #tpu.memory_space<vmem>>, vector<1x2xf32>
    %330 = vector.shape_cast %329 : vector<1x2xf32> to vector<1x1x1x2xf32>
    %331 = vector.broadcast %330 : vector<1x1x1x2xf32> to vector<1x8x8x2xf32>
    %332 = arith.addf %328, %331 : vector<1x8x8x2xf32>
    %c0_123 = arith.constant 0 : index
    %c0_124 = arith.constant 0 : index
    %c0_125 = arith.constant 0 : index
    %c0_126 = arith.constant 0 : index
    %333 = vector.load %arg14[%c0_123, %c0_124, %c0_125, %c0_126] : memref<1x8x8x2xf32, #tpu.memory_space<vmem>>, vector<1x8x8x2xf32>
    tpu.vector_store %arg14[%c0_123, %c0_124, %c0_125, %c0_126], %332 {strides = array<i32>} : memref<1x8x8x2xf32, #tpu.memory_space<vmem>>, vector<1x8x8x2xf32>,
    return
  }
  func.func @transform_0(%arg0: i32) -> (i32, i32, i32, i32) {
    %c0_i32 = arith.constant 0 : i32
    %c0_i32_0 = arith.constant 0 : i32
    %c0_i32_1 = arith.constant 0 : i32
    %c0_i32_2 = arith.constant 0 : i32
    return %arg0, %c0_i32, %c0_i32_0, %c0_i32_1 : i32, i32, i32, i32
  }
  func.func @transform_1(%arg0: i32) -> (i32, i32) {
    %c0_i32 = arith.constant 0 : i32
    %c0_i32_0 = arith.constant 0 : i32
    %c0_i32_1 = arith.constant 0 : i32
    return %c0_i32, %c0_i32_0 : i32, i32
  }
  func.func @transform_2(%arg0: i32) -> (i32, i32) {
    %c0_i32 = arith.constant 0 : i32
    %c0_i32_0 = arith.constant 0 : i32
    %c0_i32_1 = arith.constant 0 : i32
    return %c0_i32, %c0_i32_0 : i32, i32
  }
  func.func @transform_3(%arg0: i32) -> (i32, i32) {
    %c0_i32 = arith.constant 0 : i32
    %c0_i32_0 = arith.constant 0 : i32
    %c0_i32_1 = arith.constant 0 : i32
    return %c0_i32, %c0_i32_0 : i32, i32
  }
  func.func @transform_4(%arg0: i32) -> (i32, i32) {
    %c0_i32 = arith.constant 0 : i32
    %c0_i32_0 = arith.constant 0 : i32
    %c0_i32_1 = arith.constant 0 : i32
    return %c0_i32, %c0_i32_0 : i32, i32
  }
  func.func @transform_5(%arg0: i32) -> (i32, i32) {
    %c0_i32 = arith.constant 0 : i32
    %c0_i32_0 = arith.constant 0 : i32
    %c0_i32_1 = arith.constant 0 : i32
    return %c0_i32, %c0_i32_0 : i32, i32
  }
  func.func @transform_6(%arg0: i32) -> (i32, i32) {
    %c0_i32 = arith.constant 0 : i32
    %c0_i32_0 = arith.constant 0 : i32
    %c0_i32_1 = arith.constant 0 : i32
    return %c0_i32, %c0_i32_0 : i32, i32
  }
  func.func @transform_7(%arg0: i32) -> (i32, i32) {
    %c0_i32 = arith.constant 0 : i32
    %c0_i32_0 = arith.constant 0 : i32
    %c0_i32_1 = arith.constant 0 : i32
    return %c0_i32, %c0_i32_0 : i32, i32
  }
  func.func @transform_8(%arg0: i32) -> (i32, i32) {
    %c0_i32 = arith.constant 0 : i32
    %c0_i32_0 = arith.constant 0 : i32
    %c0_i32_1 = arith.constant 0 : i32
    return %c0_i32, %c0_i32_0 : i32, i32
  }
  func.func @transform_9(%arg0: i32) -> (i32, i32) {
    %c0_i32 = arith.constant 0 : i32
    %c0_i32_0 = arith.constant 0 : i32
    %c0_i32_1 = arith.constant 0 : i32
    return %c0_i32, %c0_i32_0 : i32, i32
  }
  func.func @transform_10(%arg0: i32) -> (i32, i32) {
    %c0_i32 = arith.constant 0 : i32
    %c0_i32_0 = arith.constant 0 : i32
    %c0_i32_1 = arith.constant 0 : i32
    return %c0_i32, %c0_i32_0 : i32, i32
  }
  func.func @transform_11(%arg0: i32) -> (i32, i32) {
    %c0_i32 = arith.constant 0 : i32
    %c0_i32_0 = arith.constant 0 : i32
    %c0_i32_1 = arith.constant 0 : i32
    return %c0_i32, %c0_i32_0 : i32, i32
  }
  func.func @transform_12(%arg0: i32) -> (i32, i32) {
    %c0_i32 = arith.constant 0 : i32
    %c0_i32_0 = arith.constant 0 : i32
    %c0_i32_1 = arith.constant 0 : i32
    return %c0_i32, %c0_i32_0 : i32, i32
  }
  func.func @transform_13(%arg0: i32) -> (i32, i32, i32, i32) {
    %c0_i32 = arith.constant 0 : i32
    %c0_i32_0 = arith.constant 0 : i32
    %c0_i32_1 = arith.constant 0 : i32
    %c0_i32_2 = arith.constant 0 : i32
    return %arg0, %c0_i32, %c0_i32_0, %c0_i32_1 : i32, i32, i32, i32
  }
}

</mosaic_0001>

<bundles_post_ra>
// kernel: tpu_custom_call.1
= control target key start
LH: loop header
LB: loop body
LE: loop exit
PB: predicated region body
PF: predicated region fallthrough
CT: control target
= control target key end

     0   :  { %s6083_s0 = inlined_call_operand.hbm [shape: f32[2,16,16,4], index: 0, kind: input, shape index: {}]   ;;  %s6084_s1 = inlined_call_operand.hbm [shape: f32[25,4], index: 1, kind: input, shape index: {}]   ;;  %s6085_s2 = inlined_call_operand.hbm [shape: f32[1,4], index: 2, kind: input, shape index: {}]   ;;  %s6086_s3 = inlined_call_operand.hbm [shape: f32[1,4], index: 3, kind: input, shape index: {}]   ;;  %s6087_s4 = inlined_call_operand.hbm [shape: f32[4,8], index: 4, kind: input, shape index: {}]   ;;  %s6088_s5 = inlined_call_operand.hbm [shape: f32[1,8], index: 5, kind: input, shape index: {}]   ;;  %s6089_s6 = inlined_call_operand.hbm [shape: f32[1,8], index: 6, kind: input, shape index: {}]   ;;  %s6090_s7 = inlined_call_operand.hbm [shape: f32[9,8], index: 7, kind: input, shape index: {}]   ;;  %s6091_s8 = inlined_call_operand.hbm [shape: f32[1,8], index: 8, kind: input, shape index: {}]   ;;  %s6092_s9 = inlined_call_operand.hbm [shape: f32[1,8], index: 9, kind: input, shape index: {}]   ;;  %s6093_s10 = inlined_call_operand.hbm [shape: f32[8,2], index: 10, kind: input, shape index: {}]   ;;  %s6094_s11 = inlined_call_operand.hbm [shape: f32[1,2], index: 11, kind: input, shape index: {}]   ;;  %s6095_s12 = inlined_call_operand.hbm [shape: f32[1,2], index: 12, kind: input, shape index: {}]   ;;  %s6096_s13 = inlined_call_operand.hbm [shape: f32[2,8,8,2], index: 13, kind: output, shape index: {}]  }
   0x1   :  { %6160 = sst [smem:[#allocation61_spill]] %s6083_s0 }
   0x2   :  { %6161 = sst [smem:[#allocation62_spill]] %s6084_s1 }
   0x3   :  { %6162 = sst [smem:[#allocation63_spill]] %s6085_s2 }
   0x4   :  { %6163 = sst [smem:[#allocation64_spill]] %s6096_s13 }
   0x5   :  { %18 = vsyncpa [#allocation5], 0 }
   0x6   :  { %20 = vsyncpa [#allocation5 + $0x1], 0 }
   0x7   :  { %21 = vsyncpa [#allocation8], 0 }
   0x8   :  { %22 = vsyncpa [#allocation11], 0 }
   0x9   :  { %23 = vsyncpa [#allocation14], 0 }
   0xa   :  { %24 = vsyncpa [#allocation17], 0 }
   0xb   :  { %25 = vsyncpa [#allocation20], 0 }
   0xc   :  { %26 = vsyncpa [#allocation23], 0 }
   0xd   :  { %27 = vsyncpa [#allocation6], 0 }
   0xe   :  { %29 = vsyncpa [#allocation6 + $0x1], 0  ;;  %s4078_s25 = smov 0   ;;  %s4080_s26 = smov 0  }
   0xf   :  { %s4082_s27 = smov 0   ;;  %s4084_s28 = smov 0  }
  0x10 LB: > { %6164 = sst [smem:[#allocation34_spill]] %s3971_s25  ;;  %s3985_s29 = smov [#allocation7]   ;;  %s3983_s28 = sphi %s4084_s28, %s6267_s28   ;;  %s3979_s27 = sphi %s4082_s27, %s6266_s27   ;;  %s3975_s26 = sphi %s4080_s26, %s6265_s26   ;;  %s3971_s25 = sphi %s4078_s25, %s6264_s25  }
  0x11   : > { %s356_s30 = sshll.u32 %s3985_s29, 4  ;;  %s4099_s14 = sadd.s32 4294967295, %s3983_s28   ;;  %s4104_s30 = int_to_ptr.vmem [resolvable:$true] %s356_s30 }
  0x12   : > { %6165 = sst [smem:[#allocation35_spill]] %s4099_s14  ;;  %p3232_p0 = scmp.ge.s32.totalorder %s3983_s28, 1 }
  0x13   : > { %p6105_p1 = scmp.eq.s32.totalorder %s4099_s14, 0  ;;  %p344_p2 = scmp.lt.s32.totalorder %s3983_s28, 3 }
  0x14   : > { %s3986_s16 = smov [#allocation10]   ;;  %s3987_s19 = smov [#allocation13]  }
  0x15   : > { %p4106_p3 = pnand %p3232_p0, %p344_p2  ;;  %s381_s17 = sshll.u32 %s3986_s16, 4  ;;  %s4119_s17 = int_to_ptr.vmem [resolvable:$true] %s381_s17 }
  0x16   : > { %s403_s20 = sshll.u32 %s3987_s19, 4  ;;  %s6169_s1 = sld [smem:[#allocation62_spill]]  ;;  %s4121_s20 = int_to_ptr.vmem [resolvable:$true] %s403_s20 }
  0x17   : > { %s6166_s15 = scalar_select %p4106_p3, 1, 0 }
  0x18   : > { %p3366_p5 = pneg %p4106_p3 }
  0x19   : > { %6167 = sst [smem:[#allocation36_spill]] %s6166_s15 }
  0x1a   : > { %p4115_p6 = pnand %p3366_p5, %p6105_p1 }
  0x1c   : > { %s3527_s23 = scalar_lea.hbm %s6169_s1, 512  ;;  %p4131_p8 = pneg %p4115_p6 }
  0x1d   : > { %p3528_p7 = scmp.ne.s32.totalorder %s6169_s1, %s3527_s23  ;;  %p3534_p11 = scmp.lt.u32.totalorder %s3527_s23, %s6169_s1 }
  0x1f   : > { %p3530_p9 = pnand %p4131_p8, %p3528_p7 }
  0x21   : > { %p3531_p10 = pneg %p3530_p9 }
  0x23   : > { %p3536_p12 = pnand %p3534_p11, %p3531_p10 }
  0x25   : > { %3539 = shalt.err (!%p3536_p12)
}
  0x26   : > { %s3540_s21 = scalar_lea.vmem %s4104_s30, 512  ;;  %p3548_p5 = scmp.lt.s32.totalorder %s4104_s30, %s4104_s30 }
  0x27   : > { %p3541_p13 = scmp.ne.s32.totalorder %s4104_s30, %s3540_s21  ;;  %p3549_p4 = scmp.lt.s32.totalorder %s3540_s21, %s3540_s21 }
  0x29   : > { %p3543_p0 = pnand %p3541_p13, %p4131_p8  ;;  %p3550_p7 = por %p3549_p4, %p3548_p5 }
  0x2b   : > { %p3544_p2 = pneg %p3543_p0 }
  0x2d   : > { %p3551_p9 = pnand %p3550_p7, %p3544_p2 }
  0x2f   : > { %3554 = shalt.err (!%p3551_p9)
}
  0x30   : > { %s6103_s22 = smov 128   ;;  %s6107_s13 = smov 8  }
  0x31   : > { %3369 = dma.hbm_to_vmem [thread:$0]  (!%p4115_p6), %s6169_s1, 512, %s4104_s30, [#allocation8], %s6103_s22, %s6103_s22, %s6107_s13  }
  0x32   : > { %s3555_s21 = scalar_lea.hbm %s6086_s3, 16 }
  0x33   : > { %p3556_p4 = scmp.ne.s32.totalorder %s6086_s3, %s3555_s21  ;;  %p3562_p12 = scmp.lt.u32.totalorder %s3555_s21, %s6086_s3 }
  0x35   : > { %p3558_p10 = pnand %p3556_p4, %p4131_p8 }
  0x37   : > { %p3559_p11 = pneg %p3558_p10 }
  0x39   : > { %p3564_p13 = pnand %p3562_p12, %p3559_p11 }
  0x3b   : > { %3567 = shalt.err (!%p3564_p13)
}
  0x3c   : > { %s3568_s30 = scalar_lea.vmem %s4119_s17, 16  ;;  %s3575_s0 = scalar_lea.vmem %s4119_s17, 32 }
  0x3d   : > { %p3569_p0 = scmp.ne.s32.totalorder %s4119_s17, %s3568_s30  ;;  %p3576_p7 = scmp.lt.s32.totalorder %s4119_s17, %s4119_s17 }
  0x3e   : > { %p3577_p9 = scmp.lt.s32.totalorder %s3575_s0, %s3568_s30 }
  0x3f   : > { %p3571_p2 = pnand %p3569_p0, %p4131_p8 }
  0x40   : > { %p3578_p4 = por %p3577_p9, %p3576_p7 }
  0x41   : > { %p3572_p5 = pneg %p3571_p2 }
  0x43   : > { %p3579_p10 = pnand %p3578_p4, %p3572_p5 }
  0x45   : > { %3582 = shalt.err (!%p3579_p10)
}
  0x46   : > { %3375 = dma.hbm_to_vmem [thread:$0]  (!%p4115_p6), %s6086_s3, 16, %s4119_s17, [#allocation11]  }
  0x47   : > { %s3583_s24 = scalar_lea.hbm %s6088_s5, 16 }
  0x48   : > { %p3584_p11 = scmp.ne.s32.totalorder %s6088_s5, %s3583_s24  ;;  %p3590_p0 = scmp.lt.u32.totalorder %s3583_s24, %s6088_s5 }
  0x4a   : > { %p3586_p12 = pnand %p3584_p11, %p4131_p8 }
  0x4c   : > { %p3587_p13 = pneg %p3586_p12 }
  0x4e   : > { %p3592_p2 = pnand %p3590_p0, %p3587_p13 }
  0x50   : > { %3595 = shalt.err (!%p3592_p2)
}
  0x51   : > { %s3596_s17 = scalar_lea.vmem %s4121_s20, 16  ;;  %s3603_s0 = scalar_lea.vmem %s4121_s20, 32 }
  0x52   : > { %p3597_p5 = scmp.ne.s32.totalorder %s4121_s20, %s3596_s17  ;;  %p3604_p4 = scmp.lt.s32.totalorder %s4121_s20, %s4121_s20 }
  0x53   : > { %p3605_p10 = scmp.lt.s32.totalorder %s3603_s0, %s3596_s17 }
  0x54   : > { %p3599_p7 = pnand %p3597_p5, %p4131_p8 }
  0x55   : > { %p3606_p11 = por %p3605_p10, %p3604_p4 }
  0x56   : > { %p3600_p9 = pneg %p3599_p7 }
  0x58   : > { %p3607_p12 = pnand %p3606_p11, %p3600_p9 }
  0x5a   : > { %3610 = shalt.err (!%p3607_p12)
}
  0x5b   : > { %3381 = dma.hbm_to_vmem [thread:$0]  (!%p4115_p6), %s6088_s5, 16, %s4121_s20, [#allocation14]  }
  0x5c   : > { %s3990_s15 = smov [#allocation16]   ;;  %s3991_s24 = smov [#allocation19]  }
  0x5d   : > { %s424_s23 = sshll.u32 %s3990_s15, 4  ;;  %s449_s29 = sshll.u32 %s3991_s24, 4  ;;  %s425_s23 = int_to_ptr.vmem [resolvable:$true] %s424_s23  ;;  %s450_s29 = int_to_ptr.vmem [resolvable:$true] %s449_s29 }
  0x5e   : > { %s3611_s30 = scalar_lea.hbm %s6090_s7, 256 }
  0x5f   : > { %p3612_p13 = scmp.ne.s32.totalorder %s6090_s7, %s3611_s30  ;;  %p3618_p5 = scmp.lt.u32.totalorder %s3611_s30, %s6090_s7 }
  0x61   : > { %p3614_p0 = pnand %p3612_p13, %p4131_p8 }
  0x63   : > { %p3615_p2 = pneg %p3614_p0 }
  0x65   : > { %p3620_p7 = pnand %p3618_p5, %p3615_p2 }
  0x67   : > { %3623 = shalt.err (!%p3620_p7)
}
  0x68   : > { %s3624_s20 = scalar_lea.vmem %s425_s23, 256  ;;  %p3632_p11 = scmp.lt.s32.totalorder %s425_s23, %s425_s23 }
  0x69   : > { %p3625_p9 = scmp.ne.s32.totalorder %s425_s23, %s3624_s20  ;;  %p3633_p12 = scmp.lt.s32.totalorder %s3624_s20, %s3624_s20 }
  0x6b   : > { %p3627_p4 = pnand %p3625_p9, %p4131_p8  ;;  %p3634_p1 = por %p3633_p12, %p3632_p11 }
  0x6d   : > { %p3628_p10 = pneg %p3627_p4 }
  0x6f   : > { %p3635_p3 = pnand %p3634_p1, %p3628_p10 }
  0x71   : > { %3638 = shalt.err (!%p3635_p3)
}
  0x72   : > { %s6171_s14 = smov 128   ;;  %s3639_s21 = scalar_lea.hbm %s6092_s9, 16 }
  0x73   : > { %3387 = dma.hbm_to_vmem [thread:$0]  (!%p4115_p6), %s6090_s7, 256, %s425_s23, [#allocation17], %s6171_s14, %s6171_s14, %s6107_s13  }
  0x74   : > { %p3640_p1 = scmp.ne.s32.totalorder %s6092_s9, %s3639_s21  ;;  %p3646_p0 = scmp.lt.u32.totalorder %s3639_s21, %s6092_s9 }
  0x76   : > { %p3642_p3 = pnand %p3640_p1, %p4131_p8 }
  0x78   : > { %p3643_p13 = pneg %p3642_p3 }
  0x7a   : > { %p3648_p2 = pnand %p3646_p0, %p3643_p13 }
  0x7c   : > { %3651 = shalt.err (!%p3648_p2)
}
  0x7d   : > { %s3652_s20 = scalar_lea.vmem %s450_s29, 16  ;;  %s3659_s23 = scalar_lea.vmem %s450_s29, 32 }
  0x7e   : > { %p3653_p5 = scmp.ne.s32.totalorder %s450_s29, %s3652_s20  ;;  %p3660_p4 = scmp.lt.s32.totalorder %s450_s29, %s450_s29 }
  0x7f   : > { %p3661_p10 = scmp.lt.s32.totalorder %s3659_s23, %s3652_s20 }
  0x80   : > { %p3655_p7 = pnand %p3653_p5, %p4131_p8 }
  0x81   : > { %p3662_p11 = por %p3661_p10, %p3660_p4 }
  0x82   : > { %p3656_p9 = pneg %p3655_p7 }
  0x84   : > { %p3663_p12 = pnand %p3662_p11, %p3656_p9 }
  0x86   : > { %3666 = shalt.err (!%p3663_p12)
}
  0x87   : > { %3393 = dma.hbm_to_vmem [thread:$0]  (!%p4115_p6), %s6092_s9, 16, %s450_s29, [#allocation20]  }
  0x88   : > { %s3992_s24 = smov [#allocation22]   ;;  %s3993_s21 = smov [#allocation9]  }
  0x89   : > { %s471_s19 = sshll.u32 %s3992_s24, 4  ;;  %s370_s30 = sshll.u32 %s3993_s21, 4  ;;  %s472_s19 = int_to_ptr.vmem [resolvable:$true] %s471_s19  ;;  %s371_s30 = int_to_ptr.vmem [resolvable:$true] %s370_s30 }
  0x8a   : > { %s3667_s25 = scalar_lea.hbm %s6094_s11, 16 }
  0x8b   : > { %p3668_p1 = scmp.ne.s32.totalorder %s6094_s11, %s3667_s25  ;;  %p3674_p0 = scmp.lt.u32.totalorder %s3667_s25, %s6094_s11 }
  0x8d   : > { %p3670_p3 = pnand %p3668_p1, %p4131_p8 }
  0x8f   : > { %p3671_p13 = pneg %p3670_p3 }
  0x91   : > { %p3676_p2 = pnand %p3674_p0, %p3671_p13 }
  0x93   : > { %3679 = shalt.err (!%p3676_p2)
}
  0x94   : > { %s3680_s29 = scalar_lea.vmem %s472_s19, 16  ;;  %s3687_s15 = scalar_lea.vmem %s472_s19, 32 }
  0x95   : > { %p3681_p5 = scmp.ne.s32.totalorder %s472_s19, %s3680_s29  ;;  %p3688_p4 = scmp.lt.s32.totalorder %s472_s19, %s472_s19 }
  0x96   : > { %p3689_p10 = scmp.lt.s32.totalorder %s3687_s15, %s3680_s29 }
  0x97   : > { %p3683_p7 = pnand %p3681_p5, %p4131_p8 }
  0x98   : > { %p3690_p11 = por %p3689_p10, %p3688_p4 }
  0x99   : > { %p3684_p9 = pneg %p3683_p7 }
  0x9b   : > { %p3691_p12 = pnand %p3690_p11, %p3684_p9 }
  0x9d   : > { %3694 = shalt.err (!%p3691_p12)
}
  0x9e   : > { %3399 = dma.hbm_to_vmem [thread:$0]  (!%p4115_p6), %s6094_s11, 16, %s472_s19, [#allocation23]  }
  0x9f   : > { %s6172_s2 = sld [smem:[#allocation63_spill]] }
  0xa5   : > { %s3695_s0 = scalar_lea.hbm %s6172_s2, 16 }
  0xa6   : > { %p3696_p1 = scmp.ne.s32.totalorder %s6172_s2, %s3695_s0  ;;  %p3702_p0 = scmp.lt.u32.totalorder %s3695_s0, %s6172_s2 }
  0xa8   : > { %p3698_p3 = pnand %p3696_p1, %p4131_p8 }
  0xaa   : > { %p3699_p13 = pneg %p3698_p3 }
  0xac   : > { %p3704_p2 = pnand %p3702_p0, %p3699_p13 }
  0xae   : > { %3707 = shalt.err (!%p3704_p2)
}
  0xaf   : > { %s3708_s29 = scalar_lea.vmem %s371_s30, 16  ;;  %s3715_s19 = scalar_lea.vmem %s371_s30, 32 }
  0xb0   : > { %p3709_p5 = scmp.ne.s32.totalorder %s371_s30, %s3708_s29  ;;  %p3716_p4 = scmp.lt.s32.totalorder %s371_s30, %s371_s30 }
  0xb1   : > { %p3717_p10 = scmp.lt.s32.totalorder %s3715_s19, %s3708_s29 }
  0xb2   : > { %p3711_p7 = pnand %p3709_p5, %p4131_p8 }
  0xb3   : > { %p3718_p11 = por %p3717_p10, %p3716_p4 }
  0xb4   : > { %p3712_p9 = pneg %p3711_p7 }
  0xb6   : > { %p3719_p12 = pnand %p3718_p11, %p3712_p9 }
  0xb8   : > { %3722 = shalt.err (!%p3719_p12)
}
  0xb9   : > { %3372 = dma.hbm_to_vmem [thread:$0]  (!%p4115_p6), %s6172_s2, 16, %s371_s30, [#allocation8]  }
  0xba   : > { %s3994_s21 = smov [#allocation12]   ;;  %s3995_s17 = smov [#allocation15]  }
  0xbb   : > { %s392_s13 = sshll.u32 %s3994_s21, 4  ;;  %s414_s0 = sshll.u32 %s3995_s17, 4  ;;  %s393_s13 = int_to_ptr.vmem [resolvable:$true] %s392_s13  ;;  %s415_s0 = int_to_ptr.vmem [resolvable:$true] %s414_s0 }
  0xbc   : > { %s3723_s23 = scalar_lea.hbm %s6087_s4, 64 }
  0xbd   : > { %p3724_p1 = scmp.ne.s32.totalorder %s6087_s4, %s3723_s23  ;;  %p3730_p0 = scmp.lt.u32.totalorder %s3723_s23, %s6087_s4 }
  0xbf   : > { %p3726_p3 = pnand %p3724_p1, %p4131_p8 }
  0xc1   : > { %p3727_p13 = pneg %p3726_p3 }
  0xc3   : > { %p3732_p2 = pnand %p3730_p0, %p3727_p13 }
  0xc5   : > { %3735 = shalt.err (!%p3732_p2)
}
  0xc6   : > { %s3736_s30 = scalar_lea.vmem %s393_s13, 64  ;;  %p3744_p4 = scmp.lt.s32.totalorder %s393_s13, %s393_s13 }
  0xc7   : > { %p3737_p5 = scmp.ne.s32.totalorder %s393_s13, %s3736_s30  ;;  %p3745_p10 = scmp.lt.s32.totalorder %s3736_s30, %s3736_s30 }
  0xc9   : > { %p3739_p7 = pnand %p3737_p5, %p4131_p8  ;;  %p3746_p11 = por %p3745_p10, %p3744_p4 }
  0xcb   : > { %p3740_p9 = pneg %p3739_p7 }
  0xcd   : > { %p3747_p12 = pnand %p3746_p11, %p3740_p9 }
  0xcf   : > { %3750 = shalt.err (!%p3747_p12)
}
  0xd0   : > { %3378 = dma.hbm_to_vmem [thread:$0]  (!%p4115_p6), %s6087_s4, 64, %s393_s13, [#allocation11]  }
  0xd1   : > { %s3751_s20 = scalar_lea.hbm %s6089_s6, 16 }
  0xd2   : > { %p3752_p1 = scmp.ne.s32.totalorder %s6089_s6, %s3751_s20  ;;  %p3758_p0 = scmp.lt.u32.totalorder %s3751_s20, %s6089_s6 }
  0xd4   : > { %p3754_p3 = pnand %p3752_p1, %p4131_p8 }
  0xd6   : > { %p3755_p13 = pneg %p3754_p3 }
  0xd8   : > { %p3760_p2 = pnand %p3758_p0, %p3755_p13 }
  0xda   : > { %3763 = shalt.err (!%p3760_p2)
}
  0xdb   : > { %s3764_s15 = scalar_lea.vmem %s415_s0, 16  ;;  %s3771_s13 = scalar_lea.vmem %s415_s0, 32 }
  0xdc   : > { %p3765_p5 = scmp.ne.s32.totalorder %s415_s0, %s3764_s15  ;;  %p3772_p4 = scmp.lt.s32.totalorder %s415_s0, %s415_s0 }
  0xdd   : > { %p3773_p10 = scmp.lt.s32.totalorder %s3771_s13, %s3764_s15 }
  0xde   : > { %p3767_p7 = pnand %p3765_p5, %p4131_p8 }
  0xdf   : > { %p3774_p11 = por %p3773_p10, %p3772_p4 }
  0xe0   : > { %p3768_p9 = pneg %p3767_p7 }
  0xe2   : > { %p3775_p12 = pnand %p3774_p11, %p3768_p9 }
  0xe4   : > { %3778 = shalt.err (!%p3775_p12)
}
  0xe5   : > { %3384 = dma.hbm_to_vmem [thread:$0]  (!%p4115_p6), %s6089_s6, 16, %s415_s0, [#allocation14]  }
  0xe6   : > { %s3996_s21 = smov [#allocation18]   ;;  %s3997_s25 = smov [#allocation21]  }
  0xe7   : > { %s438_s17 = sshll.u32 %s3996_s21, 4  ;;  %s460_s20 = sshll.u32 %s3997_s25, 4  ;;  %s439_s17 = int_to_ptr.vmem [resolvable:$true] %s438_s17  ;;  %s461_s20 = int_to_ptr.vmem [resolvable:$true] %s460_s20 }
  0xe8   : > { %s3779_s29 = scalar_lea.hbm %s6091_s8, 16 }
  0xe9   : > { %p3780_p1 = scmp.ne.s32.totalorder %s6091_s8, %s3779_s29  ;;  %p3786_p0 = scmp.lt.u32.totalorder %s3779_s29, %s6091_s8 }
  0xeb   : > { %p3782_p3 = pnand %p3780_p1, %p4131_p8 }
  0xed   : > { %p3783_p13 = pneg %p3782_p3 }
  0xef   : > { %p3788_p2 = pnand %p3786_p0, %p3783_p13 }
  0xf1   : > { %3791 = shalt.err (!%p3788_p2)
}
  0xf2   : > { %s3792_s0 = scalar_lea.vmem %s439_s17, 16  ;;  %s3799_s24 = scalar_lea.vmem %s439_s17, 32 }
  0xf3   : > { %p3793_p5 = scmp.ne.s32.totalorder %s439_s17, %s3792_s0  ;;  %p3800_p4 = scmp.lt.s32.totalorder %s439_s17, %s439_s17 }
  0xf4   : > { %p3801_p10 = scmp.lt.s32.totalorder %s3799_s24, %s3792_s0 }
  0xf5   : > { %p3795_p7 = pnand %p3793_p5, %p4131_p8 }
  0xf6   : > { %p3802_p11 = por %p3801_p10, %p3800_p4 }
  0xf7   : > { %p3796_p9 = pneg %p3795_p7 }
  0xf9   : > { %p3803_p12 = pnand %p3802_p11, %p3796_p9 }
  0xfb   : > { %3806 = shalt.err (!%p3803_p12)
}
  0xfc   : > { %3390 = dma.hbm_to_vmem [thread:$0]  (!%p4115_p6), %s6091_s8, 16, %s439_s17, [#allocation17]  }
  0xfd   : > { %s3807_s29 = scalar_lea.hbm %s6093_s10, 128 }
  0xfe   : > { %p3808_p1 = scmp.ne.s32.totalorder %s6093_s10, %s3807_s29  ;;  %p3814_p0 = scmp.lt.u32.totalorder %s3807_s29, %s6093_s10 }
 0x100   : > { %p3810_p3 = pnand %p3808_p1, %p4131_p8 }
 0x102   : > { %p3811_p13 = pneg %p3810_p3 }
 0x104   : > { %p3816_p2 = pnand %p3814_p0, %p3811_p13 }
 0x106   : > { %3819 = shalt.err (!%p3816_p2)
}
 0x107   : > { %s3820_s0 = scalar_lea.vmem %s461_s20, 128  ;;  %p3828_p4 = scmp.lt.s32.totalorder %s461_s20, %s461_s20 }
 0x108   : > { %p3821_p5 = scmp.ne.s32.totalorder %s461_s20, %s3820_s0  ;;  %p3829_p10 = scmp.lt.s32.totalorder %s3820_s0, %s3820_s0 }
 0x10a   : > { %p3823_p7 = pnand %p3821_p5, %p4131_p8  ;;  %p3830_p11 = por %p3829_p10, %p3828_p4 }
 0x10c   : > { %p3824_p9 = pneg %p3823_p7 }
 0x10e   : > { %p3831_p12 = pnand %p3830_p11, %p3824_p9 }
 0x110   : > { %3834 = shalt.err (!%p3831_p12)
}
 0x111   : > { %3396 = dma.hbm_to_vmem [thread:$0]  (!%p4115_p6), %s6093_s10, 128, %s461_s20, [#allocation20]  }
 0x112   : > { %s3998_s21 = smov [#allocation24]   ;;  %s3835_s29 = scalar_lea.hbm %s6095_s12, 16 }
 0x113   : > { %s482_s25 = sshll.u32 %s3998_s21, 4  ;;  %p3836_p1 = scmp.ne.s32.totalorder %s6095_s12, %s3835_s29  ;;  %s483_s25 = int_to_ptr.vmem [resolvable:$true] %s482_s25 }
 0x114   : > { %p3842_p0 = scmp.lt.u32.totalorder %s3835_s29, %s6095_s12 }
 0x115   : > { %p3838_p3 = pnand %p3836_p1, %p4131_p8 }
 0x117   : > { %p3839_p13 = pneg %p3838_p3 }
 0x119   : > { %p3844_p2 = pnand %p3842_p0, %p3839_p13 }
 0x11b   : > { %3847 = shalt.err (!%p3844_p2)
}
 0x11c   : > { %s3848_s20 = scalar_lea.vmem %s483_s25, 16  ;;  %s3855_s0 = scalar_lea.vmem %s483_s25, 32 }
 0x11d   : > { %p3849_p5 = scmp.ne.s32.totalorder %s483_s25, %s3848_s20  ;;  %p3856_p4 = scmp.lt.s32.totalorder %s483_s25, %s483_s25 }
 0x11e   : > { %p3857_p10 = scmp.lt.s32.totalorder %s3855_s0, %s3848_s20 }
 0x11f   : > { %p3851_p7 = pnand %p3849_p5, %p4131_p8 }
 0x120   : > { %p3858_p11 = por %p3857_p10, %p3856_p4 }
 0x121   : > { %p3852_p9 = pneg %p3851_p7 }
 0x123   : > { %p3859_p12 = pnand %p3858_p11, %p3852_p9 }
 0x125   : > { %3862 = shalt.err (!%p3859_p12)
}
 0x126   : > { %s6173_s16 = sld [smem:[#allocation34_spill]]  ;;  %s6174_s21 = sld [smem:[#allocation35_spill]] }
 0x127   : > { %3402 = dma.hbm_to_vmem [thread:$0]  (!%p4115_p6), %s6095_s12, 16, %s483_s25, [#allocation23]  }
 0x128   : > { %s3231_s23 = sadd.s32 4294967294, %s3983_s28   ;;  %s4370_s18 = sadd.s32 1, %s3983_s28  }
 0x129   : > { %s39_s22 = ssub.s32 %s3983_s28, %s4370_s18  ;;  %s42_s29 = sadd.s32 1, %s3979_s27 }
 0x12a   : > { %p40_p8 = scmp.eq.s32.totalorder %s39_s22, 0  ;;  %p49_p1 = scmp.ne.s32.totalorder %s3979_s27, %s3975_s26 }
 0x12b   : > { %p50_p3 = scmp.eq.s32.totalorder %s3983_s28, 0  ;;  %p337_p7 = scmp.eq.s32.totalorder %s3231_s23, 1 }
 0x12c   : > { %p55_p13 = scmp.ne.s32.totalorder %s3975_s26, %s6173_s16  ;;  %p6176_p2 = scmp.eq.s32.totalorder %s6174_s21, 0 }
 0x12d   : > { %s4381_s19 = scalar_select %p40_p8, %s3979_s27, %s42_s29  }
 0x12e   : > { %p4383_p0 = por %p50_p3, %p49_p1  ;;  %p4389_p6 = por %p6176_p2, %p55_p13 }
 0x12f   : > { %p331_p5 = scmp.eq.s32.totalorder %s6174_s21, 1  ;;  %p3423_p9 = scmp.lt.s32.totalorder %s3983_s28, 2 }
 0x130   : > { %s493_s13 = sand.u32 1, %s3979_s27   ;;  %p4400_p10 = por %p337_p7, %p55_p13 }
 0x131   : > { %p4396_p4 = por %p331_p5, %p49_p1  ;;  %s3246_s0 = sshll.u32 %s493_s13, 8 }
 0x132   : > { %s6179_s20 = scalar_select %p4400_p10, 1, 0 }
 0x133   : > { %s6178_s30 = scalar_select %p4396_p4, 1, 0 }
 0x134   : > { %s3287_s17 = sshll.u32 %s3983_s28, 12  ;;  %s6180_s22 = sld [smem:[#allocation61_spill]] }
 0x135   : > { %s497_s21 = scalar_lea.vmem [#allocation4], %s3246_s0  ;;  %p4414_p11 = pnand %p3423_p9, %p4383_p0 }
 0x136   : > { %s504_s23 = sshll.u32 %s497_s21, 4  ;;  %s4418_s2 = scalar_lea.sflag [#allocation5], %s493_s13  ;;  %s4410_s23 = int_to_ptr.vmem [resolvable:$true] %s504_s23 }
 0x137   : > { %p3865_p8 = pneg %p4414_p11 }
 0x13a   : > { %s4408_s29 = scalar_lea.hbm %s6180_s22, %s3287_s17  ;;  %s3868_s15 = scalar_lea.hbm %s6180_s22, 8192 }
 0x13b   : > { %s3863_s24 = scalar_lea.hbm %s4408_s29, 4096  ;;  %p3869_p13 = scmp.lt.u32.totalorder %s4408_s29, %s6180_s22 }
 0x13c   : > { %p3864_p12 = scmp.ne.s32.totalorder %s4408_s29, %s3863_s24  ;;  %p3870_p0 = scmp.lt.u32.totalorder %s3868_s15, %s3863_s24 }
 0x13d   : > { %p3872_p5 = scmp.lt.u32.totalorder %s3863_s24, %s4408_s29 }
 0x13e   : > { %p3866_p1 = pnand %p3865_p8, %p3864_p12  ;;  %p3871_p2 = por %p3870_p0, %p3869_p13 }
 0x140   : > { %p3867_p3 = pneg %p3866_p1  ;;  %p3873_p7 = por %p3872_p5, %p3871_p2 }
 0x142   : > { %p3874_p9 = pnand %p3873_p7, %p3867_p3 }
 0x144   : > { %3877 = shalt.err (!%p3874_p9)
}
 0x145   : > { %s3878_s13 = scalar_lea.vmem %s4410_s23, 4096  ;;  %s3999_s0 = smov [#allocation4]  }
 0x146   : > { %p3879_p12 = scmp.ne.s32.totalorder %s4410_s23, %s3878_s13  ;;  %s3883_s17 = sshll.u32 %s3999_s0, 4  ;;  %s3884_s17 = int_to_ptr.vmem [resolvable:$false] %s3883_s17 }
 0x147   : > { %s3885_s16 = scalar_lea.vmem %s3884_s17, 8192  ;;  %p3886_p4 = scmp.lt.s32.totalorder %s4410_s23, %s3884_s17 }
 0x148   : > { %p3881_p1 = pnand %p3879_p12, %p3865_p8  ;;  %p3887_p13 = scmp.lt.s32.totalorder %s3885_s16, %s3878_s13 }
 0x14a   : > { %p3882_p10 = pneg %p3881_p1  ;;  %p3888_p0 = por %p3887_p13, %p3886_p4 }
 0x14c   : > { %p3889_p2 = pnand %p3888_p0, %p3882_p10 }
 0x14e   : > { %3892 = shalt.err (!%p3889_p2)
}
 0x14f   : > { %s6182_s24 = smov 8   ;;  %s6183_s15 = sld [smem:[#allocation36_spill]] }
 0x150   : > { %3406 = dma.hbm_to_vmem [thread:$0]  (!%p4414_p11), %s4408_s29, 4096, %s4410_s23, %s4418_s2, %s6171_s14, %s6171_s14, %s6182_s24  }
 0x155   : > { %p6184_p8 = scmp.ne.s32.totalorder %s6183_s15, 0 }
 0x157   : > { %516 = sbr.rel (%p6184_p8) target bundleno = 1085 (0x43d), region = 72 }
 0x15e   : > { %s4452_s21 = sand.u32 1, %s3975_s26  }
 0x15f   : > { %s3250_s13 = sshll.u32 %s4452_s21, 8  ;;  %s519_s0 = scalar_lea.sflag [#allocation5], %s4452_s21 }
 0x160   : > { %s4456_s17 = scalar_lea.vmem [#allocation4], %s3250_s13 }
 0x161   : > { %3938 = dma.done.wait (%p4389_p6), %s519_s0, 4096  }
 0x162   : > { %3940 = vsyncadd (%p4389_p6), %s519_s0, 4294963200  ;;  %s6185_s1 = sld [smem:[#allocation35_spill]] }
 0x168   : > { %p6186_p4 = scmp.eq.s32.totalorder %s6185_s1, 0 }
 0x16a   : > { %3942 = dma.done.wait (%p6186_p4), [#allocation8], 528   ;;  %p6187_p10 = pmov %p6186_p4 }
 0x16b   : > { %p6188_p11 = pmov %p6186_p4 }
 0x16c   : > { %3944 = vsyncadd (%p6187_p10), [#allocation8], 4294966768 }
 0x16d   : > { %3946 = dma.done.wait (%p6188_p11), [#allocation11], 80   ;;  %p6189_p3 = pmov %p6186_p4 }
 0x16f   : > { %3948 = vsyncadd (%p6189_p3), [#allocation11], 4294967216  ;;  %p6190_p5 = pmov %p6189_p3 }
 0x170   : > { %p6191_p7 = pmov %p6189_p3 }
 0x171   : > { %3950 = dma.done.wait (%p6190_p5), [#allocation14], 32  }
 0x172   : > { %3952 = vsyncadd (%p6191_p7), [#allocation14], 4294967264  ;;  %p6192_p6 = pmov %p6189_p3 }
 0x173   : > { %p6193_p9 = pmov %p6189_p3 }
 0x174   : > { %3954 = dma.done.wait (%p6192_p6), [#allocation17], 272  }
 0x175   : > { %3956 = vsyncadd (%p6193_p9), [#allocation17], 4294967024  ;;  %p6194_p12 = pmov %p6189_p3 }
 0x176   : > { %p6195_p1 = pmov %p6189_p3 }
 0x177   : > { %3958 = dma.done.wait (%p6194_p12), [#allocation20], 144  }
 0x178   : > { %3960 = vsyncadd (%p6195_p1), [#allocation20], 4294967152  ;;  %p6196_p13 = pmov %p6195_p1 }
 0x179   : > { %p6197_p0 = pmov %p6195_p1 }
 0x17a   : > { %3962 = dma.done.wait (%p6196_p13), [#allocation23], 32  }
 0x17b   : > { %3964 = vsyncadd (%p6197_p0), [#allocation23], 4294967264  ;;  %vm645_vm0 = vcmask 31744   ;;  %v6109_v0 = vmov 0.0   ;;  %v6113_v1 = vmov 0   ;;  %v6111_v2 = vmov 2  }
 0x17c   : > { %646 = vst.msk [vmem:[#allocation2] sm:$0xff] %vm645_vm0, %v6109_v0  ;;  %647 = vst.msk [vmem:[#allocation2 + $0x8] sm:$0xff] %vm645_vm0, %v6109_v0  ;;  %3490 = vset.pattern.permute.xlu1 %v6113_v1  ;;  %3492 = vset.pattern.permute.xlu0 %v6111_v2  ;;  %vm648_vm1 = vcmask 27648   ;;  %vm661_vm2 = vcmask 25600   ;;  %v881_v3 = vlaneseq  ;;  %v613_v7 = vld [vmem:[%s4456_s17] sm:$0xff]  ;;  %v614_v8 = vld [vmem:[%s4456_s17 + $0x8] sm:$0xff] }
 0x17d   : > { %650 = vst.msk [vmem:[#allocation2 + $0x18] sm:$0xff] %vm645_vm0, %v6109_v0  ;;  %651 = vst.msk [vmem:[#allocation2 + $0x20] sm:$0xff] %vm645_vm0, %v6109_v0  ;;  %v615_v9 = vld [vmem:[%s4456_s17 + $0x10] sm:$0xff]  ;;  %v616_v13 = vld [vmem:[%s4456_s17 + $0x18] sm:$0xff]  ;;  %vm949_vm3 = vcmask 1046528   ;;  %vm1102_vm4 = vcmask 1045504  }
 0x17e   : > { %654 = vst.msk [vmem:[#allocation2 + $0x1b0] sm:$0xff] %vm645_vm0, %v6109_v0  ;;  %655 = vst.msk [vmem:[#allocation2 + $0x1b8] sm:$0xff] %vm645_vm0, %v6109_v0  ;;  %v882_v4 = vshrl.u32 %v881_v3, 7  ;;  %v617_v14 = vld [vmem:[%s4456_s17 + $0x20] sm:$0xff]  ;;  %v618_v15 = vld [vmem:[%s4456_s17 + $0x28] sm:$0xff]  ;;  %vm2500_vm5 = vcmask 64512  }
 0x17f   : > { %649 = vst.msk [vmem:[#allocation2 + $0x10] sm:$0xf] %vm648_vm1, %v6109_v0  ;;  %652 = vst.msk [vmem:[#allocation2 + $0x28] sm:$0xf] %vm648_vm1, %v6109_v0  ;;  %v619_v19 = vld [vmem:[%s4456_s17 + $0x30] sm:$0xff]  ;;  %v620_v20 = vld [vmem:[%s4456_s17 + $0x38] sm:$0xff] }
 0x180   : > { %662 = vst.msk [vmem:[#allocation2 + $0x30] sm:$0x3] %vm661_vm2, %v6109_v0  ;;  %663 = vst.msk [vmem:[#allocation2 + $0x48] sm:$0x3] %vm661_vm2, %v6109_v0  ;;  %v4567_v5 = vsub.s32 0, %v882_v4  ;;  %v4569_v6 = vsub.s32 1, %v882_v4 }
 0x181   : > { %664 = vst.msk [vmem:[#allocation2 + $0x60] sm:$0x3] %vm661_vm2, %v6109_v0  ;;  %665 = vst.msk [vmem:[#allocation2 + $0x78] sm:$0x3] %vm661_vm2, %v6109_v0  ;;  %v4574_v10 = vsub.s32 2, %v882_v4  ;;  %v4576_v11 = vsub.s32 3, %v882_v4 }
 0x182   : > { %678 = vst.msk [vmem:[#allocation2 + $0x42] sm:$0x3] %vm661_vm2, %v6109_v0  ;;  %679 = vst.msk [vmem:[#allocation2 + $0x5a] sm:$0x3] %vm661_vm2, %v6109_v0  ;;  %v4578_v12 = vsub.s32 4, %v882_v4  ;;  %v4586_v16 = vsub.s32 5, %v882_v4 }
 0x183   : > { %680 = vst.msk [vmem:[#allocation2 + $0x72] sm:$0x3] %vm661_vm2, %v6109_v0  ;;  %666 = vst.msk [vmem:[#allocation2 + $0x90] sm:$0x3] %vm661_vm2, %v6109_v0  ;;  %v4588_v17 = vsub.s32 6, %v882_v4  ;;  %v4590_v18 = vsub.s32 7, %v882_v4 }
 0x184   : > { %656 = vst.msk [vmem:[#allocation2 + $0x1c0] sm:$0xf] %vm648_vm1, %v6109_v0  ;;  %6198 = vst [vmem:[#allocation37_spill] sm:$0xff] %v4567_v5  ;;  %v726_v21 = vld [vmem:[#allocation2] ss:$2 sm:$0xff]  ;;  %vm2508_vm6 = vcmask 57344  }
 0x185   : > { %667 = vst.msk [vmem:[#allocation2 + $0xa8] sm:$0x3] %vm661_vm2, %v6109_v0  ;;  %668 = vst.msk [vmem:[#allocation2 + $0xc0] sm:$0x3] %vm661_vm2, %v6109_v0  ;;  %v766_v23 = vld [vmem:[#allocation2 + $0x1] ss:$2 sm:$0xff] }
 0x186   : > { %669 = vst.msk [vmem:[#allocation2 + $0xd8] sm:$0x3] %vm661_vm2, %v6109_v0  ;;  %670 = vst.msk [vmem:[#allocation2 + $0xf0] sm:$0x3] %vm661_vm2, %v6109_v0  ;;  %v877_v24 = vld [vmem:[#allocation7] sm:$0xff]  ;;  %v622_v44 = vld [vmem:[%s4456_s17 + $0x48] sm:$0xff] }
 0x187   : > { %671 = vst.msk [vmem:[#allocation2 + $0x108] sm:$0x3] %vm661_vm2, %v6109_v0  ;;  %672 = vst.msk [vmem:[#allocation2 + $0x120] sm:$0x3] %vm661_vm2, %v6109_v0  ;;  %v4600_v26 = vrot.slane %v877_v24, %v4567_v5  ;;  %v4603_v27 = vrot.slane %v877_v24, %v4569_v6  ;;  %v4606_v28 = vrot.slane %v877_v24, %v4574_v10  ;;  %v4611_v30 = vld [vmem:[#allocation2 + $0x18] ss:$2 sm:$0xff] }
 0x188   : > { %673 = vst.msk [vmem:[#allocation2 + $0x138] sm:$0x3] %vm661_vm2, %v6109_v0  ;;  %674 = vst.msk [vmem:[#allocation2 + $0x150] sm:$0x3] %vm661_vm2, %v6109_v0  ;;  %v4609_v29 = vrot.slane %v877_v24, %v4576_v11  ;;  %v4614_v31 = vrot.slane %v877_v24, %v4578_v12  ;;  %v4617_v32 = vrot.slane %v877_v24, %v4586_v16  ;;  %v4625_v35 = vld [vmem:[#allocation2 + $0x19] ss:$2 sm:$0xff] }
 0x189   : > { %675 = vst.msk [vmem:[#allocation2 + $0x168] sm:$0x3] %vm661_vm2, %v6109_v0  ;;  %676 = vst.msk [vmem:[#allocation2 + $0x180] sm:$0x3] %vm661_vm2, %v6109_v0  ;;  %v4620_v33 = vrot.slane %v877_v24, %v4588_v17  ;;  %v4623_v34 = vrot.slane %v877_v24, %v4590_v18  ;;  %v885_v36 = vmul.f32 %v4600_v26, %v726_v21  ;;  %v621_v40 = vld [vmem:[%s4456_s17 + $0x40] sm:$0xff]  ;;  %vm2502_vm7 = vcmask 58368  }
 0x18a   : > { %677 = vst.msk [vmem:[#allocation2 + $0x198] sm:$0x3] %vm661_vm2, %v6109_v0  ;;  %681 = vst.msk [vmem:[#allocation2 + $0x8a] sm:$0x3] %vm661_vm2, %v6109_v0  ;;  %v897_v37 = vmul.f32 %v4603_v27, %v766_v23  ;;  %v917_v38 = vmul.f32 %v4606_v28, %v726_v21  ;;  %v994_v41 = vmul.f32 %v4609_v29, %v766_v23  ;;  %s3263_s2 = sshll.u32 %s4452_s21, 6  ;;  %vm2986_vm8 = vcmask 15360  }
 0x18b   : > { %682 = vst.msk [vmem:[#allocation2 + $0xa2] sm:$0x3] %vm661_vm2, %v6109_v0  ;;  %683 = vst.msk [vmem:[#allocation2 + $0xba] sm:$0x3] %vm661_vm2, %v6109_v0  ;;  %v4635_v43 = vmul.f32 %v4614_v31, %v726_v21  ;;  %v4646_v49 = vmul.f32 %v4617_v32, %v4611_v30  ;;  %v4663_v55 = vmul.f32 %v4620_v33, %v4625_v35  ;;  %s612_s14 = scalar_lea.vmem [#allocation25], %s3263_s2  ;;  %s3288_s25 = sshll.u32 %s6185_s1, 10 }
 0x18c   : > { %684 = vst.msk [vmem:[#allocation2 + $0xd2] sm:$0x3] %vm661_vm2, %v6109_v0  ;;  %685 = vst.msk [vmem:[#allocation2 + $0xea] sm:$0x3] %vm661_vm2, %v6109_v0  ;;  %v905_v46 = vadd.f32 %v897_v37, %v885_v36  ;;  %v950_v47 = vrot.slane %v917_v38, 1  ;;  %v4677_v61 = vmul.f32 %v4623_v34, %v4611_v30  ;;  %s3009_s29 = sshll.u32 %s612_s14, 4  ;;  %s6037_s29 = int_to_ptr.vmem [resolvable:$true] %s3009_s29 }
 0x18d   : > { %686 = vst.msk [vmem:[#allocation2 + $0x102] sm:$0x3] %vm661_vm2, %v6109_v0  ;;  %687 = vst.msk [vmem:[#allocation2 + $0x11a] sm:$0x3] %vm661_vm2, %v6109_v0  ;;  %s6259_s24 = sld [smem:[#allocation64_spill]]  ;;  %s2996_s13 = scalar_lea.sflag [#allocation6], %s4452_s21 }
 0x18e   : > { %688 = vst.msk [vmem:[#allocation2 + $0x132] sm:$0x3] %vm661_vm2, %v6109_v0  ;;  %689 = vst.msk [vmem:[#allocation2 + $0x14a] sm:$0x3] %vm661_vm2, %v6109_v0  ;;  %s3893_s0 = scalar_lea.vmem %s6037_s29, 1024  ;;  %p6260_p8 = scmp.ne.s32.totalorder %s6178_s30, 0 }
 0x18f   : > { %690 = vst.msk [vmem:[#allocation2 + $0x162] sm:$0x3] %vm661_vm2, %v6109_v0  ;;  %691 = vst.msk [vmem:[#allocation2 + $0x17a] sm:$0x3] %vm661_vm2, %v6109_v0  ;;  %p3894_p2 = scmp.ne.s32.totalorder %s6037_s29, %s3893_s0 }
 0x190   : > { %692 = vst.msk [vmem:[#allocation2 + $0x192] sm:$0x3] %vm661_vm2, %v6109_v0  ;;  %693 = vst.msk [vmem:[#allocation2 + $0x1aa] sm:$0x3] %vm661_vm2, %v6109_v0 }
 0x191   : > { %6199 = vst [vmem:[#allocation38_spill] sm:$0xff] %v4569_v6  ;;  %6200 = vst [vmem:[#allocation39_spill] sm:$0xff] %v4574_v10  ;;  %v728_v22 = vld [vmem:[#allocation2 + $0x10] ss:$2 sm:$0x3]  ;;  %p3895_p4 = pnand %p3894_p2, %p6260_p8 }
 0x192   : > { %6201 = vst [vmem:[#allocation40_spill] sm:$0xff] %v4576_v11  ;;  %6202 = vst [vmem:[#allocation41_spill] sm:$0xff] %v4578_v12  ;;  %v768_v25 = vld [vmem:[#allocation2 + $0x11] ss:$2 sm:$0x3]  ;;  %v918_v39 = vmul.f32 %v4606_v28, %v728_v22  ;;  %v4642_v48 = vmul.f32 %v4614_v31, %v728_v22 }
 0x193   : > { %694 = vst.msk [vmem:[#allocation2 + $0x32] sm:$0xff] %vm645_vm0, %v613_v7  ;;  %695 = vst.msk [vmem:[#allocation2 + $0x3a] sm:$0xff] %vm645_vm0, %v614_v8  ;;  %v995_v42 = vmul.f32 %v4609_v29, %v768_v25  ;;  %v1026_v8 = vrot.slane %v994_v41, 1  ;;  %v4698_v23 = vld [vmem:[#allocation2 + $0x28] ss:$2 sm:$0x3]  ;;  %s6035_s15 = scalar_lea.hbm %s6259_s24, %s3288_s25  ;;  %p3896_p10 = pneg %p3895_p4 }
 0x194   : > { %696 = vst.msk [vmem:[#allocation2 + $0x4a] sm:$0xff] %vm645_vm0, %v615_v9  ;;  %6203 = vst [vmem:[#allocation42_spill] sm:$0xff] %v4586_v16  ;;  %v951_v53 = vrot.slane %v918_v39, 1  ;;  %v623_v39 = vld [vmem:[%s4456_s17 + $0x50] sm:$0xff] }
 0x195   : > { %6204 = vst [vmem:[#allocation43_spill] sm:$0xff] %v4588_v17  ;;  %6205 = vst [vmem:[#allocation44_spill] sm:$0xff] %v4590_v18  ;;  %v1027_v22 = vrot.slane %v995_v42, 1  ;;  %v624_v42 = vld [vmem:[%s4456_s17 + $0x58] sm:$0xff] }
 0x196   : > { %697 = vst.msk [vmem:[#allocation2 + $0x52] sm:$0xff] %vm645_vm0, %v616_v13  ;;  %698 = vst.msk [vmem:[#allocation2 + $0x62] sm:$0xff] %vm645_vm0, %v617_v14  ;;  %v952_v4 = vsel %vm949_vm3, %v950_v47, %v951_v53  ;;  %v625_v47 = vld [vmem:[%s4456_s17 + $0x60] sm:$0xff]  ;;  %v626_v53 = vld [vmem:[%s4456_s17 + $0x68] sm:$0xff] }
 0x197   : > { %699 = vst.msk [vmem:[#allocation2 + $0x6a] sm:$0xff] %vm645_vm0, %v618_v15  ;;  %700 = vst.msk [vmem:[#allocation2 + $0x7a] sm:$0xff] %vm645_vm0, %v619_v19  ;;  %v982_v14 = vadd.f32 %v952_v4, %v905_v46  ;;  %v1028_v41 = vsel %vm949_vm3, %v1026_v8, %v1027_v22  ;;  %v628_v8 = vld [vmem:[%s4456_s17 + $0x78] sm:$0xff] }
 0x198   : > { %701 = vst.msk [vmem:[#allocation2 + $0x82] sm:$0xff] %vm645_vm0, %v620_v20  ;;  %6206 = vst [vmem:[#allocation45_spill] sm:$0xff] %v4600_v26  ;;  %v632_v22 = vld [vmem:[%s4456_s17 + $0x98] sm:$0xff] }
 0x199   : > { %6207 = vst [vmem:[#allocation46_spill] sm:$0xff] %v4603_v27  ;;  %702 = vst.msk [vmem:[#allocation2 + $0x92] sm:$0xff] %vm645_vm0, %v621_v40 }
 0x19a   : > { %v4639_v45 = vld [vmem:[#allocation2 + $0x40] ss:$2 sm:$0x3]  ;;  %703 = vst.msk [vmem:[#allocation2 + $0x9a] sm:$0xff] %vm645_vm0, %v622_v44  ;;  %v4665_v56 = vld [vmem:[#allocation2 + $0x31] ss:$2 sm:$0xff] }
 0x19b   : > { %v4655_v52 = vmul.f32 %v4606_v28, %v4639_v45  ;;  %v4659_v54 = vmul.f32 %v4614_v31, %v4639_v45  ;;  %v4667_v57 = vld [vmem:[#allocation2 + $0x41] ss:$2 sm:$0x3]  ;;  %v4685_v3 = vmul.f32 %v4603_v27, %v4665_v56  ;;  %v996_v7 = vmul.f32 %v4609_v29, %v4665_v56  ;;  %704 = vst.msk [vmem:[#allocation2 + $0xaa] sm:$0xff] %vm645_vm0, %v623_v39 }
 0x19c   : > { %v997_v15 = vmul.f32 %v4609_v29, %v4667_v57  ;;  %705 = vst.msk [vmem:[#allocation2 + $0xb2] sm:$0xff] %vm645_vm0, %v624_v42  ;;  %706 = vst.msk [vmem:[#allocation2 + $0xc2] sm:$0xff] %vm645_vm0, %v625_v47  ;;  %v1188_v42 = vmul.f32 %v4623_v34, %v4698_v23 }
 0x19d   : > { %v1029_v36 = vrot.slane %v996_v7, 1  ;;  %v627_v7 = vld [vmem:[%s4456_s17 + $0x70] sm:$0xff]  ;;  %707 = vst.msk [vmem:[#allocation2 + $0xca] sm:$0xff] %vm645_vm0, %v626_v53  ;;  %709 = vst.msk [vmem:[#allocation2 + $0xe2] sm:$0xff] %vm645_vm0, %v628_v8  ;;  %v634_v8 = vld [vmem:[%s4456_s17 + $0xa8] sm:$0xff] }
 0x19e   : > { %v4649_v50 = vld [vmem:[#allocation2 + $0x60] ss:$2 sm:$0xff]  ;;  %v4651_v51 = vld [vmem:[#allocation2 + $0x70] ss:$2 sm:$0x3]  ;;  %v1030_v37 = vrot.slane %v997_v15, 1 }
 0x19f   : > { %v887_v58 = vmul.f32 %v4600_v26, %v4649_v50  ;;  %v921_v59 = vmul.f32 %v4606_v28, %v4649_v50  ;;  %v922_v60 = vmul.f32 %v4606_v28, %v4651_v51  ;;  %v4679_v62 = vld [vmem:[#allocation2 + $0x61] ss:$2 sm:$0xff]  ;;  %v4681_v63 = vld [vmem:[#allocation2 + $0x71] ss:$2 sm:$0x3]  ;;  %v1074_v38 = vmul.f32 %v4614_v31, %v4649_v50  ;;  %708 = vst.msk [vmem:[#allocation2 + $0xda] sm:$0xff] %vm645_vm0, %v627_v7 }
 0x1a0   : > { %v899_v9 = vmul.f32 %v4603_v27, %v4679_v62  ;;  %v998_v20 = vmul.f32 %v4609_v29, %v4679_v62  ;;  %v999_v21 = vmul.f32 %v4609_v29, %v4681_v63  ;;  %v814_v24 = vld [vmem:[#allocation2 + $0x78] ss:$2 sm:$0xff]  ;;  %v1075_v4 = vmul.f32 %v4614_v31, %v4651_v51  ;;  %713 = vst.msk [vmem:[#allocation2 + $0x112] sm:$0xff] %vm645_vm0, %v632_v22  ;;  %v4767_v22 = vld [vmem:[#allocation2 + $0x49] ss:$2 sm:$0xff] }
 0x1a1   : > { %v956_v13 = vrot.slane %v921_v59, 1  ;;  %v957_v19 = vrot.slane %v922_v60, 1  ;;  %v4710_v59 = vsel %vm949_vm3, %v1029_v36, %v1030_v37  ;;  %v1058_v60 = vadd.f32 %v1028_v41, %v982_v14  ;;  %v4732_v36 = vld [vmem:[#allocation7 + $0x8] sm:$0xff]  ;;  %v633_v7 = vld [vmem:[%s4456_s17 + $0xa0] sm:$0xff]  ;;  %715 = vst.msk [vmem:[#allocation2 + $0x12a] sm:$0xff] %vm645_vm0, %v634_v8 }
 0x1a2   : > { %v907_v25 = vadd.f32 %v899_v9, %v887_v58  ;;  %v1032_v44 = vrot.slane %v998_v20, 1  ;;  %v1033_v46 = vrot.slane %v999_v21, 1  ;;  %v629_v9 = vld [vmem:[%s4456_s17 + $0x80] sm:$0xff]  ;;  %v1104_v14 = vrot.slane %v4642_v48, 2  ;;  %v630_v20 = vld [vmem:[%s4456_s17 + $0x88] sm:$0xff]  ;;  %v631_v21 = vld [vmem:[%s4456_s17 + $0x90] sm:$0xff] }
 0x1a3   : > { %v958_v40 = vsel %vm949_vm3, %v956_v13, %v957_v19  ;;  %v1103_v19 = vrot.slane %v4635_v43, 2  ;;  %710 = vst.msk [vmem:[#allocation2 + $0xf2] sm:$0xff] %vm645_vm0, %v629_v9  ;;  %v1109_v43 = vrot.slane %v1074_v38, 2  ;;  %v1110_v48 = vrot.slane %v1075_v4, 2  ;;  %711 = vst.msk [vmem:[#allocation2 + $0xfa] sm:$0xff] %vm645_vm0, %v630_v20  ;;  %v635_v9 = vld [vmem:[%s4456_s17 + $0xb0] sm:$0xff] }
 0x1a4   : > { %v984_v58 = vadd.f32 %v958_v40, %v907_v25  ;;  %v1034_v15 = vsel %vm949_vm3, %v1032_v44, %v1033_v46  ;;  %v4730_v25 = vld [vmem:[#allocation2 + $0x48] ss:$2 sm:$0xff]  ;;  %712 = vst.msk [vmem:[#allocation2 + $0x10a] sm:$0xff] %vm645_vm0, %v631_v21  ;;  %v4738_v40 = vld [vmem:[#allocation2 + $0x58] ss:$2 sm:$0x3]  ;;  %v1149_v38 = vmul.f32 %v4617_v32, %v814_v24 }
 0x1a5   : > { %v844_v41 = vld [vmem:[#allocation2 + $0x29] ss:$2 sm:$0x3]  ;;  %v1105_v44 = vsel %vm1102_vm4, %v1103_v19, %v1104_v14  ;;  %v4743_v46 = vmul.f32 %v4617_v32, %v4730_v25  ;;  %v1111_v47 = vsel %vm1102_vm4, %v1109_v43, %v1110_v48  ;;  %v1190_v4 = vmul.f32 %v4623_v34, %v4738_v40  ;;  %714 = vst.msk [vmem:[#allocation2 + $0x122] sm:$0xff] %vm645_vm0, %v633_v7  ;;  %v637_v20 = vld [vmem:[%s4456_s17 + $0xc0] sm:$0xff] }
 0x1a6   : > { %v1060_v37 = vadd.f32 %v1034_v15, %v984_v58  ;;  %v1135_v53 = vadd.f32 %v1105_v44, %v1058_v60  ;;  %v1189_v58 = vmul.f32 %v4623_v34, %v4730_v25  ;;  %v1219_v24 = vrot.slane %v4677_v61, 1  ;;  %v636_v60 = vld [vmem:[%s4456_s17 + $0xb8] sm:$0xff]  ;;  %716 = vst.msk [vmem:[#allocation2 + $0x13a] sm:$0xff] %vm645_vm0, %v635_v9  ;;  %v638_v21 = vld [vmem:[%s4456_s17 + $0xc8] sm:$0xff]  ;;  %v639_v44 = vld [vmem:[%s4456_s17 + $0xd0] sm:$0xff] }
 0x1a7   : > { %v1220_v19 = vrot.slane %v1188_v42, 1  ;;  %v4759_v14 = vrot.slane %v4732_v36, %v4567_v5  ;;  %v1223_v43 = vrot.slane %v1190_v4, 1  ;;  %v4772_v48 = vrot.slane %v4732_v36, %v4569_v6  ;;  %717 = vst.msk [vmem:[#allocation2 + $0x142] sm:$0xff] %vm645_vm0, %v636_v60  ;;  %v640_v42 = vld [vmem:[%s4456_s17 + $0xd8] sm:$0xff]  ;;  %718 = vst.msk [vmem:[#allocation2 + $0x152] sm:$0xff] %vm645_vm0, %v637_v20 }
 0x1a8   : > { %v1137_v15 = vadd.f32 %v1111_v47, %v1060_v37  ;;  %v1155_v37 = vadd.f32 %v4646_v49, %v1135_v53  ;;  %v1222_v61 = vrot.slane %v1189_v58, 1  ;;  %719 = vst.msk [vmem:[#allocation2 + $0x15a] sm:$0xff] %vm645_vm0, %v638_v21  ;;  %v4779_v47 = vld [vmem:[#allocation2 + $0x59] ss:$2 sm:$0x3]  ;;  %v4783_v7 = vmul.f32 %v4620_v33, %v4767_v22  ;;  %720 = vst.msk [vmem:[#allocation2 + $0x16a] sm:$0xff] %vm645_vm0, %v639_v44 }
 0x1a9   : > { %v1221_v49 = vsel %vm949_vm3, %v1219_v24, %v1220_v19  ;;  %v1263_v53 = vmul.f32 %v4759_v14, %v4625_v35  ;;  %v1264_v58 = vmul.f32 %v4759_v14, %v844_v41  ;;  %721 = vst.msk [vmem:[#allocation2 + $0x172] sm:$0xff] %vm645_vm0, %v640_v42  ;;  %v1265_v9 = vmul.f32 %v4759_v14, %v4767_v22 }
 0x1aa   : > { %v1175_v4 = vadd.f32 %v4663_v55, %v1155_v37  ;;  %v4793_v8 = vsel %vm949_vm3, %v1222_v61, %v1223_v43  ;;  %v1266_v24 = vmul.f32 %v4759_v14, %v4779_v47  ;;  %v1339_v35 = vmul.f32 %v4772_v48, %v4611_v30  ;;  %v4805_v61 = vld [vmem:[#allocation2 + $0x30] ss:$2 sm:$0xff] }
 0x1ab   : > { %v1295_v19 = vrot.slane %v1263_v53, 1  ;;  %v1296_v60 = vrot.slane %v1264_v58, 1  ;;  %v1340_v41 = vmul.f32 %v4772_v48, %v4698_v23  ;;  %v1298_v21 = vrot.slane %v1265_v9, 1 }
 0x1ac   : > { %v1251_v20 = vadd.f32 %v1221_v49, %v1175_v4  ;;  %v1299_v55 = vrot.slane %v1266_v24, 1  ;;  %v1341_v37 = vmul.f32 %v4772_v48, %v4730_v25  ;;  %v1342_v44 = vmul.f32 %v4772_v48, %v4738_v40 }
 0x1ad   : > { %v1297_v43 = vsel %vm949_vm3, %v1295_v19, %v1296_v60  ;;  %v1371_v42 = vrot.slane %v1339_v35, 2  ;;  %v1372_v53 = vrot.slane %v1340_v41, 2  ;;  %v4815_v49 = vrot.slane %v4732_v36, %v4574_v10 }
 0x1ae   : > { %v4811_v30 = vsel %vm949_vm3, %v1298_v21, %v1299_v55  ;;  %v1327_v58 = vadd.f32 %v1297_v43, %v1251_v20  ;;  %v1374_v23 = vrot.slane %v1341_v37, 2  ;;  %v1375_v9 = vrot.slane %v1342_v44, 2 }
 0x1af   : > { %v1373_v4 = vsel %vm1102_vm4, %v1371_v42, %v1372_v53  ;;  %v4820_v24 = vrot.slane %v4732_v36, %v4576_v11  ;;  %v4824_v19 = vrot.slane %v4732_v36, %v4578_v12  ;;  %v4826_v60 = vadd.f32 %v1149_v38, %v1137_v15 }
 0x1b0   : > { %v1403_v35 = vadd.f32 %v1373_v4, %v1327_v58  ;;  %v1415_v41 = vmul.f32 %v4815_v49, %v4805_v61  ;;  %v4832_v20 = vrot.slane %v4732_v36, %v4586_v16  ;;  %v4835_v21 = vsel %vm1102_vm4, %v1374_v23, %v1375_v9  ;;  %v879_v9 = vld [vmem:[#allocation7 + $0x10] sm:$0xff] }
 0x1b1   : > { %6208 = vst [vmem:[#allocation47_spill] sm:$0xff] %v4826_v60  ;;  %v4839_v55 = vmul.f32 %v4815_v49, %v4649_v50  ;;  %v1435_v37 = vmul.f32 %v4820_v24, %v4665_v56  ;;  %v1455_v38 = vmul.f32 %v4824_v19, %v4805_v61  ;;  %v1456_v43 = vmul.f32 %v4824_v19, %v4639_v45 }
 0x1b2   : > { %v1423_v15 = vadd.f32 %v1415_v41, %v1403_v35  ;;  %v1457_v44 = vmul.f32 %v4824_v19, %v4649_v50  ;;  %v1458_v42 = vmul.f32 %v4824_v19, %v4651_v51  ;;  %v1531_v58 = vmul.f32 %v4832_v20, %v4665_v56 }
 0x1b3   : > { %v1487_v53 = vrot.slane %v1455_v38, 1  ;;  %v1532_v23 = vmul.f32 %v4832_v20, %v4667_v57  ;;  %v1533_v4 = vmul.f32 %v4832_v20, %v4679_v62  ;;  %v1488_v41 = vrot.slane %v1456_v43, 1 }
 0x1b4   : > { %v1443_v35 = vadd.f32 %v1435_v37, %v1423_v15  ;;  %v1490_v0 = vrot.slane %v1457_v44, 1  ;;  %v1491_v2 = vrot.slane %v1458_v42, 1  ;;  %v1534_v1 = vmul.f32 %v4832_v20, %v4681_v63 }
 0x1b5   : > { %v1563_v39 = vrot.slane %v1531_v58, 1  ;;  %v1564_v13 = vrot.slane %v1532_v23, 1  ;;  %v1566_v38 = vrot.slane %v1533_v4, 1  ;;  %v4861_v56 = vmul.f32 %v4820_v24, %v4679_v62 }
 0x1b6   : > { %v1489_v57 = vsel %vm949_vm3, %v1487_v53, %v1488_v41  ;;  %v4866_v60 = vrot.slane %v4732_v36, %v4588_v17  ;;  %v4870_v37 = vrot.slane %v4732_v36, %v4590_v18  ;;  %v1567_v44 = vrot.slane %v1534_v1, 1 }
 0x1b7   : > { %v1519_v15 = vadd.f32 %v1489_v57, %v1443_v35  ;;  %v1565_v43 = vsel %vm949_vm3, %v1563_v39, %v1564_v13  ;;  %v4874_v42 = vrot.slane %v879_v9, %v4567_v5  ;;  %v4877_v58 = vsel %vm949_vm3, %v1490_v0, %v1491_v2 }
 0x1b8   : > { %v1607_v53 = vmul.f32 %v4866_v60, %v4805_v61  ;;  %v1608_v23 = vmul.f32 %v4866_v60, %v4639_v45  ;;  %v4885_v36 = vmul.f32 %v4866_v60, %v4651_v51  ;;  %v4888_v4 = vsel %vm949_vm3, %v1566_v38, %v1567_v44 }
 0x1b9   : > { %6209 = vst [vmem:[#allocation48_spill] sm:$0xff] %v4874_v42  ;;  %v1595_v1 = vadd.f32 %v1565_v43, %v1519_v15  ;;  %v1683_v13 = vmul.f32 %v4870_v37, %v4730_v25  ;;  %v4893_v0 = vrot.slane %v879_v9, %v4569_v6  ;;  %v1703_v35 = vmul.f32 %v4874_v42, %v4767_v22 }
 0x1ba   : > { %6210 = vst [vmem:[#allocation49_spill] sm:$0xff] %v4885_v36  ;;  %v1639_v2 = vrot.slane %v1607_v53, 2  ;;  %v1640_v39 = vrot.slane %v1608_v23, 2  ;;  %v4898_v45 = vrot.slane %v879_v9, %v4574_v10  ;;  %v4905_v57 = vrot.slane %v879_v9, %v4576_v11 }
 0x1bb   : > { %6211 = vst [vmem:[#allocation50_spill] sm:$0xff] %v4893_v0  ;;  %v1723_v41 = vmul.f32 %v4893_v0, %v4730_v25  ;;  %v1724_v38 = vmul.f32 %v4893_v0, %v4738_v40  ;;  %v4908_v15 = vrot.slane %v879_v9, %v4578_v12  ;;  %v4916_v23 = vrot.slane %v879_v9, %v4586_v16  ;;  %v4920_v0 = vld [vmem:[#allocation7 + $0x18] ss:$0 sm:$0xff] }
 0x1bc   : > { %6212 = vst [vmem:[#allocation51_spill] sm:$0xff] %v4905_v57  ;;  %v1641_v43 = vsel %vm1102_vm4, %v1639_v2, %v1640_v39  ;;  %v1799_v44 = vmul.f32 %v4898_v45, %v4767_v22  ;;  %v1800_v53 = vmul.f32 %v4898_v45, %v4779_v47  ;;  %v1875_v11 = vmul.f32 %v4905_v57, %v4730_v25 }
 0x1bd   : > { %6213 = vst [vmem:[#allocation52_spill] sm:$0xff] %v4908_v15  ;;  %6214 = vst [vmem:[#allocation53_spill] sm:$0xff] %v4916_v23  ;;  %v1671_v6 = vadd.f32 %v1641_v43, %v1595_v1  ;;  %v1755_v10 = vrot.slane %v1723_v41, 1  ;;  %v1756_v5 = vrot.slane %v1724_v38, 1  ;;  %v1876_v2 = vmul.f32 %v4905_v57, %v4738_v40 }
 0x1be   : > { %6215 = vst [vmem:[#allocation54_spill] sm:$0xff] %v4920_v0  ;;  %v1831_v12 = vrot.slane %v1799_v44, 1  ;;  %v1832_v42 = vrot.slane %v1800_v53, 1  ;;  %v1951_v22 = vmul.f32 %v4908_v15, %v4649_v50  ;;  %v1907_v16 = vrot.slane %v1875_v11, 2 }
 0x1bf   : > { %v1691_v47 = vadd.f32 %v1683_v13, %v1671_v6  ;;  %v1757_v39 = vsel %vm949_vm3, %v1755_v10, %v1756_v5  ;;  %v1971_v1 = vmul.f32 %v4916_v23, %v4679_v62  ;;  %v1908_v25 = vrot.slane %v1876_v2, 2  ;;  %v780_v15 = vld [vmem:[#allocation2 + $0xa1] ss:$2 sm:$0x3] }
 0x1c0   : > { %v1833_v41 = vsel %vm949_vm3, %v1831_v12, %v1832_v42  ;;  %v4931_v38 = vrot.slane %v879_v9, %v4588_v17  ;;  %v4934_v43 = vrot.slane %v879_v9, %v4590_v18  ;;  %v2143_v44 = vmul.f32 %v4920_v0, %v4649_v50  ;;  %v4949_v42 = vld [vmem:[#allocation2 + $0x90] ss:$2 sm:$0xff] }
 0x1c1   : > { %v1711_v40 = vadd.f32 %v1703_v35, %v1691_v47  ;;  %v2144_v5 = vmul.f32 %v4920_v0, %v4651_v51  ;;  %v886_v6 = vmul.f32 %v4600_v26, %v4805_v61  ;;  %v1909_v10 = vsel %vm1102_vm4, %v1907_v16, %v1908_v25  ;;  %v4953_v47 = vld [vmem:[#allocation2 + $0xc0] ss:$2 sm:$0xff]  ;;  %v778_v16 = vld [vmem:[#allocation2 + $0x91] ss:$2 sm:$0xff] }
 0x1c2   : > { %6216 = vst [vmem:[#allocation55_spill] sm:$0xff] %v4931_v38  ;;  %6217 = vst [vmem:[#allocation56_spill] sm:$0xff] %v4934_v43  ;;  %v1991_v11 = vmul.f32 %v4931_v38, %v4649_v50  ;;  %v1992_v12 = vmul.f32 %v4931_v38, %v4651_v51  ;;  %v2067_v9 = vmul.f32 %v4934_v43, %v4679_v62  ;;  %v2175_v53 = vrot.slane %v2143_v44, 2  ;;  %v4956_v51 = vld [vmem:[#allocation2 + $0xf0] ss:$2 sm:$0xff] }
 0x1c3   : > { %v1787_v13 = vadd.f32 %v1757_v39, %v1711_v40  ;;  %v2068_v35 = vmul.f32 %v4934_v43, %v4681_v63  ;;  %v2176_v2 = vrot.slane %v2144_v5, 2  ;;  %v906_v17 = vadd.f32 %v4685_v3, %v886_v6  ;;  %v4961_v63 = vld [vmem:[#allocation2 + $0xc1] ss:$2 sm:$0xff]  ;;  %v4963_v40 = vld [vmem:[#allocation2 + $0xf1] ss:$2 sm:$0xff] }
 0x1c4   : > { %v2023_v25 = vrot.slane %v1991_v11, 1  ;;  %v2024_v18 = vrot.slane %v1992_v12, 1  ;;  %v2099_v50 = vrot.slane %v2067_v9, 1  ;;  %v919_v39 = vmul.f32 %v4606_v28, %v4805_v61  ;;  %v4968_v11 = vld [vmem:[#allocation2 + $0xa0] ss:$2 sm:$0x3] }
 0x1c5   : > { %v1863_v0 = vadd.f32 %v1833_v41, %v1787_v13  ;;  %v2100_v62 = vrot.slane %v2068_v35, 1  ;;  %v2177_v38 = vsel %vm1102_vm4, %v2175_v53, %v2176_v2  ;;  %v1072_v5 = vmul.f32 %v4614_v31, %v4805_v61 }
 0x1c6   : > { %v2025_v44 = vsel %vm949_vm3, %v2023_v25, %v2024_v18  ;;  %v888_v3 = vmul.f32 %v4600_v26, %v4949_v42  ;;  %v889_v41 = vmul.f32 %v4600_v26, %v4953_v47  ;;  %v953_v9 = vrot.slane %v919_v39, 1  ;;  %v4977_v18 = vld [vmem:[#allocation2 + $0xd0] ss:$2 sm:$0x3] }
 0x1c7   : > { %v1939_v6 = vadd.f32 %v1909_v10, %v1863_v0  ;;  %v2101_v12 = vsel %vm949_vm3, %v2099_v50, %v2100_v62  ;;  %v890_v13 = vmul.f32 %v4600_v26, %v4956_v51  ;;  %v1106_v35 = vrot.slane %v1072_v5, 2  ;;  %v4987_v50 = vld [vmem:[#allocation2 + $0x100] ss:$2 sm:$0x3] }
 0x1c8   : > { %v900_v61 = vmul.f32 %v4603_v27, %v778_v16  ;;  %v901_v53 = vmul.f32 %v4603_v27, %v4961_v63  ;;  %v902_v2 = vmul.f32 %v4603_v27, %v4963_v40  ;;  %v6218_v0 = vrot.slane %v4655_v52, 1 }
 0x1c9   : > { %v1959_v25 = vadd.f32 %v1951_v22, %v1939_v6  ;;  %v923_v62 = vmul.f32 %v4606_v28, %v4949_v42  ;;  %v924_v39 = vmul.f32 %v4606_v28, %v4968_v11  ;;  %v6219_v26 = vrot.slane %v4659_v54, 2 }
 0x1ca   : > { %v955_v10 = vsel %vm949_vm3, %v953_v9, %v6218_v0  ;;  %v908_v23 = vadd.f32 %v900_v61, %v888_v3  ;;  %v909_v27 = vadd.f32 %v901_v53, %v889_v41  ;;  %v910_v6 = vadd.f32 %v902_v2, %v890_v13  ;;  %v5005_v61 = vld [vmem:[#allocation2 + $0xd1] ss:$2 sm:$0x3] }
 0x1cb   : > { %v983_v5 = vadd.f32 %v955_v10, %v906_v17  ;;  %v1108_v43 = vsel %vm1102_vm4, %v1106_v35, %v6219_v26  ;;  %v1979_v22 = vadd.f32 %v1971_v1, %v1959_v25  ;;  %v925_v52 = vmul.f32 %v4606_v28, %v4953_v47  ;;  %v5008_v10 = vld [vmem:[#allocation2 + $0x101] ss:$2 sm:$0x3] }
 0x1cc   : > { %v926_v9 = vmul.f32 %v4606_v28, %v4977_v18  ;;  %v927_v17 = vmul.f32 %v4606_v28, %v4956_v51  ;;  %v928_v54 = vmul.f32 %v4606_v28, %v4987_v50  ;;  %v959_v26 = vrot.slane %v923_v62, 1 }
 0x1cd   : > { %v1059_v0 = vadd.f32 %v4710_v59, %v983_v5  ;;  %v2055_v3 = vadd.f32 %v2025_v44, %v1979_v22  ;;  %v960_v41 = vrot.slane %v924_v39, 1  ;;  %v962_v1 = vrot.slane %v925_v52, 1  ;;  %v5013_v44 = vld [vmem:[#allocation9] ss:$0 sm:$0xff] }
 0x1ce   : > { %v963_v13 = vrot.slane %v926_v9, 1  ;;  %v965_v53 = vrot.slane %v927_v17, 1  ;;  %v966_v2 = vrot.slane %v928_v54, 1  ;;  %v1000_v25 = vmul.f32 %v4609_v29, %v778_v16  ;;  %v5021_v17 = vld [vmem:[#allocation10] ss:$0 sm:$0xff] }
 0x1cf   : > { %v1136_v35 = vadd.f32 %v1108_v43, %v1059_v0  ;;  %v2131_v59 = vadd.f32 %v2101_v12, %v2055_v3  ;;  %v961_v5 = vsel %vm949_vm3, %v959_v26, %v960_v41  ;;  %v1001_v62 = vmul.f32 %v4609_v29, %v780_v15 }
 0x1d0   : > { %v964_v57 = vsel %vm949_vm3, %v962_v1, %v963_v13  ;;  %v967_v43 = vsel %vm949_vm3, %v965_v53, %v966_v2  ;;  %v985_v22 = vadd.f32 %v961_v5, %v908_v23  ;;  %v1002_v16 = vmul.f32 %v4609_v29, %v4961_v63 }
 0x1d1   : > { %v1156_v39 = vadd.f32 %v4743_v46, %v1136_v35  ;;  %v986_v52 = vadd.f32 %v964_v57, %v909_v27  ;;  %v2207_v9 = vadd.f32 %v2177_v38, %v2131_v59  ;;  %v987_v0 = vadd.f32 %v967_v43, %v910_v6 }
 0x1d2   : > { %v1003_v12 = vmul.f32 %v4609_v29, %v5005_v61  ;;  %v1004_v54 = vmul.f32 %v4609_v29, %v4963_v40  ;;  %v1005_v46 = vmul.f32 %v4609_v29, %v5008_v10  ;;  %v1035_v23 = vrot.slane %v1000_v25, 1  ;;  %v5040_v25 = vld [vmem:[#allocation2 + $0xa8] ss:$2 sm:$0xff] }
 0x1d3   : > { %v1176_v15 = vadd.f32 %v4783_v7, %v1156_v39  ;;  %v2222_v27 = vmul.f32 %v5013_v44, %v2207_v9  ;;  %v1036_v57 = vrot.slane %v1001_v62, 1  ;;  %v1038_v38 = vrot.slane %v1002_v16, 1  ;;  %v5052_v9 = vld [vmem:[#allocation2 + $0x108] ss:$2 sm:$0xff] }
 0x1d4   : > { %v1039_v6 = vrot.slane %v1003_v12, 1  ;;  %v1041_v3 = vrot.slane %v1004_v54, 1  ;;  %v1042_v41 = vrot.slane %v1005_v46, 1  ;;  %v1076_v1 = vmul.f32 %v4614_v31, %v4949_v42  ;;  %v5058_v12 = vld [vmem:[#allocation2 + $0xa9] ss:$2 sm:$0xff] }
 0x1d5   : > { %v1252_v26 = vadd.f32 %v4793_v8, %v1176_v15  ;;  %v5033_v7 = vadd.f32 %v5021_v17, %v2222_v27  ;;  %v1037_v13 = vsel %vm949_vm3, %v1035_v23, %v1036_v57  ;;  %v1077_v53 = vmul.f32 %v4614_v31, %v4968_v11  ;;  %v5042_v8 = vld [vmem:[#allocation2 + $0xd8] ss:$2 sm:$0xff]  ;;  %6220 = vst [vmem:[#allocation57_spill] sm:$0xff] %v5058_v12  ;;  %v5065_v23 = vld [vmem:[#allocation2 + $0xd9] ss:$2 sm:$0xff] }
 0x1d6   : > { %v1040_v35 = vsel %vm949_vm3, %v1038_v38, %v1039_v6  ;;  %v1043_v59 = vsel %vm949_vm3, %v1041_v3, %v1042_v41  ;;  %v1061_v5 = vadd.f32 %v1037_v13, %v985_v22  ;;  %v1078_v39 = vmul.f32 %v4614_v31, %v4953_v47  ;;  %v5071_v41 = vld [vmem:[#allocation2 + $0xb8] ss:$2 sm:$0x3] }
 0x1d7   : > { %v1328_v2 = vadd.f32 %v4811_v30, %v1252_v26  ;;  %v1062_v42 = vadd.f32 %v1040_v35, %v986_v52  ;;  %2248 = vperm.xlu1 %3490, %v5033_v7   ;;  %2351 = vperm.xlu0 %3492, %v5033_v7   ;;  %v1063_v62 = vadd.f32 %v1043_v59, %v987_v0  ;;  %v1112_v30 = vrot.slane %v1076_v1, 2 }
 0x1d8   : > { %v1079_v11 = vmul.f32 %v4614_v31, %v4977_v18  ;;  %v1080_v22 = vmul.f32 %v4614_v31, %v4956_v51  ;;  %v1081_v52 = vmul.f32 %v4614_v31, %v4987_v50  ;;  %v1113_v16 = vrot.slane %v1077_v53, 2  ;;  %6222 = vst [vmem:[#allocation58_spill] sm:$0xff] %v5071_v41  ;;  %v5078_v53 = vld [vmem:[#allocation2 + $0xe8] ss:$2 sm:$0x3] }
 0x1d9   : > { %v1404_v43 = vadd.f32 %v4835_v21, %v1328_v2  ;;  %v1115_v0 = vrot.slane %v1078_v39, 2  ;;  %v1150_v54 = vmul.f32 %v4617_v32, %v5040_v25  ;;  %v1151_v46 = vmul.f32 %v4617_v32, %v5042_v8 }
 0x1da   : > { %v1116_v15 = vrot.slane %v1079_v11, 2  ;;  %v1114_v27 = vsel %vm1102_vm4, %v1112_v30, %v1113_v16  ;;  %v1118_v57 = vrot.slane %v1080_v22, 2  ;;  %v1119_v38 = vrot.slane %v1081_v52, 2  ;;  %v5088_v22 = vld [vmem:[#allocation2 + $0xb9] ss:$2 sm:$0x3] }
 0x1db   : > { %v1424_v21 = vadd.f32 %v4839_v55, %v1404_v43  ;;  %v6149_v26 = vmov 1   ;;  %v6221_v3 = vmov 0   ;;  %v1138_v13 = vadd.f32 %v1114_v27, %v1061_v5  ;;  %6223 = vst [vmem:[#allocation59_spill] sm:$0xff] %v5088_v22  ;;  %v5094_v16 = vld [vmem:[#allocation2 + $0xe9] ss:$2 sm:$0x3] }
 0x1dc   : > { %3491 = vset.pattern.permute.xlu1 %v6149_v26  ;;  %3494 = vset.pattern.permute.xlu0 %v6221_v3  ;;  %v1117_v1 = vsel %vm1102_vm4, %v1115_v0, %v1116_v15  ;;  %v1152_v55 = vmul.f32 %v4617_v32, %v5052_v9  ;;  %v1120_v2 = vsel %vm1102_vm4, %v1118_v57, %v1119_v38  ;;  %v6147_v38 = vmov 3  }
 0x1dd   : > { %v1444_v35 = vadd.f32 %v4861_v56, %v1424_v21  ;;  %2299 = vperm.xlu1 %3491, %v5033_v7   ;;  %v1139_v59 = vadd.f32 %v1117_v1, %v1062_v42  ;;  %v1170_v39 = vmul.f32 %v4620_v33, %v5058_v12  ;;  %v1140_v11 = vadd.f32 %v1120_v2, %v1063_v62  ;;  %v641_v1 = vld [vmem:[%s4456_s17 + $0xe0] sm:$0xff] }
 0x1de   : > { %v1158_v30 = vadd.f32 %v1150_v54, %v1138_v13  ;;  %v1171_v5 = vmul.f32 %v4620_v33, %v5065_v23  ;;  %v1193_v43 = vmul.f32 %v4623_v34, %v5040_v25  ;;  %v1194_v42 = vmul.f32 %v4623_v34, %v5071_v41  ;;  %v642_v13 = vld [vmem:[%s4456_s17 + $0xe8] sm:$0xff]  ;;  %722 = vst.msk [vmem:[#allocation2 + $0x182] sm:$0xff] %vm645_vm0, %v641_v1 }
 0x1df   : > { %v1520_v56 = vadd.f32 %v4877_v58, %v1444_v35  ;;  %v1159_v52 = vadd.f32 %v1151_v46, %v1139_v59  ;;  %v1195_v62 = vmul.f32 %v4623_v34, %v5042_v8  ;;  %v5096_v0 = vadd.f32 %v1152_v55, %v1140_v11  ;;  %723 = vst.msk [vmem:[#allocation2 + $0x18a] sm:$0xff] %vm645_vm0, %v642_v13 }
 0x1e0   : > { %v1178_v15 = vadd.f32 %v1170_v39, %v1158_v30  ;;  %v1196_v54 = vmul.f32 %v4623_v34, %v5078_v53  ;;  %v1228_v58 = vrot.slane %v1193_v43, 1  ;;  %v1229_v46 = vrot.slane %v1194_v42, 1 }
 0x1e1   : > { %v5101_v21 = vadd.f32 %v4888_v4, %v1520_v56  ;;  %v1179_v27 = vadd.f32 %v1171_v5, %v1159_v52  ;;  %v1231_v57 = vrot.slane %v1195_v62, 1  ;;  %3493 = vset.pattern.permute.xlu1 %v6147_v38  ;;  %v1269_v55 = vmul.f32 %v4759_v14, %v5058_v12  ;;  %v5236_v12 = vld [vmem:[#allocation2 + $0x118] ss:$2 sm:$0x3] }
 0x1e2   : > { %v1232_v35 = vrot.slane %v1196_v54, 1  ;;  %v1270_v2 = vmul.f32 %v4759_v14, %v5088_v22  ;;  %v1271_v59 = vmul.f32 %v4759_v14, %v5065_v23  ;;  %2403 = vperm.xlu1 %3493, %v5033_v7   ;;  %v1230_v4 = vsel %vm949_vm3, %v1228_v58, %v1229_v46 }
 0x1e3   : > { %6224 = vst [vmem:[#allocation60_spill] sm:$0xff] %v5101_v21  ;;  %v1272_v39 = vmul.f32 %v4759_v14, %v5094_v16  ;;  %v1345_v11 = vmul.f32 %v4772_v48, %v5040_v25  ;;  %v1346_v30 = vmul.f32 %v4772_v48, %v5071_v41  ;;  %v1254_v43 = vadd.f32 %v1230_v4, %v1178_v15 }
 0x1e4   : > { %v1233_v5 = vsel %vm949_vm3, %v1231_v57, %v1232_v35  ;;  %v1304_v56 = vrot.slane %v1269_v55, 1  ;;  %v1305_v7 = vrot.slane %v1270_v2, 1  ;;  %v1307_v42 = vrot.slane %v1271_v59, 1 }
 0x1e5   : > { %v1255_v52 = vadd.f32 %v1233_v5, %v1179_v27  ;;  %v1308_v62 = vrot.slane %v1272_v39, 1  ;;  %v1347_v54 = vmul.f32 %v4772_v48, %v5042_v8  ;;  %v1348_v46 = vmul.f32 %v4772_v48, %v5078_v53 }
 0x1e6   : > { %v1306_v58 = vsel %vm949_vm3, %v1304_v56, %v1305_v7  ;;  %v1380_v25 = vrot.slane %v1345_v11, 2  ;;  %v1381_v1 = vrot.slane %v1346_v30, 2  ;;  %3496 = vset.pattern.permute.xlu1 %v6221_v3  ;;  %v1418_v27 = vmul.f32 %v4815_v49, %v4953_v47 }
 0x1e7   : > { %v1309_v57 = vsel %vm949_vm3, %v1307_v42, %v1308_v62  ;;  %v1330_v15 = vadd.f32 %v1306_v58, %v1254_v43  ;;  %v1383_v13 = vrot.slane %v1347_v54, 2  ;;  %v1384_v2 = vrot.slane %v1348_v46, 2 }
 0x1e8   : > { %v1331_v35 = vadd.f32 %v1309_v57, %v1255_v52  ;;  %v1382_v55 = vsel %vm1102_vm4, %v1380_v25, %v1381_v1  ;;  %v1419_v59 = vmul.f32 %v4815_v49, %v4956_v51  ;;  %v1438_v39 = vmul.f32 %v4820_v24, %v4961_v63 }
 0x1e9   : > { %v1406_v4 = vadd.f32 %v1382_v55, %v1330_v15  ;;  %v1439_v11 = vmul.f32 %v4820_v24, %v4963_v40  ;;  %v1461_v30 = vmul.f32 %v4824_v19, %v4953_v47  ;;  %v1385_v5 = vsel %vm1102_vm4, %v1383_v13, %v1384_v2 }
 0x1ea   : > { %v1462_v43 = vmul.f32 %v4824_v19, %v4977_v18  ;;  %v1463_v56 = vmul.f32 %v4824_v19, %v4956_v51  ;;  %v1464_v7 = vmul.f32 %v4824_v19, %v4987_v50  ;;  %v1407_v52 = vadd.f32 %v1385_v5, %v1331_v35 }
 0x1eb   : > { %v1426_v42 = vadd.f32 %v1418_v27, %v1406_v4  ;;  %v1496_v62 = vrot.slane %v1461_v30, 1  ;;  %v1537_v54 = vmul.f32 %v4832_v20, %v4961_v63  ;;  %v1538_v1 = vmul.f32 %v4832_v20, %v5005_v61 }
 0x1ec   : > { %v1497_v58 = vrot.slane %v1462_v43, 1  ;;  %v1499_v46 = vrot.slane %v1463_v56, 1  ;;  %v1500_v25 = vrot.slane %v1464_v7, 1  ;;  %v1427_v57 = vadd.f32 %v1419_v59, %v1407_v52 }
 0x1ed   : > { %v1446_v15 = vadd.f32 %v1438_v39, %v1426_v42  ;;  %v1539_v13 = vmul.f32 %v4832_v20, %v4963_v40  ;;  %v1540_v55 = vmul.f32 %v4832_v20, %v5008_v10  ;;  %v1572_v2 = vrot.slane %v1537_v54, 1 }
 0x1ee   : > { %v1498_v27 = vsel %vm949_vm3, %v1496_v62, %v1497_v58  ;;  %v1501_v35 = vsel %vm949_vm3, %v1499_v46, %v1500_v25  ;;  %v1573_v63 = vrot.slane %v1538_v1, 1  ;;  %v1447_v4 = vadd.f32 %v1439_v11, %v1427_v57 }
 0x1ef   : > { %v1522_v30 = vadd.f32 %v1498_v27, %v1446_v15  ;;  %v1575_v5 = vrot.slane %v1539_v13, 1  ;;  %v1576_v43 = vrot.slane %v1540_v55, 1  ;;  %v1613_v59 = vmul.f32 %v4866_v60, %v4953_v47  ;;  %v6225_v47 = vld [vmem:[#allocation48_spill] sm:$0xff]  ;;  %v6227_v27 = vld [vmem:[#allocation51_spill] sm:$0xff] }
 0x1f0   : > { %v1574_v61 = vsel %vm949_vm3, %v1572_v2, %v1573_v63  ;;  %v1614_v39 = vmul.f32 %v4866_v60, %v4977_v18  ;;  %v5165_v56 = vmul.f32 %v4866_v60, %v4987_v50  ;;  %v1523_v7 = vadd.f32 %v1501_v35, %v1447_v4  ;;  %v6226_v18 = vld [vmem:[#allocation50_spill] sm:$0xff] }
 0x1f1   : > { %v1577_v52 = vsel %vm949_vm3, %v1575_v5, %v1576_v43  ;;  %v1598_v42 = vadd.f32 %v1574_v61, %v1522_v30  ;;  %v1686_v11 = vmul.f32 %v4870_v37, %v5042_v8  ;;  %v1648_v62 = vrot.slane %v1613_v59, 2 }
 0x1f2   : > { %v1649_v54 = vrot.slane %v1614_v39, 2  ;;  %v1706_v46 = vmul.f32 %v6225_v47, %v5065_v23  ;;  %v5173_v25 = vadd.f32 %v1577_v52, %v1523_v7  ;;  %v1729_v1 = vmul.f32 %v6226_v18, %v5042_v8  ;;  %v643_v7 = vld [vmem:[%s4456_s17 + $0xf0] sm:$0xff]  ;;  %v644_v52 = vld [vmem:[%s4456_s17 + $0xf8] sm:$0xff]  ;;  %s4005_s17 = smov [#allocation25]  }
 0x1f3   : > { %v1730_v57 = vmul.f32 %v6226_v18, %v5078_v53  ;;  %v1805_v15 = vmul.f32 %v4898_v45, %v5065_v23  ;;  %v1806_v55 = vmul.f32 %v4898_v45, %v5094_v16  ;;  %v1881_v35 = vmul.f32 %v6227_v27, %v5042_v8  ;;  %v6228_v23 = vld [vmem:[#allocation52_spill] sm:$0xff]  ;;  %v6229_v8 = vld [vmem:[#allocation53_spill] sm:$0xff]  ;;  %724 = vst.msk [vmem:[#allocation2 + $0x19a] sm:$0xff] %vm645_vm0, %v643_v7  ;;  %s3897_s1 = sshll.u32 %s4005_s17, 4  ;;  %s3898_s1 = int_to_ptr.vmem [resolvable:$false] %s3897_s1 }
 0x1f4   : > { %v1650_v13 = vsel %vm1102_vm4, %v1648_v62, %v1649_v54  ;;  %v1882_v2 = vmul.f32 %v6227_v27, %v5078_v53  ;;  %v1764_v4 = vrot.slane %v1729_v1, 1  ;;  %v1954_v39 = vmul.f32 %v6228_v23, %v4956_v51  ;;  %v6230_v53 = vld [vmem:[#allocation55_spill] sm:$0xff]  ;;  %725 = vst.msk [vmem:[#allocation2 + $0x1a2] sm:$0xff] %vm645_vm0, %v644_v52  ;;  %s3899_s2 = scalar_lea.vmem %s3898_s1, 2048  ;;  %p3900_p11 = scmp.lt.s32.totalorder %s6037_s29, %s3898_s1 }
 0x1f5   : > { %v1674_v63 = vadd.f32 %v1650_v13, %v1598_v42  ;;  %v1765_v30 = vrot.slane %v1730_v57, 1  ;;  %v1840_v5 = vrot.slane %v1805_v15, 1  ;;  %v1841_v43 = vrot.slane %v1806_v55, 1  ;;  %p3901_p3 = scmp.lt.s32.totalorder %s3899_s2, %s3893_s0 }
 0x1f6   : > { %v1916_v61 = vrot.slane %v1881_v35, 2  ;;  %v1917_v59 = vrot.slane %v1882_v2, 2  ;;  %v1974_v54 = vmul.f32 %v6229_v8, %v4963_v40  ;;  %v1997_v42 = vmul.f32 %v6230_v53, %v4956_v51 }
 0x1f7   : > { %v1694_v62 = vadd.f32 %v1686_v11, %v1674_v63  ;;  %v1766_v16 = vsel %vm949_vm3, %v1764_v4, %v1765_v30  ;;  %v1842_v1 = vsel %vm949_vm3, %v1840_v5, %v1841_v43  ;;  %v1998_v15 = vmul.f32 %v6230_v53, %v4987_v50  ;;  %v6231_v11 = vld [vmem:[#allocation56_spill] sm:$0xff]  ;;  %v6232_v63 = vld [vmem:[#allocation54_spill] sm:$0xff]  ;;  %p3902_p5 = por %p3901_p3, %p3900_p11 }
 0x1f8   : > { %v1918_v57 = vsel %vm1102_vm4, %v1916_v61, %v1917_v59  ;;  %v2073_v13 = vmul.f32 %v6231_v11, %v4963_v40  ;;  %v2032_v35 = vrot.slane %v1997_v42, 1  ;;  %v2074_v2 = vmul.f32 %v6231_v11, %v5008_v10  ;;  %v5209_v30 = vld [vmem:[#allocation2 + $0x120] ss:$2 sm:$0xff]  ;;  %v5213_v61 = vld [vmem:[#allocation2 + $0x121] ss:$2 sm:$0xff]  ;;  %v6234_v10 = vld [vmem:[#allocation46_spill] sm:$0xff] }
 0x1f9   : > { %v1714_v55 = vadd.f32 %v1706_v46, %v1694_v62  ;;  %v2149_v4 = vmul.f32 %v6232_v63, %v4956_v51  ;;  %v2033_v7 = vrot.slane %v1998_v15, 1  ;;  %v2150_v43 = vmul.f32 %v6232_v63, %v4987_v50  ;;  %v6233_v59 = vld [vmem:[#allocation45_spill] sm:$0xff]  ;;  %p3903_p7 = pnand %p3902_p5, %p3896_p10 }
 0x1fa   : > { %v2108_v5 = vrot.slane %v2073_v13, 1  ;;  %v891_v40 = vmul.f32 %v6233_v59, %v5209_v30  ;;  %v2109_v52 = vrot.slane %v2074_v2, 1  ;;  %v5217_v42 = vld [vmem:[#allocation2 + $0x130] ss:$2 sm:$0x3]  ;;  %v903_v38 = vmul.f32 %v6234_v10, %v5213_v61 }
 0x1fb   : > { %v1790_v46 = vadd.f32 %v1766_v16, %v1714_v55  ;;  %v2184_v62 = vrot.slane %v2149_v4, 2  ;;  %v2034_v6 = vsel %vm949_vm3, %v2032_v35, %v2033_v7  ;;  %v2185_v15 = vrot.slane %v2150_v43, 2  ;;  %v5227_v16 = vld [vmem:[#allocation2 + $0x131] ss:$2 sm:$0x3] }
 0x1fc   : > { %v929_v13 = vmul.f32 %v4606_v28, %v5209_v30  ;;  %v930_v50 = vmul.f32 %v4606_v28, %v5217_v42  ;;  %v2110_v58 = vsel %vm949_vm3, %v2108_v5, %v2109_v52  ;;  %v5229_v55 = vld [vmem:[#allocation2 + $0x109] ss:$2 sm:$0xff]  ;;  %v911_v2 = vadd.f32 %v903_v38, %v891_v40 }
 0x1fd   : > { %v1866_v26 = vadd.f32 %v1842_v1, %v1790_v46  ;;  %v1006_v4 = vmul.f32 %v4609_v29, %v5213_v61  ;;  %v2186_v35 = vsel %vm1102_vm4, %v2184_v62, %v2185_v15  ;;  %v1007_v22 = vmul.f32 %v4609_v29, %v5227_v16  ;;  %v5238_v1 = vld [vmem:[#allocation2 + $0x138] ss:$2 sm:$0xff]  ;;  %v864_v15 = vld [vmem:[#allocation2 + $0x119] ss:$2 sm:$0x3] }
 0x1fe   : > { %v968_v7 = vrot.slane %v929_v13, 1  ;;  %v969_v43 = vrot.slane %v930_v50, 1  ;;  %6235 = vst [vmem:[#allocation48_spill] sm:$0xff] %v5238_v1  ;;  %v1082_v46 = vmul.f32 %v4614_v31, %v5209_v30  ;;  %v1083_v38 = vmul.f32 %v4614_v31, %v5217_v42 }
 0x1ff   : > { %v1942_v41 = vadd.f32 %v1918_v57, %v1866_v26  ;;  %v1044_v5 = vrot.slane %v1006_v4, 1  ;;  %v1045_v52 = vrot.slane %v1007_v22, 1  ;;  %v1153_v62 = vmul.f32 %v4617_v32, %v5238_v1 }
 0x200   : > { %v970_v40 = vsel %vm949_vm3, %v968_v7, %v969_v43  ;;  %v1172_v26 = vmul.f32 %v4620_v33, %v5229_v55  ;;  %v1121_v50 = vrot.slane %v1082_v46, 2  ;;  %v1122_v4 = vrot.slane %v1083_v38, 2 }
 0x201   : > { %v1962_v57 = vadd.f32 %v1954_v39, %v1942_v41  ;;  %v988_v13 = vadd.f32 %v970_v40, %v911_v2  ;;  %v1046_v21 = vsel %vm949_vm3, %v1044_v5, %v1045_v52  ;;  %v1197_v3 = vmul.f32 %v4623_v34, %v5052_v9 }
 0x202   : > { %v1180_v36 = vadd.f32 %v1172_v26, %v5096_v0  ;;  %v1198_v22 = vmul.f32 %v4623_v34, %v5236_v12  ;;  %v1123_v1 = vsel %vm1102_vm4, %v1121_v50, %v1122_v4  ;;  %v1273_v41 = vmul.f32 %v4759_v14, %v5229_v55 }
 0x203   : > { %v1982_v7 = vadd.f32 %v1974_v54, %v1962_v57  ;;  %v1064_v43 = vadd.f32 %v1046_v21, %v988_v13  ;;  %v1234_v39 = vrot.slane %v1197_v3, 1  ;;  %v1274_v46 = vmul.f32 %v4759_v14, %v864_v15 }
 0x204   : > { %v1235_v2 = vrot.slane %v1198_v22, 1  ;;  %v1349_v0 = vmul.f32 %v4772_v48, %v5052_v9  ;;  %v1310_v40 = vrot.slane %v1273_v41, 1  ;;  %v1350_v52 = vmul.f32 %v4772_v48, %v5236_v12 }
 0x205   : > { %v2058_v5 = vadd.f32 %v2034_v6, %v1982_v7  ;;  %v1141_v38 = vadd.f32 %v1123_v1, %v1064_v43  ;;  %v1311_v54 = vrot.slane %v1274_v46, 1  ;;  %v1420_v57 = vmul.f32 %v4815_v49, %v5209_v30 }
 0x206   : > { %v1236_v21 = vsel %vm949_vm3, %v1234_v39, %v1235_v2  ;;  %v1386_v26 = vrot.slane %v1349_v0, 2  ;;  %v1387_v4 = vrot.slane %v1350_v52, 2  ;;  %v1440_v6 = vmul.f32 %v4820_v24, %v5213_v61 }
 0x207   : > { %v2134_v3 = vadd.f32 %v2110_v58, %v2058_v5  ;;  %v5266_v13 = vadd.f32 %v1153_v62, %v1141_v38  ;;  %v1256_v50 = vadd.f32 %v1236_v21, %v1180_v36  ;;  %v1312_v22 = vsel %vm949_vm3, %v1310_v40, %v1311_v54 }
 0x208   : > { %v1465_v1 = vmul.f32 %v4824_v19, %v5209_v30  ;;  %v1466_v7 = vmul.f32 %v4824_v19, %v5217_v42  ;;  %v1388_v39 = vsel %vm1102_vm4, %v1386_v26, %v1387_v4  ;;  %v1541_v58 = vmul.f32 %v4832_v20, %v5213_v61 }
 0x209   : > { %v2210_v43 = vadd.f32 %v2186_v35, %v2134_v3  ;;  %v1332_v41 = vadd.f32 %v1312_v22, %v1256_v50  ;;  %v1542_v2 = vmul.f32 %v4832_v20, %v5227_v16  ;;  %v1615_v46 = vmul.f32 %v4866_v60, %v4956_v51 }
 0x20a   : > { %v1502_v36 = vrot.slane %v1465_v1, 1  ;;  %v1503_v62 = vrot.slane %v1466_v7, 1  ;;  %v1578_v38 = vrot.slane %v1541_v58, 1  ;;  %v5285_v35 = vmul.f32 %v4866_v60, %v5217_v42 }
 0x20b   : > { %v2225_v0 = vmul.f32 %v5013_v44, %v2210_v43  ;;  %v1408_v5 = vadd.f32 %v1388_v39, %v1332_v41  ;;  %v1579_v52 = vrot.slane %v1542_v2, 1  ;;  %v1651_v21 = vrot.slane %v1615_v46, 2 }
 0x20c   : > { %v1504_v40 = vsel %vm949_vm3, %v1502_v36, %v1503_v62  ;;  %v1687_v54 = vmul.f32 %v4870_v37, %v5052_v9  ;;  %v1655_v51 = vrot.slane %v5285_v35, 2  ;;  %v1707_v50 = vmul.f32 %v6225_v47, %v5229_v55 }
 0x20d   : > { %v5291_v26 = vadd.f32 %v5021_v17, %v2225_v0  ;;  %v1428_v3 = vadd.f32 %v1420_v57, %v1408_v5  ;;  %v1580_v4 = vsel %vm949_vm3, %v1578_v38, %v1579_v52  ;;  %v6236_v22 = vrot.slane %v5165_v56, 2 }
 0x20e   : > { %v1731_v7 = vmul.f32 %v6226_v18, %v5052_v9  ;;  %v1732_v43 = vmul.f32 %v6226_v18, %v5236_v12  ;;  %v1807_v39 = vmul.f32 %v4898_v45, %v5229_v55  ;;  %v1808_v58 = vmul.f32 %v4898_v45, %v864_v15 }
 0x20f   : > { %v1653_v1 = vsel %vm1102_vm4, %v1651_v21, %v6236_v22  ;;  %2263 = vperm.xlu0 %3494, %v5291_v26   ;;  %v1448_v57 = vadd.f32 %v1440_v6, %v1428_v3  ;;  %v1883_v62 = vmul.f32 %v6227_v27, %v5052_v9  ;;  %v1884_v2 = vmul.f32 %v6227_v27, %v5236_v12 }
 0x210   : > { %v1675_v41 = vadd.f32 %v1653_v1, %v5173_v25  ;;  %v1767_v36 = vrot.slane %v1731_v7, 1  ;;  %v1768_v56 = vrot.slane %v1732_v43, 1  ;;  %v1843_v5 = vrot.slane %v1807_v39, 1 }
 0x211   : > { %v1524_v46 = vadd.f32 %v1504_v40, %v1448_v57  ;;  %v1844_v38 = vrot.slane %v1808_v58, 1  ;;  %v1919_v25 = vrot.slane %v1883_v62, 2  ;;  %v1920_v52 = vrot.slane %v1884_v2, 2  ;;  %v5336_v57 = vld [vmem:[#allocation2 + $0x150] ss:$2 sm:$0xff] }
 0x212   : > { %v1695_v0 = vadd.f32 %v1687_v54, %v1675_v41  ;;  %v1769_v6 = vsel %vm949_vm3, %v1767_v36, %v1768_v56  ;;  %v1955_v55 = vmul.f32 %v6228_v23, %v5209_v30  ;;  %v6237_v15 = vmov 1   ;;  %v5338_v36 = vld [vmem:[#allocation2 + $0x160] ss:$2 sm:$0x3] }
 0x213   : > { %3495 = vset.pattern.permute.xlu0 %v6237_v15  ;;  %v5317_v21 = vadd.f32 %v1580_v4, %v1524_v46  ;;  %v1845_v9 = vsel %vm949_vm3, %v1843_v5, %v1844_v38  ;;  %v1975_v12 = vmul.f32 %v6229_v8, %v5213_v61  ;;  %v1921_v40 = vsel %vm1102_vm4, %v1919_v25, %v1920_v52  ;;  %v5342_v46 = vld [vmem:[#allocation2 + $0x151] ss:$2 sm:$0xff]  ;;  %v5353_v25 = vld [vmem:[#allocation2 + $0x161] ss:$2 sm:$0x3] }
 0x214   : > { %v1715_v3 = vadd.f32 %v1707_v50, %v1695_v0  ;;  %2311 = vperm.xlu0 %3495, %v5291_v26   ;;  %v1999_v54 = vmul.f32 %v6230_v53, %v5209_v30  ;;  %v2000_v22 = vmul.f32 %v6230_v53, %v5217_v42  ;;  %v2075_v4 = vmul.f32 %v6231_v11, %v5213_v61 }
 0x215   : > { %v2076_v50 = vmul.f32 %v6231_v11, %v5227_v16  ;;  %v2151_v7 = vmul.f32 %v6232_v63, %v5209_v30  ;;  %v2152_v43 = vmul.f32 %v6232_v63, %v5217_v42  ;;  %v892_v61 = vmul.f32 %v6233_v59, %v5336_v57 }
 0x216   : > { %v1791_v1 = vadd.f32 %v1769_v6, %v1715_v3  ;;  %v2035_v41 = vrot.slane %v1999_v54, 1  ;;  %v2036_v39 = vrot.slane %v2000_v22, 1  ;;  %v2111_v58 = vrot.slane %v2075_v4, 1  ;;  %v5359_v4 = vld [vmem:[#allocation2 + $0x168] ss:$2 sm:$0xff] }
 0x217   : > { %v2112_v62 = vrot.slane %v2076_v50, 1  ;;  %v2187_v2 = vrot.slane %v2151_v7, 2  ;;  %v2188_v16 = vrot.slane %v2152_v43, 2  ;;  %v904_v63 = vmul.f32 %v6234_v10, %v5342_v46 }
 0x218   : > { %v1867_v56 = vadd.f32 %v1845_v9, %v1791_v1  ;;  %v2037_v0 = vsel %vm949_vm3, %v2035_v41, %v2036_v39  ;;  %v931_v42 = vmul.f32 %v4606_v28, %v5336_v57  ;;  %v932_v5 = vmul.f32 %v4606_v28, %v5338_v36  ;;  %v5361_v28 = vld [vmem:[#allocation2 + $0x139] ss:$2 sm:$0xff]  ;;  %v5372_v39 = vld [vmem:[#allocation2 + $0x148] ss:$2 sm:$0x3] }
 0x219   : > { %v2113_v59 = vsel %vm949_vm3, %v2111_v58, %v2112_v62  ;;  %v2189_v6 = vsel %vm1102_vm4, %v2187_v2, %v2188_v16  ;;  %v1008_v52 = vmul.f32 %v4609_v29, %v5342_v46  ;;  %v912_v3 = vadd.f32 %v904_v63, %v892_v61 }
 0x21a   : > { %v1943_v38 = vadd.f32 %v1921_v40, %v1867_v56  ;;  %v971_v9 = vrot.slane %v931_v42, 1  ;;  %v972_v54 = vrot.slane %v932_v5, 1  ;;  %v1009_v10 = vmul.f32 %v4609_v29, %v5353_v25  ;;  %v868_v42 = vld [vmem:[#allocation2 + $0x149] ss:$2 sm:$0x3] }
 0x21b   : > { %v1047_v40 = vrot.slane %v1008_v52, 1  ;;  %v1084_v1 = vmul.f32 %v4614_v31, %v5336_v57  ;;  %v1085_v50 = vmul.f32 %v4614_v31, %v5338_v36  ;;  %v1154_v41 = vmul.f32 %v4617_v32, %v5359_v4  ;;  %v6238_v31 = vld [vmem:[#allocation48_spill] sm:$0xff] }
 0x21c   : > { %v1963_v22 = vadd.f32 %v1955_v55, %v1943_v38  ;;  %v973_v7 = vsel %vm949_vm3, %v971_v9, %v972_v54  ;;  %v1048_v43 = vrot.slane %v1009_v10, 1  ;;  %v1173_v29 = vmul.f32 %v4620_v33, %v5361_v28 }
 0x21d   : > { %v989_v58 = vadd.f32 %v973_v7, %v912_v3  ;;  %v1124_v61 = vrot.slane %v1084_v1, 2  ;;  %v1125_v56 = vrot.slane %v1085_v50, 2  ;;  %v1199_v16 = vmul.f32 %v4623_v34, %v6238_v31 }
 0x21e   : > { %v1983_v55 = vadd.f32 %v1975_v12, %v1963_v22  ;;  %v1049_v62 = vsel %vm949_vm3, %v1047_v40, %v1048_v43  ;;  %v1181_v2 = vadd.f32 %v1173_v29, %v5266_v13  ;;  %v1200_v63 = vmul.f32 %v4623_v34, %v5372_v39 }
 0x21f   : > { %v1065_v5 = vadd.f32 %v1049_v62, %v989_v58  ;;  %v1126_v12 = vsel %vm1102_vm4, %v1124_v61, %v1125_v56  ;;  %v1275_v38 = vmul.f32 %v4759_v14, %v5361_v28  ;;  %v1237_v52 = vrot.slane %v1199_v16, 1 }
 0x220   : > { %v2059_v32 = vadd.f32 %v2037_v0, %v1983_v55  ;;  %v1238_v3 = vrot.slane %v1200_v63, 1  ;;  %v1276_v9 = vmul.f32 %v4759_v14, %v868_v42  ;;  %v1351_v13 = vmul.f32 %v4772_v48, %v6238_v31 }
 0x221   : > { %v1142_v10 = vadd.f32 %v1126_v12, %v1065_v5  ;;  %v1313_v22 = vrot.slane %v1275_v38, 1  ;;  %v1352_v0 = vmul.f32 %v4772_v48, %v5372_v39  ;;  %v1421_v7 = vmul.f32 %v4815_v49, %v5336_v57 }
 0x222   : > { %v2135_v54 = vadd.f32 %v2113_v59, %v2059_v32  ;;  %v1239_v40 = vsel %vm949_vm3, %v1237_v52, %v1238_v3  ;;  %v1314_v1 = vrot.slane %v1276_v9, 1  ;;  %v1389_v50 = vrot.slane %v1351_v13, 2 }
 0x223   : > { %v5391_v29 = vadd.f32 %v1154_v41, %v1142_v10  ;;  %v1257_v55 = vadd.f32 %v1239_v40, %v1181_v2  ;;  %v1390_v58 = vrot.slane %v1352_v0, 2  ;;  %v1441_v59 = vmul.f32 %v4820_v24, %v5342_v46  ;;  %v6242_v0 = vld [vmem:[#allocation49_spill] sm:$0xff] }
 0x224   : > { %v2211_v43 = vadd.f32 %v2189_v6, %v2135_v54  ;;  %v1315_v61 = vsel %vm949_vm3, %v1313_v22, %v1314_v1  ;;  %v1467_v56 = vmul.f32 %v4824_v19, %v5336_v57  ;;  %v1468_v62 = vmul.f32 %v4824_v19, %v5338_v36 }
 0x225   : > { %v1333_v63 = vadd.f32 %v1315_v61, %v1257_v55  ;;  %v1391_v6 = vsel %vm1102_vm4, %v1389_v50, %v1390_v58  ;;  %v1543_v41 = vmul.f32 %v4832_v20, %v5342_v46  ;;  %v1544_v5 = vmul.f32 %v4832_v20, %v5353_v25 }
 0x226   : > { %v2226_v16 = vmul.f32 %v5013_v44, %v2211_v43  ;;  %v1505_v2 = vrot.slane %v1467_v56, 1  ;;  %v1506_v32 = vrot.slane %v1468_v62, 1  ;;  %v1617_v12 = vmul.f32 %v4866_v60, %v5209_v30 }
 0x227   : > { %v1409_v52 = vadd.f32 %v1391_v6, %v1333_v63  ;;  %v1581_v3 = vrot.slane %v1543_v41, 1  ;;  %v5413_v9 = vmul.f32 %v4866_v60, %v5338_v36  ;;  %v1582_v54 = vrot.slane %v1544_v5, 1 }
 0x228   : > { %v5409_v38 = vadd.f32 %v5021_v17, %v2226_v16  ;;  %v1507_v13 = vsel %vm949_vm3, %v1505_v2, %v1506_v32  ;;  %v1654_v10 = vrot.slane %v1617_v12, 2  ;;  %v1688_v22 = vmul.f32 %v4870_v37, %v6238_v31 }
 0x229   : > { %v1429_v30 = vadd.f32 %v1421_v7, %v1409_v52  ;;  %v1708_v40 = vmul.f32 %v6225_v47, %v5361_v28  ;;  %v1733_v1 = vmul.f32 %v6226_v18, %v6238_v31  ;;  %v1583_v50 = vsel %vm949_vm3, %v1581_v3, %v1582_v54 }
 0x22a   : > { %2315 = vperm.xlu0 %3495, %v5409_v38   ;;  %2268 = vperm.xlu1 %3496, %v5409_v38   ;;  %v1656_v43 = vsel %vm1102_vm4, %v1654_v10, %v1655_v51  ;;  %v1734_v55 = vmul.f32 %v6226_v18, %v5372_v39  ;;  %v1809_v7 = vmul.f32 %v4898_v45, %v5361_v28  ;;  %v6239_v51 = vmov 0  }
 0x22b   : > { %v1449_v58 = vadd.f32 %v1441_v59, %v1429_v30  ;;  %v1676_v61 = vadd.f32 %v1656_v43, %v5317_v21  ;;  %v1770_v56 = vrot.slane %v1733_v1, 1  ;;  %v1810_v62 = vmul.f32 %v4898_v45, %v868_v42 }
 0x22c   : > { %v1771_v16 = vrot.slane %v1734_v55, 1  ;;  %v1846_v63 = vrot.slane %v1809_v7, 1  ;;  %v1885_v6 = vmul.f32 %v6227_v27, %v6238_v31  ;;  %v1886_v35 = vmul.f32 %v6227_v27, %v5372_v39  ;;  %v816_v7 = vld [vmem:[#allocation2 + $0x88] ss:$2 sm:$0x3] }
 0x22d   : > { %v6240_v41 = vmov 2   ;;  %v1525_v2 = vadd.f32 %v1507_v13, %v1449_v58  ;;  %v1696_v28 = vadd.f32 %v1688_v22, %v1676_v61  ;;  %v1847_v59 = vrot.slane %v1810_v62, 1  ;;  %v850_v13 = vld [vmem:[#allocation2 + $0x79] ss:$2 sm:$0xff] }
 0x22e   : > { %3499 = vset.pattern.permute.xlu0 %v6239_v51  ;;  %3497 = vset.pattern.permute.xlu1 %v6240_v41  ;;  %v1956_v21 = vmul.f32 %v6228_v23, %v5336_v57  ;;  %v1772_v42 = vsel %vm949_vm3, %v1770_v56, %v1771_v16  ;;  %v1922_v32 = vrot.slane %v1885_v6, 2  ;;  %v1923_v5 = vrot.slane %v1886_v35, 2  ;;  %v3514_v6 = vld [vmem:[#allocation2 + $0x78] ss:$2 sm:$0xff] }
 0x22f   : > { %v1976_v31 = vmul.f32 %v6229_v8, %v5342_v46  ;;  %2363 = vperm.xlu1 %3497, %v5291_v26   ;;  %v5447_v39 = vadd.f32 %v1583_v50, %v1525_v2  ;;  %v1716_v12 = vadd.f32 %v1708_v40, %v1696_v28  ;;  %v1848_v52 = vsel %vm949_vm3, %v1846_v63, %v1847_v59  ;;  %v5459_v40 = vld [vmem:[#allocation7 + $0x18] ss:$0 sm:$0xff]  ;;  %v852_v63 = vld [vmem:[#allocation2 + $0x89] ss:$2 sm:$0x3] }
 0x230   : > { %v2001_v3 = vmul.f32 %v6230_v53, %v5336_v57  ;;  %v1924_v54 = vsel %vm1102_vm4, %v1922_v32, %v1923_v5  ;;  %v2002_v10 = vmul.f32 %v6230_v53, %v5338_v36  ;;  %v2077_v22 = vmul.f32 %v6231_v11, %v5342_v46 }
 0x231   : > { %v2078_v30 = vmul.f32 %v6231_v11, %v5353_v25  ;;  %v1792_v1 = vadd.f32 %v1772_v42, %v1716_v12  ;;  %v2153_v43 = vmul.f32 %v5459_v40, %v5336_v57  ;;  %v2154_v55 = vmul.f32 %v5459_v40, %v5338_v36  ;;  %v6241_v36 = vld [vmem:[#allocation47_spill] sm:$0xff] }
 0x232   : > { %v2038_v50 = vrot.slane %v2001_v3, 1  ;;  %v2039_v58 = vrot.slane %v2002_v10, 1  ;;  %v2114_v61 = vrot.slane %v2077_v22, 1  ;;  %v1169_v46 = vmul.f32 %v4620_v33, %v850_v13 }
 0x233   : > { %v2115_v56 = vrot.slane %v2078_v30, 1  ;;  %2367 = vperm.xlu1 %3497, %v5409_v38   ;;  %v1868_v62 = vadd.f32 %v1848_v52, %v1792_v1  ;;  %v2190_v25 = vrot.slane %v2153_v43, 2  ;;  %v2191_v16 = vrot.slane %v2154_v55, 2  ;;  %v3515_v43 = vld [vmem:[#allocation2 + $0x60] ss:$2 sm:$0xff] }
 0x234   : > { %v1191_v35 = vmul.f32 %v3514_v6, %v4623_v34  ;;  %v2040_v2 = vsel %vm949_vm3, %v2038_v50, %v2039_v58  ;;  %v1177_v59 = vadd.f32 %v1169_v46, %v6241_v36  ;;  %v1192_v42 = vmul.f32 %v4623_v34, %v816_v7 }
 0x235   : > { %v2116_v28 = vsel %vm949_vm3, %v2114_v61, %v2115_v56  ;;  %v1944_v32 = vadd.f32 %v1924_v54, %v1868_v62  ;;  %v2192_v5 = vsel %vm1102_vm4, %v2190_v25, %v2191_v16  ;;  %v1267_v52 = vmul.f32 %v4759_v14, %v850_v13 }
 0x236   : > { %v1225_v12 = vrot.slane %v1191_v35, 1  ;;  %v1226_v3 = vrot.slane %v1192_v42, 1  ;;  %v1268_v10 = vmul.f32 %v4759_v14, %v852_v63  ;;  %v1343_v22 = vmul.f32 %v3514_v6, %v4772_v48 }
 0x237   : > { %3498 = vset.pattern.permute.xlu1 %v6239_v51  ;;  %v1344_v30 = vmul.f32 %v4772_v48, %v816_v7  ;;  %v1964_v1 = vadd.f32 %v1956_v21, %v1944_v32  ;;  %v1301_v50 = vrot.slane %v1267_v52, 1  ;;  %v1609_v55 = vmul.f32 %v3515_v43, %v4866_v60 }
 0x238   : > { %v1684_v54 = vmul.f32 %v3514_v6, %v4870_v37  ;;  %v1227_v58 = vsel %vm949_vm3, %v1225_v12, %v1226_v3  ;;  %v1302_v61 = vrot.slane %v1268_v10, 1  ;;  %v1377_v56 = vrot.slane %v1343_v22, 2 }
 0x239   : > { %v1378_v46 = vrot.slane %v1344_v30, 2  ;;  %v1984_v62 = vadd.f32 %v1976_v31, %v1964_v1  ;;  %v1253_v25 = vadd.f32 %v1227_v58, %v1177_v59  ;;  %v1642_v16 = vrot.slane %v1609_v55, 2  ;;  %v6244_v59 = vld [vmem:[#allocation60_spill] sm:$0xff] }
 0x23a   : > { %v1704_v35 = vmul.f32 %v6225_v47, %v850_v13  ;;  %v1303_v36 = vsel %vm949_vm3, %v1301_v50, %v1302_v61  ;;  %v1725_v42 = vmul.f32 %v3514_v6, %v6226_v18  ;;  %v1726_v32 = vmul.f32 %v6226_v18, %v816_v7 }
 0x23b   : > { %v1379_v21 = vsel %vm1102_vm4, %v1377_v56, %v1378_v46  ;;  %v2060_v52 = vadd.f32 %v2040_v2, %v1984_v62  ;;  %v1329_v43 = vadd.f32 %v1303_v36, %v1253_v25  ;;  %v6243_v12 = vrot.slane %v6242_v0, 2  ;;  %v3517_v36 = vld [vmem:[#allocation2 + $0x91] ss:$2 sm:$0xff] }
 0x23c   : > { %v1801_v31 = vmul.f32 %v4898_v45, %v850_v13  ;;  %v1758_v22 = vrot.slane %v1725_v42, 1  ;;  %v1759_v30 = vrot.slane %v1726_v32, 1  ;;  %v1802_v1 = vmul.f32 %v4898_v45, %v852_v63  ;;  %v3516_v13 = vld [vmem:[#allocation2 + $0x90] ss:$2 sm:$0xff] }
 0x23d   : > { %v1644_v3 = vsel %vm1102_vm4, %v1642_v16, %v6243_v12  ;;  %v2136_v50 = vadd.f32 %v2116_v28, %v2060_v52  ;;  %v1405_v55 = vadd.f32 %v1379_v21, %v1329_v43  ;;  %v1877_v61 = vmul.f32 %v3514_v6, %v6227_v27  ;;  %v3518_v32 = vld [vmem:[#allocation2 + $0xa0] ss:$2 sm:$0x3] }
 0x23e   : > { %v1672_v10 = vadd.f32 %v1644_v3, %v6244_v59  ;;  %v1834_v58 = vrot.slane %v1801_v31, 1  ;;  %v1760_v2 = vsel %vm949_vm3, %v1758_v22, %v1759_v30  ;;  %v1835_v46 = vrot.slane %v1802_v1, 1 }
 0x23f   : > { %v1878_v0 = vmul.f32 %v6227_v27, %v816_v7  ;;  %v2212_v62 = vadd.f32 %v2192_v5, %v2136_v50  ;;  %v1910_v25 = vrot.slane %v1877_v61, 2  ;;  %v1952_v16 = vmul.f32 %v3516_v13, %v6228_v23  ;;  %v3519_v5 = vld [vmem:[#allocation2 + $0xa1] ss:$2 sm:$0x3] }
 0x240   : > { %v1692_v56 = vadd.f32 %v1684_v54, %v1672_v10  ;;  %v1972_v42 = vmul.f32 %v3517_v36, %v6229_v8  ;;  %v1836_v28 = vsel %vm949_vm3, %v1834_v58, %v1835_v46  ;;  %v1993_v6 = vmul.f32 %v3516_v13, %v6230_v53 }
 0x241   : > { %v1911_v21 = vrot.slane %v1878_v0, 2  ;;  %v2227_v54 = vmul.f32 %v5013_v44, %v2212_v62  ;;  %v1994_v52 = vmul.f32 %v3518_v32, %v6230_v53  ;;  %v2069_v7 = vmul.f32 %v3517_v36, %v6231_v11 }
 0x242   : > { %v1712_v63 = vadd.f32 %v1704_v35, %v1692_v56  ;;  %v2070_v43 = vmul.f32 %v3519_v5, %v6231_v11  ;;  %v2026_v31 = vrot.slane %v1993_v6, 1  ;;  %v2145_v35 = vmul.f32 %v3516_v13, %v5459_v40 }
 0x243   : > { %v1912_v3 = vsel %vm1102_vm4, %v1910_v25, %v1911_v21  ;;  %v5506_v59 = vadd.f32 %v5021_v17, %v2227_v54  ;;  %v2027_v10 = vrot.slane %v1994_v52, 1  ;;  %v2102_v22 = vrot.slane %v2069_v7, 1 }
 0x244   : > { %v1788_v12 = vadd.f32 %v1760_v2, %v1712_v63  ;;  %v2103_v44 = vrot.slane %v2070_v43, 1  ;;  %v2146_v1 = vmul.f32 %v3518_v32, %v5459_v40  ;;  %v2178_v50 = vrot.slane %v2145_v35, 2 }
 0x245   : > { %v1417_v58 = vmul.f32 %v3516_v13, %v4815_v49  ;;  %2273 = vperm.xlu0 %3499, %v5506_v59   ;;  %v2028_v61 = vsel %vm949_vm3, %v2026_v31, %v2027_v10  ;;  %v1437_v2 = vmul.f32 %v3517_v36, %v4820_v24  ;;  %v1459_v17 = vmul.f32 %v3516_v13, %v4824_v19 }
 0x246   : > { %v1864_v30 = vadd.f32 %v1836_v28, %v1788_v12  ;;  %v2104_v56 = vsel %vm949_vm3, %v2102_v22, %v2103_v44  ;;  %v2179_v0 = vrot.slane %v2146_v1, 2  ;;  %v1460_v25 = vmul.f32 %v3518_v32, %v4824_v19 }
 0x247   : > { %v1425_v62 = vadd.f32 %v1417_v58, %v1405_v55  ;;  %v1493_v63 = vrot.slane %v1459_v17, 1  ;;  %v1535_v28 = vmul.f32 %v3517_v36, %v4832_v20  ;;  %v1536_v21 = vmul.f32 %v3519_v5, %v4832_v20  ;;  %v3520_v5 = vld [vmem:[#allocation2 + $0xa8] ss:$2 sm:$0xff] }
 0x248   : > { %v1940_v46 = vadd.f32 %v1912_v3, %v1864_v30  ;;  %v1611_v6 = vmul.f32 %v3516_v13, %v4866_v60  ;;  %v2180_v52 = vsel %vm1102_vm4, %v2178_v50, %v2179_v0  ;;  %v1494_v43 = vrot.slane %v1460_v25, 1 }
 0x249   : > { %v1445_v7 = vadd.f32 %v1437_v2, %v1425_v62  ;;  %v6245_v12 = vmov 3   ;;  %v1569_v31 = vrot.slane %v1535_v28, 1  ;;  %v1570_v3 = vrot.slane %v1536_v21, 1 }
 0x24a   : > { %v1960_v54 = vadd.f32 %v1952_v16, %v1940_v46  ;;  %3501 = vset.pattern.permute.xlu0 %v6245_v12  ;;  %v1612_v55 = vmul.f32 %v3518_v32, %v4866_v60  ;;  %v1645_v35 = vrot.slane %v1611_v6, 2  ;;  %v1495_v36 = vsel %vm949_vm3, %v1493_v63, %v1494_v43  ;;  %v6246_v16 = vld [vmem:[#allocation57_spill] sm:$0xff]  ;;  %v6247_v32 = vld [vmem:[#allocation58_spill] sm:$0xff] }
 0x24b   : > { %2415 = vperm.xlu0 %3501, %v5291_v26   ;;  %v1685_v13 = vmul.f32 %v3520_v5, %v4870_v37  ;;  %v1705_v22 = vmul.f32 %v6225_v47, %v6246_v16  ;;  %v1521_v44 = vadd.f32 %v1495_v36, %v1445_v7  ;;  %v1571_v30 = vsel %vm949_vm3, %v1569_v31, %v1570_v3  ;;  %v3521_v43 = vld [vmem:[#allocation2 + $0xc0] ss:$2 sm:$0xff] }
 0x24c   : > { %v1980_v10 = vadd.f32 %v1972_v42, %v1960_v54  ;;  %v1646_v1 = vrot.slane %v1612_v55, 2  ;;  %v1727_v50 = vmul.f32 %v3520_v5, %v6226_v18  ;;  %v1728_v2 = vmul.f32 %v6226_v18, %v6247_v32  ;;  %v6248_v42 = vld [vmem:[#allocation59_spill] sm:$0xff] }
 0x24d   : > { %v1803_v26 = vmul.f32 %v4898_v45, %v6246_v16  ;;  %v1804_v17 = vmul.f32 %v4898_v45, %v6248_v42  ;;  %v1597_v46 = vadd.f32 %v1571_v30, %v1521_v44  ;;  %v1879_v25 = vmul.f32 %v3520_v5, %v6227_v27  ;;  %v3523_v44 = vld [vmem:[#allocation2 + $0xd0] ss:$2 sm:$0x3] }
 0x24e   : > { %v2056_v58 = vadd.f32 %v2028_v61, %v1980_v10  ;;  %v1647_v0 = vsel %vm1102_vm4, %v1645_v35, %v1646_v1  ;;  %v1761_v62 = vrot.slane %v1727_v50, 1  ;;  %v1762_v28 = vrot.slane %v1728_v2, 1  ;;  %v3522_v10 = vld [vmem:[#allocation2 + $0xc1] ss:$2 sm:$0xff]  ;;  %v5548_v1 = vld [vmem:[#allocation9] ss:$0 sm:$0xff] }
 0x24f   : > { %3503 = vset.pattern.permute.xlu0 %v6237_v15  ;;  %v1837_v61 = vrot.slane %v1803_v26, 1  ;;  %v1838_v21 = vrot.slane %v1804_v17, 1  ;;  %v1673_v6 = vadd.f32 %v1647_v0, %v1597_v46  ;;  %v1880_v54 = vmul.f32 %v6227_v27, %v6247_v32  ;;  %v5555_v46 = vld [vmem:[#allocation10] ss:$0 sm:$0xff] }
 0x250   : > { %v2132_v63 = vadd.f32 %v2104_v56, %v2056_v58  ;;  %v1913_v7 = vrot.slane %v1879_v25, 2  ;;  %v1953_v31 = vmul.f32 %v3521_v43, %v6228_v23  ;;  %v1763_v55 = vsel %vm949_vm3, %v1761_v62, %v1762_v28  ;;  %v3525_v58 = vld [vmem:[#allocation2 + $0xd1] ss:$2 sm:$0x3] }
 0x251   : > { %v1839_v35 = vsel %vm949_vm3, %v1837_v61, %v1838_v21  ;;  %v5544_v36 = vmul.f32 %v3522_v10, %v6229_v8  ;;  %v1693_v56 = vadd.f32 %v1685_v13, %v1673_v6  ;;  %v1914_v5 = vrot.slane %v1880_v54, 2  ;;  %v5561_v28 = vld [vmem:[#allocation2 + $0x169] ss:$2 sm:$0xff] }
 0x252   : > { %v2208_v3 = vadd.f32 %v2180_v52, %v2132_v63  ;;  %v1995_v16 = vmul.f32 %v3521_v43, %v6230_v53  ;;  %v1996_v30 = vmul.f32 %v3523_v44, %v6230_v53  ;;  %v2071_v52 = vmul.f32 %v3522_v10, %v6231_v11 }
 0x253   : > { %v2072_v32 = vmul.f32 %v3525_v58, %v6231_v11  ;;  %v2147_v2 = vmul.f32 %v3521_v43, %v5459_v40  ;;  %v1713_v26 = vadd.f32 %v1705_v22, %v1693_v56  ;;  %v1915_v13 = vsel %vm1102_vm4, %v1913_v7, %v1914_v5  ;;  %v5564_v22 = vld [vmem:[#allocation2 + $0x178] ss:$2 sm:$0x3] }
 0x254   : > { %v2223_v50 = vmul.f32 %v5548_v1, %v2208_v3  ;;  %v2029_v42 = vrot.slane %v1995_v16, 1  ;;  %v2030_v17 = vrot.slane %v1996_v30, 1  ;;  %v2105_v62 = vrot.slane %v2071_v52, 1  ;;  %v5570_v3 = vld [vmem:[#allocation2 + $0x179] ss:$2 sm:$0x3] }
 0x255   : > { %v2106_v25 = vrot.slane %v2072_v32, 1  ;;  %v2148_v63 = vmul.f32 %v3523_v44, %v5459_v40  ;;  %v1789_v61 = vadd.f32 %v1763_v55, %v1713_v26  ;;  %v2181_v6 = vrot.slane %v2147_v2, 2  ;;  %v5584_v32 = vld [vmem:[#allocation2 + $0x180] ss:$2 sm:$0xff] }
 0x256   : > { %v5558_v0 = vadd.f32 %v5555_v46, %v2223_v50  ;;  %v2031_v21 = vsel %vm949_vm3, %v2029_v42, %v2030_v17  ;;  %v1174_v54 = vmul.f32 %v4620_v33, %v5561_v28  ;;  %v1201_v10 = vmul.f32 %v4623_v34, %v5359_v4 }
 0x257   : > { %v2107_v7 = vsel %vm949_vm3, %v2105_v62, %v2106_v25  ;;  %v2182_v43 = vrot.slane %v2148_v63, 2  ;;  %v1202_v55 = vmul.f32 %v4623_v34, %v5564_v22  ;;  %v1865_v56 = vadd.f32 %v1839_v35, %v1789_v61  ;;  %v5586_v34 = vld [vmem:[#allocation2 + $0x181] ss:$2 sm:$0xff]  ;;  %v5599_v25 = vld [vmem:[#allocation2 + $0x191] ss:$2 sm:$0x3] }
 0x258   : > { %2253 = vperm.xlu1 %3498, %v5558_v0   ;;  %v1182_v5 = vadd.f32 %v1174_v54, %v5391_v29  ;;  %v1277_v16 = vmul.f32 %v4759_v14, %v5561_v28  ;;  %v1278_v33 = vmul.f32 %v4759_v14, %v5570_v3  ;;  %v1240_v30 = vrot.slane %v1201_v10, 1  ;;  %v5591_v14 = vld [vmem:[#allocation2 + $0x190] ss:$2 sm:$0x3] }
 0x259   : > { %v2183_v44 = vsel %vm1102_vm4, %v2181_v6, %v2182_v43  ;;  %v1241_v50 = vrot.slane %v1202_v55, 1  ;;  %v1353_v52 = vmul.f32 %v4772_v48, %v5359_v4  ;;  %v1941_v58 = vadd.f32 %v1915_v13, %v1865_v56 }
 0x25a   : > { %v1316_v35 = vrot.slane %v1277_v16, 1  ;;  %v1317_v29 = vrot.slane %v1278_v33, 1  ;;  %v1354_v2 = vmul.f32 %v4772_v48, %v5564_v22  ;;  %v1422_v17 = vmul.f32 %v4815_v49, %v5584_v32 }
 0x25b   : > { %v1242_v26 = vsel %vm949_vm3, %v1240_v30, %v1241_v50  ;;  %v1392_v42 = vrot.slane %v1353_v52, 2  ;;  %v1442_v13 = vmul.f32 %v4820_v24, %v5586_v34  ;;  %v1961_v62 = vadd.f32 %v1953_v31, %v1941_v58 }
 0x25c   : > { %3500 = vset.pattern.permute.xlu1 %v6237_v15  ;;  %v1258_v63 = vadd.f32 %v1242_v26, %v1182_v5  ;;  %v1318_v48 = vsel %vm949_vm3, %v1316_v35, %v1317_v29  ;;  %v1393_v61 = vrot.slane %v1354_v2, 2  ;;  %v1469_v6 = vmul.f32 %v4824_v19, %v5584_v32 }
 0x25d   : > { %2303 = vperm.xlu1 %3500, %v5558_v0   ;;  %v1470_v54 = vmul.f32 %v4824_v19, %v5591_v14  ;;  %v1545_v49 = vmul.f32 %v4832_v20, %v5586_v34  ;;  %v1546_v24 = vmul.f32 %v4832_v20, %v5599_v25  ;;  %v1981_v31 = vadd.f32 %v5544_v36, %v1961_v62 }
 0x25e   : > { %v1334_v43 = vadd.f32 %v1318_v48, %v1258_v63  ;;  %v1394_v10 = vsel %vm1102_vm4, %v1392_v42, %v1393_v61  ;;  %v1619_v55 = vmul.f32 %v4866_v60, %v5336_v57  ;;  %v1508_v56 = vrot.slane %v1469_v6, 1 }
 0x25f   : > { %v1509_v5 = vrot.slane %v1470_v54, 1  ;;  %v1584_v16 = vrot.slane %v1545_v49, 1  ;;  %v1585_v33 = vrot.slane %v1546_v24, 1  ;;  %v2057_v30 = vadd.f32 %v2031_v21, %v1981_v31 }
 0x260   : > { %v1410_v19 = vadd.f32 %v1394_v10, %v1334_v43  ;;  %v1621_v50 = vmul.f32 %v4866_v60, %v5584_v32  ;;  %v1622_v20 = vmul.f32 %v4866_v60, %v5591_v14  ;;  %v1657_v58 = vrot.slane %v1619_v55, 2 }
 0x261   : > { %2319 = vperm.xlu1 %3500, %v5506_v59   ;;  %v1510_v36 = vsel %vm949_vm3, %v1508_v56, %v1509_v5  ;;  %v1586_v52 = vsel %vm949_vm3, %v1584_v16, %v1585_v33  ;;  %v1689_v57 = vmul.f32 %v4870_v37, %v5359_v4  ;;  %v2133_v35 = vadd.f32 %v2107_v7, %v2057_v30 }
 0x262   : > { %v1430_v29 = vadd.f32 %v1422_v17, %v1410_v19  ;;  %v1660_v21 = vrot.slane %v1621_v50, 2  ;;  %v1661_v2 = vrot.slane %v1622_v20, 2  ;;  %v6249_v26 = vrot.slane %v5413_v9, 2  ;;  %v838_v50 = vld [vmem:[#allocation2 + $0x198] ss:$2 sm:$0xff] }
 0x263   : > { %v1709_v62 = vmul.f32 %v6225_v47, %v5561_v28  ;;  %v1735_v60 = vmul.f32 %v6226_v18, %v5359_v4  ;;  %v1736_v63 = vmul.f32 %v6226_v18, %v5564_v22  ;;  %v2209_v48 = vadd.f32 %v2183_v44, %v2133_v35 }
 0x264   : > { %v1659_v42 = vsel %vm1102_vm4, %v1657_v58, %v6249_v26  ;;  %v1450_v7 = vadd.f32 %v1442_v13, %v1430_v29  ;;  %v1662_v17 = vsel %vm1102_vm4, %v1660_v21, %v1661_v2  ;;  %v1811_v54 = vmul.f32 %v4898_v45, %v5561_v28 }
 0x265   : > { %3502 = vset.pattern.permute.xlu1 %v6239_v51  ;;  %v1677_v61 = vadd.f32 %v1659_v42, %v5447_v39  ;;  %v1773_v9 = vrot.slane %v1735_v60, 1  ;;  %v1774_v6 = vrot.slane %v1736_v63, 1  ;;  %v1812_v49 = vmul.f32 %v4898_v45, %v5570_v3 }
 0x266   : > { %v2224_v24 = vmul.f32 %v5548_v1, %v2209_v48  ;;  %v1526_v31 = vadd.f32 %v1510_v36, %v1450_v7  ;;  %v1887_v44 = vmul.f32 %v6227_v27, %v5359_v4  ;;  %v1849_v10 = vrot.slane %v1811_v54, 1 }
 0x267   : > { %v1697_v43 = vadd.f32 %v1689_v57, %v1677_v61  ;;  %v1775_v13 = vsel %vm949_vm3, %v1773_v9, %v1774_v6  ;;  %v1850_v55 = vrot.slane %v1812_v49, 1  ;;  %v1888_v39 = vmul.f32 %v6227_v27, %v5564_v22  ;;  %v874_v57 = vld [vmem:[#allocation2 + $0x199] ss:$2 sm:$0xff] }
 0x268   : > { %v5646_v56 = vadd.f32 %v5555_v46, %v2224_v24  ;;  %v1602_v28 = vadd.f32 %v1586_v52, %v1526_v31  ;;  %v1925_v3 = vrot.slane %v1887_v44, 2  ;;  %v1957_v30 = vmul.f32 %v6228_v23, %v5584_v32  ;;  %v2249_v24 = vpop.permute.xlu1 %2248  ;;  %v762_v31 = vld [vmem:[#allocation2 + $0x1b0] ss:$2 sm:$0xff] }
 0x269   : > { %v1717_v5 = vadd.f32 %v1709_v62, %v1697_v43  ;;  %v1851_v16 = vsel %vm949_vm3, %v1849_v10, %v1850_v55  ;;  %v1926_v33 = vrot.slane %v1888_v39, 2  ;;  %v2003_v22 = vmul.f32 %v6230_v53, %v5584_v32  ;;  %v764_v43 = vld [vmem:[#allocation2 + $0x1c0] ss:$2 sm:$0x3]  ;;  %v802_v55 = vld [vmem:[#allocation2 + $0x1b1] ss:$2 sm:$0xff] }
 0x26a   : > { %2307 = vperm.xlu0 %3503, %v5646_v56   ;;  %2258 = vperm.xlu1 %3502, %v5646_v56   ;;  %v1678_v4 = vadd.f32 %v1662_v17, %v1602_v28  ;;  %v2004_v36 = vmul.f32 %v6230_v53, %v5591_v14  ;;  %v2079_v52 = vmul.f32 %v6231_v11, %v5586_v34  ;;  %v6250_v35 = vmov 0.0   ;;  %v876_v17 = vld [vmem:[#allocation2 + $0x1a9] ss:$2 sm:$0x3] }
 0x26b   : > { %v1793_v19 = vadd.f32 %v1775_v13, %v1717_v5  ;;  %v1927_v20 = vsel %vm1102_vm4, %v1925_v3, %v1926_v33  ;;  %v2080_v58 = vmul.f32 %v6231_v11, %v5599_v25  ;;  %2501 = vst.msk [vmem:[#allocation3] sm:$0xff] %vm2500_vm5, %v6250_v35  ;;  %2505 = vst.msk [vmem:[#allocation3 + $0x90] sm:$0xff] %vm2500_vm5, %v6250_v35  ;;  %v2041_v21 = vrot.slane %v2003_v22, 1  ;;  %v840_v25 = vld [vmem:[#allocation2 + $0x1a8] ss:$2 sm:$0x3] }
 0x26c   : > { %v2155_v2 = vmul.f32 %v5459_v40, %v5584_v32  ;;  %v2156_v26 = vmul.f32 %v5459_v40, %v5591_v14  ;;  %v1977_v42 = vmul.f32 %v6229_v8, %v5586_v34  ;;  %v2042_v62 = vrot.slane %v2004_v36, 1  ;;  %v804_v3 = vld [vmem:[#allocation2 + $0x1c1] ss:$2 sm:$0x3]  ;;  %2512 = vst.msk [vmem:[#allocation3 + $0x40] sm:$0x1] %vm2508_vm6, %v6250_v35 }
 0x26d   : > { %v1869_v29 = vadd.f32 %v1851_v16, %v1793_v19  ;;  %v1690_v60 = vmul.f32 %v4870_v37, %v838_v50  ;;  %v2117_v48 = vrot.slane %v2079_v52, 1  ;;  %v2118_v7 = vrot.slane %v2080_v58, 1  ;;  %2513 = vst.msk [vmem:[#allocation3 + $0x50] sm:$0x1] %vm2508_vm6, %v6250_v35  ;;  %2514 = vst.msk [vmem:[#allocation3 + $0x60] sm:$0x1] %vm2508_vm6, %v6250_v35 }
 0x26e   : > { %3505 = vset.pattern.permute.xlu0 %v6245_v12  ;;  %v1710_v61 = vmul.f32 %v6225_v47, %v874_v57  ;;  %v2193_v32 = vrot.slane %v2155_v2, 2  ;;  %v2194_v9 = vrot.slane %v2156_v26, 2  ;;  %v1737_v6 = vmul.f32 %v6226_v18, %v838_v50  ;;  %2520 = vst.msk [vmem:[#allocation3 + $0x49] sm:$0x1] %vm2508_vm6, %v6250_v35  ;;  %2521 = vst.msk [vmem:[#allocation3 + $0x59] sm:$0x1] %vm2508_vm6, %v6250_v35 }
 0x26f   : > { %v1945_v63 = vadd.f32 %v1927_v20, %v1869_v29  ;;  %2419 = vperm.xlu0 %3505, %v5409_v38   ;;  %v1698_v14 = vadd.f32 %v1690_v60, %v1678_v4  ;;  %v2043_v54 = vsel %vm949_vm3, %v2041_v21, %v2042_v62  ;;  %v1738_v37 = vmul.f32 %v6226_v18, %v840_v25  ;;  %v2245_v29 = vld [vmem:[#allocation12] sm:$0xf]  ;;  %v2300_v21 = vpop.permute.xlu1 %2299 }
 0x270   : > { %v1813_v49 = vmul.f32 %v4898_v45, %v874_v57  ;;  %v1776_v13 = vrot.slane %v1737_v6, 1  ;;  %v1814_v47 = vmul.f32 %v4898_v45, %v876_v17  ;;  %v1889_v38 = vmul.f32 %v6227_v27, %v838_v50  ;;  %2522 = vst.msk [vmem:[#allocation3 + $0x69] sm:$0x1] %vm2508_vm6, %v6250_v35  ;;  %2509 = vst.msk [vmem:[#allocation3 + $0x10] sm:$0x1] %vm2508_vm6, %v6250_v35 }
 0x271   : > { %v1965_v34 = vadd.f32 %v1957_v30, %v1945_v63  ;;  %v1718_v44 = vadd.f32 %v1710_v61, %v1698_v14  ;;  %v1777_v39 = vrot.slane %v1738_v37, 1  ;;  %v1890_v5 = vmul.f32 %v6227_v27, %v840_v25  ;;  %2510 = vst.msk [vmem:[#allocation3 + $0x20] sm:$0x1] %vm2508_vm6, %v6250_v35  ;;  %2511 = vst.msk [vmem:[#allocation3 + $0x30] sm:$0x1] %vm2508_vm6, %v6250_v35 }
 0x272   : > { %v1852_v28 = vrot.slane %v1813_v49, 1  ;;  %v2119_v18 = vsel %vm949_vm3, %v2117_v48, %v2118_v7  ;;  %v1853_v16 = vrot.slane %v1814_v47, 1  ;;  %v1928_v33 = vrot.slane %v1889_v38, 2  ;;  %v6251_v7 = vld [vmem:[#allocation37_spill] sm:$0xff]  ;;  %2515 = vst.msk [vmem:[#allocation3 + $0x70] sm:$0x1] %vm2508_vm6, %v6250_v35 }
 0x273   : > { %v1985_v10 = vadd.f32 %v1977_v42, %v1965_v34  ;;  %2423 = vperm.xlu0 %3505, %v5506_v59   ;;  %v1778_v4 = vsel %vm949_vm3, %v1776_v13, %v1777_v39  ;;  %v1929_v19 = vrot.slane %v1890_v5, 2  ;;  %v2005_v45 = vmul.f32 %v6230_v53, %v762_v31  ;;  %v6253_v34 = vld [vmem:[#allocation38_spill] sm:$0xff]  ;;  %2516 = vst.msk [vmem:[#allocation3 + $0x80] sm:$0x1] %vm2508_vm6, %v6250_v35 }
 0x274   : > { %v2195_v22 = vsel %vm1102_vm4, %v2193_v32, %v2194_v9  ;;  %v1794_v50 = vadd.f32 %v1778_v4, %v1718_v44  ;;  %v1854_v20 = vsel %vm949_vm3, %v1852_v28, %v1853_v16  ;;  %v2006_v27 = vmul.f32 %v6230_v53, %v764_v43  ;;  %v2404_v44 = vpop.permute.xlu1 %2403  ;;  %2517 = vst.msk [vmem:[#allocation3 + $0x19] sm:$0x1] %vm2508_vm6, %v6250_v35 }
 0x275   : > { %v2061_v30 = vadd.f32 %v2043_v54, %v1985_v10  ;;  %v1930_v52 = vsel %vm1102_vm4, %v1928_v33, %v1929_v19  ;;  %v2081_v58 = vmul.f32 %v6231_v11, %v802_v55  ;;  %v2082_v57 = vmul.f32 %v6231_v11, %v804_v3  ;;  %v6252_v11 = vld [vmem:[#allocation39_spill] sm:$0xff]  ;;  %v6254_v54 = vld [vmem:[#allocation40_spill] sm:$0xff]  ;;  %2518 = vst.msk [vmem:[#allocation3 + $0x29] sm:$0x1] %vm2508_vm6, %v6250_v35 }
 0x276   : > { %v1870_v2 = vadd.f32 %v1854_v20, %v1794_v50  ;;  %v1958_v26 = vmul.f32 %v6228_v23, %v762_v31  ;;  %v2044_v42 = vrot.slane %v2005_v45, 1  ;;  %v2045_v62 = vrot.slane %v2006_v27, 1  ;;  %2519 = vst.msk [vmem:[#allocation3 + $0x39] sm:$0x1] %vm2508_vm6, %v6250_v35  ;;  %2523 = vst.msk [vmem:[#allocation3 + $0x79] sm:$0x1] %vm2508_vm6, %v6250_v35 }
 0x277   : > { %v2137_v36 = vadd.f32 %v2119_v18, %v2061_v30  ;;  %2411 = vperm.xlu0 %3505, %v5646_v56   ;;  %v2157_v60 = vmul.f32 %v5459_v40, %v762_v31  ;;  %v2158_v53 = vmul.f32 %v5459_v40, %v764_v43  ;;  %v1978_v48 = vmul.f32 %v6229_v8, %v802_v55  ;;  %v2352_v43 = vpop.permute.xlu0 %2351  ;;  %v5759_v3 = vld [vmem:[#allocation13] ss:$0 sm:$0xff]  ;;  %v5762_v30 = vld [vmem:[#allocation15] ss:$0 sm:$0xff] }
 0x278   : > { %v1946_v63 = vadd.f32 %v1930_v52, %v1870_v2  ;;  %v5699_v17 = vrot.slane %v2245_v29, %v6251_v7  ;;  %v5702_v61 = vrot.slane %v2245_v29, %v6252_v11  ;;  %v2120_v9 = vrot.slane %v2081_v58, 1  ;;  %2524 = vst.msk [vmem:[#allocation3 + $0x89] sm:$0x1] %vm2508_vm6, %v6250_v35 }
 0x279   : > { %v2213_v25 = vadd.f32 %v2195_v22, %v2137_v36  ;;  %v2121_v23 = vrot.slane %v2082_v57, 1  ;;  %v2046_v6 = vsel %vm949_vm3, %v2044_v42, %v2045_v62  ;;  %v5708_v40 = vrot.slane %v2245_v29, %v6253_v34  ;;  %2503 = vst.msk [vmem:[#allocation3 + $0x8] sm:$0x3] %vm2502_vm7, %v6250_v35  ;;  %2506 = vst.msk [vmem:[#allocation3 + $0x98] sm:$0x3] %vm2502_vm7, %v6250_v35 }
 0x27a   : > { %v1966_v14 = vadd.f32 %v1958_v26, %v1946_v63  ;;  %v5711_v8 = vrot.slane %v2245_v29, %v6254_v54  ;;  %v2196_v49 = vrot.slane %v2157_v60, 2  ;;  %v2197_v31 = vrot.slane %v2158_v53, 2 }
 0x27b   : > { %v2228_v32 = vmul.f32 %v5548_v1, %v2213_v25  ;;  %3510 = vset.pattern.permute.xlu0 %v6240_v41  ;;  %v2290_v47 = vmul.f32 %v5699_v17, %v2249_v24  ;;  %v2386_v38 = vmul.f32 %v5702_v61, %v2352_v43  ;;  %v2334_v10 = vmul.f32 %v5708_v40, %v2300_v21 }
 0x27c   : > { %2359 = vperm.xlu0 %3510, %v5646_v56   ;;  %v1986_v13 = vadd.f32 %v1978_v48, %v1966_v14  ;;  %v2122_v56 = vsel %vm949_vm3, %v2120_v9, %v2121_v23  ;;  %v2438_v39 = vmul.f32 %v5711_v8, %v2404_v44  ;;  %v2198_v28 = vsel %vm1102_vm4, %v2196_v49, %v2197_v31 }
 0x27d   : > { %v5714_v37 = vadd.f32 %v5555_v46, %v2228_v32  ;;  %v2342_v55 = vadd.f32 %v2334_v10, %v2290_v47 }
 0x27e   : > { %v2062_v24 = vadd.f32 %v2046_v6, %v1986_v13 }
 0x27f   : > { %2278 = vperm.xlu1 %3502, %v5714_v37   ;;  %v2394_v18 = vadd.f32 %v2386_v38, %v2342_v55 }
 0x280   : > { %v2138_v5 = vadd.f32 %v2122_v56, %v2062_v24 }
 0x281   : > { %v2446_v33 = vadd.f32 %v2438_v39, %v2394_v18 }
 0x282   : > { %v2214_v16 = vadd.f32 %v2198_v28, %v2138_v5 }
 0x283   : > { %3504 = vset.pattern.permute.xlu1 %v6237_v15  ;;  %v2461_v19 = vmul.f32 %v5759_v3, %v2446_v33 }
 0x284   : > { %2323 = vperm.xlu1 %3504, %v5714_v37   ;;  %v2229_v4 = vmul.f32 %v5548_v1, %v2214_v16 }
 0x285   : > { %v2476_v35 = vadd.f32 %v5762_v30, %v2461_v19 }
 0x286   : > { %v2244_v45 = vadd.f32 %v5555_v46, %v2229_v4 }
 0x287   : > { %v2484_v22 = vmax.f32 %v2476_v35, 0.0 }
 0x288   : > { %3506 = vset.pattern.permute.xlu1 %v6240_v41  ;;  %2379 = vperm.xlu0 %3510, %v2244_v45  }
 0x289   : > { %2355 = vperm.xlu1 %3506, %v5558_v0   ;;  %v2492_v50 = vmin.f32 %v2484_v22, 6.0 }
 0x28b   : > { %2525 = vst.msk [vmem:[#allocation3 + $0x11] sm:$0xff] %vm2500_vm5, %v2492_v50 }
 0x28c   : > { %3512 = vset.pattern.permute.xlu0 %v6245_v12 }
 0x28d   : > { %2371 = vperm.xlu1 %3506, %v5506_v59   ;;  %v2826_v59 = vld [vmem:[#allocation21] sm:$0xff] }
 0x28e   : > { %v2264_v41 = vpop.permute.xlu0 %2263  ;;  %3298 = vmatprep.subr.mxu0 %v2826_v59  ;;  %3312 = vmatprep.subr.mxu1 %v2826_v59 }
 0x28f   : > { %3299 = vmatpush3.msra.mxu0 %v2826_v59  ;;  %3313 = vmatpush3.msra.mxu1 %v2826_v59 }
 0x291   : > { %2375 = vperm.xlu1 %3506, %v5714_v37  }
 0x293   : > { %v2312_v1 = vpop.permute.xlu0 %2311 }
 0x294   : > { %v2337_v20 = vmul.f32 %v5708_v40, %v2312_v1  ;;  %v5807_v1 = vld [vmem:[#allocation16] sm:$0xff] }
 0x295   : > { %3507 = vset.pattern.permute.xlu1 %v6245_v12 }
 0x296   : > { %2407 = vperm.xlu1 %3507, %v5558_v0  }
 0x29a   : > { %3508 = vset.pattern.permute.xlu1 %v6239_v51  ;;  %v2293_v51 = vmul.f32 %v5699_v17, %v2264_v41 }
 0x29b   : > { %2283 = vperm.xlu1 %3508, %v2244_v45  }
 0x29c   : > { %v2345_v36 = vadd.f32 %v2337_v20, %v2293_v51 }
 0x29f   : > { %3509 = vset.pattern.permute.xlu1 %v6237_v15 }
 0x2a0   : > { %2327 = vperm.xlu1 %3509, %v2244_v45  }
 0x2a4   : > { %3511 = vset.pattern.permute.xlu1 %v6245_v12 }
 0x2a5   : > { %2427 = vperm.xlu1 %3511, %v5714_v37  }
 0x2a9   : > { %2431 = vperm.xlu1 %3511, %v2244_v45   ;;  %v2269_v46 = vpop.permute.xlu1 %2268  ;;  %v2316_v0 = vpop.permute.xlu0 %2315 }
 0x2aa   : > { %v2338_v60 = vmul.f32 %v5708_v40, %v2316_v0  ;;  %v2294_v53 = vmul.f32 %v5699_v17, %v2269_v46 }
 0x2ac   : > { %v2346_v9 = vadd.f32 %v2338_v60, %v2294_v53 }
 0x2ae   : > { %v2364_v15 = vpop.permute.xlu1 %2363 }
 0x2af   : > { %v2389_v12 = vmul.f32 %v5702_v61, %v2364_v15 }
 0x2b1   : > { %v2397_v58 = vadd.f32 %v2389_v12, %v2345_v36  ;;  %v5815_v36 = vrot.slane %v5807_v1, %v6251_v7  ;;  %v5821_v12 = vrot.slane %v5807_v1, %v6253_v34  ;;  %v2583_v34 = vld [vmem:[#allocation3 + $0x2] sm:$0xff] }
 0x2b2   : > { %v2368_v62 = vpop.permute.xlu1 %2367 }
 0x2b3   : > { %v2390_v32 = vmul.f32 %v5702_v61, %v2368_v62 }
 0x2b5   : > { %v2398_v14 = vadd.f32 %v2390_v32, %v2346_v9 }
 0x2c4   : > { %v2274_v27 = vpop.permute.xlu0 %2273 }
 0x2c5   : > { %v2295_v50 = vmul.f32 %v5699_v17, %v2274_v27 }
 0x2ca   : > { %v2416_v52 = vpop.permute.xlu0 %2415 }
 0x2cb   : > { %v2441_v57 = vmul.f32 %v5711_v8, %v2416_v52 }
 0x2cd   : > { %v2449_v29 = vadd.f32 %v2441_v57, %v2397_v58  ;;  %v2535_v58 = vld [vmem:[#allocation3] sm:$0xff] }
 0x2ce   : > { %v2555_v57 = vld [vmem:[#allocation3 + $0x1] sm:$0xff]  ;;  %v2547_v53 = vmul.f32 %v5815_v36, %v2535_v58 }
 0x2cf   : > { %v2464_v21 = vmul.f32 %v5759_v3, %v2449_v29 }
 0x2d1   : > { %v2479_v2 = vadd.f32 %v5762_v30, %v2464_v21 }
 0x2d3   : > { %v2487_v26 = vmax.f32 %v2479_v2, 0.0  ;;  %v5828_v2 = vrot.slane %v5807_v1, %v6252_v11 }
 0x2d5   : > { %v2495_v42 = vmin.f32 %v2487_v26, 6.0 }
 0x2d7   : > { %2528 = vst.msk [vmem:[#allocation3 + $0x41] sm:$0xff] %vm2500_vm5, %v2495_v42  ;;  %v2254_v25 = vpop.permute.xlu1 %2253 }
 0x2d8   : > { %v2291_v62 = vmul.f32 %v5699_v17, %v2254_v25  ;;  %v5849_v25 = vrot.slane %v5807_v1, %v6254_v54 }
 0x2dc   : > { %v2304_v48 = vpop.permute.xlu1 %2303 }
 0x2dd   : > { %v2335_v29 = vmul.f32 %v5708_v40, %v2304_v48 }
 0x2de   : > { %v5811_v15 = vld [vmem:[#allocation3 + $0x40] sm:$0xff] }
 0x2df   : > { %v5817_v27 = vld [vmem:[#allocation3 + $0x41] sm:$0xff]  ;;  %v2551_v7 = vmul.f32 %v5815_v36, %v5811_v15 }
 0x2e0   : > { %v2320_v37 = vpop.permute.xlu1 %2319  ;;  %v2571_v42 = vmul.f32 %v5821_v12, %v5817_v27  ;;  %v5843_v9 = vld [vmem:[#allocation3 + $0x42] sm:$0xff] }
 0x2e1   : > { %v2339_v41 = vmul.f32 %v5708_v40, %v2320_v37  ;;  %v2599_v54 = vmul.f32 %v5828_v2, %v5843_v9 }
 0x2e3   : > { %v2347_v0 = vadd.f32 %v2339_v41, %v2295_v50 }
 0x2e9   : > { %v2308_v63 = vpop.permute.xlu0 %2307  ;;  %v2259_v13 = vpop.permute.xlu1 %2258 }
 0x2ea   : > { %v2336_v10 = vmul.f32 %v5708_v40, %v2308_v63  ;;  %v2292_v56 = vmul.f32 %v5699_v17, %v2259_v13  ;;  %v2567_v63 = vmul.f32 %v5821_v12, %v2555_v57 }
 0x2ec   : > { %v2344_v39 = vadd.f32 %v2336_v10, %v2292_v56  ;;  %v2575_v10 = vadd.f32 %v2567_v63, %v2547_v53 }
 0x2ee   : > { %v2420_v23 = vpop.permute.xlu0 %2419 }
 0x2ef   : > { %v2442_v6 = vmul.f32 %v5711_v8, %v2420_v23  ;;  %v2343_v23 = vadd.f32 %v2335_v29, %v2291_v62 }
 0x2f1   : > { %v2450_v49 = vadd.f32 %v2442_v6, %v2398_v14  ;;  %v2595_v6 = vmul.f32 %v5828_v2, %v2583_v34  ;;  %v6257_v34 = vld [vmem:[#allocation43_spill] sm:$0xff] }
 0x2f2   : > { %v2424_v31 = vpop.permute.xlu0 %2423  ;;  %v5885_v62 = vrot.slane %v5807_v1, %v6257_v34 }
 0x2f3   : > { %v2465_v43 = vmul.f32 %v5759_v3, %v2450_v49  ;;  %v2443_v51 = vmul.f32 %v5711_v8, %v2424_v31 }
 0x2f5   : > { %v2480_v44 = vadd.f32 %v5762_v30, %v2465_v43  ;;  %v2579_v43 = vadd.f32 %v2571_v42, %v2551_v7  ;;  %v6256_v7 = vld [vmem:[#allocation42_spill] sm:$0xff] }
 0x2f6   : > { %v2412_v47 = vpop.permute.xlu0 %2411  ;;  %v5881_v42 = vrot.slane %v5807_v1, %v6256_v7 }
 0x2f7   : > { %v2488_v38 = vmax.f32 %v2480_v44, 0.0  ;;  %v2440_v28 = vmul.f32 %v5711_v8, %v2412_v47 }
 0x2f9   : > { %v2496_v24 = vmin.f32 %v2488_v38, 6.0 }
 0x2fb   : > { %2529 = vst.msk [vmem:[#allocation3 + $0x51] sm:$0xff] %vm2500_vm5, %v2496_v24  ;;  %v2360_v55 = vpop.permute.xlu0 %2359 }
 0x2fc   : > { %v2388_v5 = vmul.f32 %v5702_v61, %v2360_v55  ;;  %v2611_v55 = vld [vmem:[#allocation3 + $0x10] sm:$0xff] }
 0x2fe   : > { %v5798_v18 = vpop.permute.xlu1 %2278  ;;  %v2396_v16 = vadd.f32 %v2388_v5, %v2344_v39 }
 0x300   : > { %v2448_v33 = vadd.f32 %v2440_v28, %v2396_v16  ;;  %v2639_v16 = vld [vmem:[#allocation3 + $0x11] sm:$0xff] }
 0x301   : > { %v2568_v58 = vmul.f32 %v2639_v16, %v5821_v12 }
 0x302   : > { %v2463_v4 = vmul.f32 %v5759_v3, %v2448_v33  ;;  %v5845_v14 = vld [vmem:[#allocation3 + $0x50] sm:$0xff] }
 0x303   : > { %v5801_v19 = vpop.permute.xlu1 %2323  ;;  %v2627_v24 = vmul.f32 %v5849_v25, %v5845_v14  ;;  %v2711_v34 = vmul.f32 %v5885_v62, %v5845_v14 }
 0x304   : > { %v2478_v45 = vadd.f32 %v5762_v30, %v2463_v4  ;;  %v2607_v4 = vadd.f32 %v2599_v54, %v2579_v43  ;;  %v2340_v53 = vmul.f32 %v5708_v40, %v5801_v19 }
 0x306   : > { %v2486_v35 = vmax.f32 %v2478_v45, 0.0  ;;  %v6255_v45 = vld [vmem:[#allocation41_spill] sm:$0xff] }
 0x308   : > { %v2356_v22 = vpop.permute.xlu1 %2355  ;;  %v2494_v59 = vmin.f32 %v2486_v35, 6.0  ;;  %v5868_v35 = vrot.slane %v5807_v1, %v6255_v45 }
 0x309   : > { %v2387_v60 = vmul.f32 %v5702_v61, %v2356_v22 }
 0x30a   : > { %2527 = vst.msk [vmem:[#allocation3 + $0x31] sm:$0xff] %vm2500_vm5, %v2494_v59  ;;  %v2643_v59 = vld [vmem:[#allocation3 + $0x51] sm:$0xff] }
 0x30b   : > { %v2395_v47 = vadd.f32 %v2387_v60, %v2343_v23  ;;  %v2651_v60 = vmul.f32 %v5868_v35, %v2639_v16 }
 0x30c   : > { %v2372_v46 = vpop.permute.xlu1 %2371 }
 0x30d   : > { %v2391_v20 = vmul.f32 %v5702_v61, %v2372_v46  ;;  %v2603_v46 = vadd.f32 %v2595_v6, %v2575_v10  ;;  %v2667_v6 = vld [vmem:[#allocation3 + $0x12] sm:$0xff]  ;;  %v2572_v10 = vmul.f32 %v2643_v59, %v5821_v12 }
 0x30f   : > { %v2399_v52 = vadd.f32 %v2391_v20, %v2347_v0  ;;  %v2623_v0 = vmul.f32 %v5849_v25, %v2611_v55  ;;  %v2635_v20 = vadd.f32 %v2627_v24, %v2607_v4  ;;  %v2380_v24 = vpop.permute.xlu0 %2379  ;;  %v2679_v4 = vmul.f32 %v5881_v42, %v2667_v6 }
 0x310   : > { %v5824_v21 = vpop.permute.xlu1 %2375 }
 0x311   : > { %v2451_v26 = vadd.f32 %v2443_v51, %v2399_v52  ;;  %v5838_v48 = vld [vmem:[#allocation3 + $0x30] sm:$0xff]  ;;  %v2626_v51 = vmul.f32 %v5849_v25, %v5811_v15  ;;  %v2548_v52 = vmul.f32 %v2611_v55, %v5815_v36  ;;  %v2631_v23 = vadd.f32 %v2623_v0, %v2603_v46 }
 0x312   : > { %v5840_v11 = vld [vmem:[#allocation3 + $0x31] sm:$0xff]  ;;  %v2550_v44 = vmul.f32 %v5838_v48, %v5815_v36  ;;  %v2393_v0 = vmul.f32 %v5702_v61, %v2380_v24 }
 0x313   : > { %v2466_v32 = vmul.f32 %v5759_v3, %v2451_v26  ;;  %v5852_v37 = vld [vmem:[#allocation3 + $0x32] sm:$0xff]  ;;  %v2570_v13 = vmul.f32 %v5840_v11, %v5821_v12  ;;  %v2655_v26 = vmul.f32 %v5868_v35, %v2643_v59 }
 0x314   : > { %v2598_v28 = vmul.f32 %v5852_v37, %v5828_v2 }
 0x315   : > { %v2481_v49 = vadd.f32 %v5762_v30, %v2466_v32  ;;  %v2408_v31 = vpop.permute.xlu1 %2407  ;;  %v2578_v39 = vadd.f32 %v2570_v13, %v2550_v44  ;;  %v2671_v32 = vld [vmem:[#allocation3 + $0x52] sm:$0xff]  ;;  %v2663_v44 = vadd.f32 %v2655_v26, %v2635_v20  ;;  %v2576_v13 = vadd.f32 %v2568_v58, %v2548_v52 }
 0x316   : > { %v2439_v38 = vmul.f32 %v5711_v8, %v2408_v31  ;;  %v2296_v31 = vmul.f32 %v5699_v17, %v5798_v18  ;;  %v2683_v55 = vmul.f32 %v5881_v42, %v2671_v32 }
 0x317   : > { %v2489_v56 = vmax.f32 %v2481_v49, 0.0  ;;  %v2606_v22 = vadd.f32 %v2598_v28, %v2578_v39  ;;  %v2654_v49 = vmul.f32 %v5868_v35, %v5817_v27  ;;  %v6258_v39 = vld [vmem:[#allocation44_spill] sm:$0xff]  ;;  %v2596_v28 = vmul.f32 %v2667_v6, %v5828_v2 }
 0x318   : > { %v2447_v5 = vadd.f32 %v2439_v38, %v2395_v47  ;;  %v2552_v47 = vmul.f32 %v5845_v14, %v5815_v36  ;;  %v2392_v38 = vmul.f32 %v5702_v61, %v5824_v21  ;;  %v5903_v18 = vrot.slane %v5807_v1, %v6258_v39 }
 0x319   : > { %v2497_v33 = vmin.f32 %v2489_v56, 6.0  ;;  %v2634_v29 = vadd.f32 %v2626_v51, %v2606_v22  ;;  %v2691_v22 = vadd.f32 %v2683_v55, %v2663_v44 }
 0x31a   : > { %v2462_v50 = vmul.f32 %v5759_v3, %v2447_v5  ;;  %v2284_v41 = vpop.permute.xlu1 %2283  ;;  %v2348_v5 = vadd.f32 %v2340_v53, %v2296_v31  ;;  %v2580_v58 = vadd.f32 %v2572_v10, %v2552_v47  ;;  %v2739_v61 = vmul.f32 %v5903_v18, %v2643_v59 }
 0x31b   : > { %2530 = vst.msk [vmem:[#allocation3 + $0x61] sm:$0xff] %vm2500_vm5, %v2497_v33  ;;  %v2662_v54 = vadd.f32 %v2654_v49, %v2634_v29  ;;  %v2659_v33 = vadd.f32 %v2651_v60, %v2631_v23  ;;  %v2297_v45 = vmul.f32 %v5699_v17, %v2284_v41  ;;  %v5923_v41 = vld [vmem:[#allocation16 + $0x8] ss:$0 sm:$0xff]  ;;  %v2600_v60 = vmul.f32 %v2671_v32, %v5828_v2 }
 0x31c   : > { %v2477_v57 = vadd.f32 %v5762_v30, %v2462_v50  ;;  %v2604_v50 = vadd.f32 %v2596_v28, %v2576_v13  ;;  %v2400_v46 = vadd.f32 %v2392_v38, %v2348_v5  ;;  %v2767_v6 = vmul.f32 %v5923_v41, %v2671_v32 }
 0x31d   : > { %v2687_v7 = vadd.f32 %v2679_v4, %v2659_v33  ;;  %v2709_v31 = vmul.f32 %v5885_v62, %v5838_v48  ;;  %v2608_v14 = vadd.f32 %v2600_v60, %v2580_v58  ;;  %v5948_v4 = vld [vmem:[#allocation19] ss:$0 sm:$0xff] }
 0x31e   : > { %v2485_v63 = vmax.f32 %v2477_v57, 0.0 }
 0x31f   : > { %v2328_v43 = vpop.permute.xlu1 %2327 }
 0x320   : > { %v2493_v19 = vmin.f32 %v2485_v63, 6.0  ;;  %v2341_v56 = vmul.f32 %v5708_v40, %v2328_v43  ;;  %v2682_v40 = vmul.f32 %v5881_v42, %v5843_v9  ;;  %v2737_v43 = vmul.f32 %v5903_v18, %v5840_v11 }
 0x322   : > { %2526 = vst.msk [vmem:[#allocation3 + $0x21] sm:$0xff] %vm2500_vm5, %v2493_v19  ;;  %v5907_v16 = vld [vmem:[#allocation3 + $0x60] sm:$0xff]  ;;  %v2690_v52 = vadd.f32 %v2682_v40, %v2662_v54  ;;  %v2349_v57 = vadd.f32 %v2341_v56, %v2297_v45  ;;  %v5938_v56 = vld [vmem:[#allocation18] ss:$0 sm:$0xff] }
 0x323   : > { %v5909_v21 = vld [vmem:[#allocation3 + $0x61] sm:$0xff]  ;;  %v2712_v1 = vmul.f32 %v5885_v62, %v5907_v16  ;;  %v2628_v39 = vmul.f32 %v5907_v16, %v5849_v25 }
 0x324   : > { %v2428_v51 = vpop.permute.xlu1 %2427  ;;  %v5918_v20 = vld [vmem:[#allocation3 + $0x62] sm:$0xff]  ;;  %v2740_v17 = vmul.f32 %v5903_v18, %v5909_v21  ;;  %v2719_v44 = vadd.f32 %v2711_v34, %v2690_v52  ;;  %v2401_v13 = vadd.f32 %v2393_v0, %v2349_v57 }
 0x325   : > { %v2444_v29 = vmul.f32 %v5711_v8, %v2428_v51  ;;  %v2720_v26 = vadd.f32 %v2712_v1, %v2691_v22  ;;  %v2768_v23 = vmul.f32 %v5923_v41, %v5918_v20 }
 0x327   : > { %v2452_v53 = vadd.f32 %v2444_v29, %v2400_v46  ;;  %v2748_v63 = vadd.f32 %v2740_v17, %v2720_v26 }
 0x328   : > { %v2432_v49 = vpop.permute.xlu1 %2431 }
 0x329   : > { %v2467_v59 = vmul.f32 %v5759_v3, %v2452_v53  ;;  %v2445_v47 = vmul.f32 %v5711_v8, %v2432_v49  ;;  %v2776_v38 = vadd.f32 %v2768_v23, %v2748_v63  ;;  %v2696_v19 = vld [vmem:[#allocation3 + $0x20] sm:$0xff]  ;;  %v2747_v63 = vadd.f32 %v2739_v61, %v2719_v44 }
 0x32a   : > { %v2724_v54 = vld [vmem:[#allocation3 + $0x21] sm:$0xff]  ;;  %v2708_v32 = vmul.f32 %v5885_v62, %v2696_v19  ;;  %v2624_v55 = vmul.f32 %v2696_v19, %v5849_v25  ;;  %v2549_v1 = vmul.f32 %v2696_v19, %v5815_v36  ;;  %v2573_v19 = vmul.f32 %v5909_v21, %v5821_v12 }
 0x32b   : > { %v2752_v10 = vld [vmem:[#allocation3 + $0x22] sm:$0xff]  ;;  %v2736_v24 = vmul.f32 %v5903_v18, %v2724_v54  ;;  %v2482_v28 = vadd.f32 %v5762_v30, %v2467_v59  ;;  %v2453_v5 = vadd.f32 %v2445_v47, %v2401_v13  ;;  %v2791_v8 = vmul.f32 %v5938_v56, %v2776_v38 }
 0x32c   : > { %v2764_v33 = vmul.f32 %v5923_v41, %v2752_v10  ;;  %v2716_v40 = vadd.f32 %v2708_v32, %v2687_v7  ;;  %v2632_v45 = vadd.f32 %v2624_v55, %v2604_v50  ;;  %v2652_v22 = vmul.f32 %v2724_v54, %v5868_v35 }
 0x32d   : > { %v2490_v46 = vmax.f32 %v2482_v28, 0.0  ;;  %v2468_v0 = vmul.f32 %v5759_v3, %v2453_v5  ;;  %v2806_v51 = vadd.f32 %v5948_v4, %v2791_v8  ;;  %v2569_v52 = vmul.f32 %v2724_v54, %v5821_v12 }
 0x32e   : > { %v2744_v58 = vadd.f32 %v2736_v24, %v2716_v40  ;;  %v2660_v57 = vadd.f32 %v2652_v22, %v2632_v45  ;;  %v2680_v29 = vmul.f32 %v2752_v10, %v5881_v42  ;;  %v2597_v26 = vmul.f32 %v2752_v10, %v5828_v2 }
 0x32f   : > { %v2498_v17 = vmin.f32 %v2490_v46, 6.0  ;;  %v2483_v50 = vadd.f32 %v5762_v30, %v2468_v0  ;;  %v2814_v7 = vmax.f32 %v2806_v51, 0.0  ;;  %v2577_v34 = vadd.f32 %v2569_v52, %v2549_v1 }
 0x330   : > { %v2772_v60 = vadd.f32 %v2764_v33, %v2744_v58  ;;  %v2688_v53 = vadd.f32 %v2680_v29, %v2660_v57  ;;  %v2625_v3 = vmul.f32 %v5838_v48, %v5849_v25  ;;  %v2636_v59 = vadd.f32 %v2628_v39, %v2608_v14 }
 0x331   : > { %2531 = vst.msk [vmem:[#allocation3 + $0x71] sm:$0xff] %vm2500_vm5, %v2498_v17  ;;  %v2491_v23 = vmax.f32 %v2483_v50, 0.0  ;;  %v2822_v49 = vmin.f32 %v2814_v7, 6.0  ;;  %v2605_v13 = vadd.f32 %v2597_v26, %v2577_v34  ;;  %v2553_v30 = vmul.f32 %v5907_v16, %v5815_v36 }
 0x332   : > { %v2787_v47 = vmul.f32 %v5938_v56, %v2772_v60  ;;  %v2717_v38 = vadd.f32 %v2709_v31, %v2688_v53  ;;  %v2653_v61 = vmul.f32 %v5840_v11, %v5868_v35  ;;  %v2656_v44 = vmul.f32 %v5909_v21, %v5868_v35 }
 0x333   : > { %v2499_v54 = vmin.f32 %v2491_v23, 6.0  ;;  %3306 = vmatprep.mubr.msk.f32.mxu1 %vm2500_vm5, %v2822_v49  ;;  %v2633_v48 = vadd.f32 %v2625_v3, %v2605_v13  ;;  %v2765_v31 = vmul.f32 %v5923_v41, %v5852_v37  ;;  %v2775_v16 = vadd.f32 %v2767_v6, %v2747_v63 }
 0x334   : > { %v2802_v14 = vadd.f32 %v5948_v4, %v2787_v47  ;;  %v2745_v10 = vadd.f32 %v2737_v43, %v2717_v38  ;;  %v2681_v24 = vmul.f32 %v5852_v37, %v5881_v42  ;;  %v2664_v55 = vadd.f32 %v2656_v44, %v2636_v59 }
 0x335   : > { %2532 = vst.msk [vmem:[#allocation3 + $0x81] sm:$0xff] %vm2500_vm5, %v2499_v54  ;;  %v2661_v32 = vadd.f32 %v2653_v61, %v2633_v48  ;;  %v2581_v11 = vadd.f32 %v2573_v19, %v2553_v30  ;;  %v2710_v21 = vmul.f32 %v5885_v62, %v5811_v15  ;;  %v2738_v43 = vmul.f32 %v5903_v18, %v5817_v27  ;;  %v2703_v61 = vld [vmem:[#allocation3 + $0x90] sm:$0xff] }
 0x336   : > { %v2810_v39 = vmax.f32 %v2802_v14, 0.0  ;;  %v2773_v28 = vadd.f32 %v2765_v31, %v2745_v10  ;;  %v2684_v6 = vmul.f32 %v5918_v20, %v5881_v42  ;;  %v2790_v40 = vmul.f32 %v5938_v56, %v2775_v16 }
 0x337   : > { %v2689_v5 = vadd.f32 %v2681_v24, %v2661_v32  ;;  %v2601_v22 = vmul.f32 %v5918_v20, %v5828_v2  ;;  %v2766_v15 = vmul.f32 %v5923_v41, %v5843_v9 }
 0x338   : > { %v2818_v8 = vmin.f32 %v2810_v39, 6.0  ;;  %v2788_v33 = vmul.f32 %v5938_v56, %v2773_v28  ;;  %v2701_v37 = vld [vmem:[#allocation3 + $0x70] sm:$0xff]  ;;  %v2692_v46 = vadd.f32 %v2684_v6, %v2664_v55  ;;  %v2805_v50 = vadd.f32 %v5948_v4, %v2790_v40 }
 0x339   : > { %v2729_v45 = vld [vmem:[#allocation3 + $0x71] sm:$0xff]  ;;  %v2718_v1 = vadd.f32 %v2710_v21, %v2689_v5  ;;  %v2713_v27 = vmul.f32 %v5885_v62, %v2701_v37  ;;  %v2609_v58 = vadd.f32 %v2601_v22, %v2581_v11  ;;  %v2629_v57 = vmul.f32 %v2701_v37, %v5849_v25 }
 0x33a   : > { %3300 = vmatprep.mubr.msk.f32.mxu0 %vm2500_vm5, %v2818_v8  ;;  %v2803_v0 = vadd.f32 %v5948_v4, %v2788_v33  ;;  %v2741_v51 = vmul.f32 %v5903_v18, %v2729_v45  ;;  %v2757_v52 = vld [vmem:[#allocation3 + $0x72] sm:$0xff]  ;;  %v2554_v20 = vmul.f32 %v2701_v37, %v5815_v36  ;;  %v2574_v17 = vmul.f32 %v2729_v45, %v5821_v12 }
 0x33b   : > { %v2746_v29 = vadd.f32 %v2738_v43, %v2718_v1  ;;  %v2721_v26 = vadd.f32 %v2713_v27, %v2692_v46  ;;  %v2637_v7 = vadd.f32 %v2629_v57, %v2609_v58  ;;  %v2657_v34 = vmul.f32 %v2729_v45, %v5868_v35  ;;  %v2731_v28 = vld [vmem:[#allocation3 + $0x91] sm:$0xff] }
 0x33c   : > { %v2811_v9 = vmax.f32 %v2803_v0, 0.0  ;;  %v2702_v60 = vld [vmem:[#allocation3 + $0x80] sm:$0xff]  ;;  %v2769_v63 = vmul.f32 %v5923_v41, %v2757_v52  ;;  %v2685_v23 = vmul.f32 %v2757_v52, %v5881_v42  ;;  %v2582_v59 = vadd.f32 %v2574_v17, %v2554_v20  ;;  %v2759_v33 = vld [vmem:[#allocation3 + $0x92] sm:$0xff] }
 0x33d   : > { %v2774_v53 = vadd.f32 %v2766_v15, %v2746_v29  ;;  %v2749_v3 = vadd.f32 %v2741_v51, %v2721_v26  ;;  %v2665_v13 = vadd.f32 %v2657_v34, %v2637_v7  ;;  %v2602_v36 = vmul.f32 %v2757_v52, %v5828_v2  ;;  %v2730_v38 = vld [vmem:[#allocation3 + $0x81] sm:$0xff]  ;;  %v3281_v26 = vld [vmem:[#allocation24] ss:$0 sm:$0xff] }
 0x33e   : > { %v2819_v49 = vmin.f32 %v2811_v9, 6.0  ;;  %v2630_v30 = vmul.f32 %v2702_v60, %v5849_v25  ;;  %v2714_v54 = vmul.f32 %v5885_v62, %v2702_v60  ;;  %v2813_v14 = vmax.f32 %v2805_v50, 0.0  ;;  %v2758_v31 = vld [vmem:[#allocation3 + $0x82] sm:$0xff] }
 0x33f   : > { %v2789_v12 = vmul.f32 %v5938_v56, %v2774_v53  ;;  %v2777_v47 = vadd.f32 %v2769_v63, %v2749_v3  ;;  %v2693_v19 = vadd.f32 %v2685_v23, %v2665_v13  ;;  %v2610_v48 = vadd.f32 %v2602_v36, %v2582_v59  ;;  %v3280_v29 = vld [vmem:[#allocation22] ss:$0 sm:$0xff] }
 0x340   : > { %3301 = vmatmul.mubr.msk.f32.vlgmr.msra.gmra.mrb[0].mxu0 %vm2500_vm5, %v2819_v49  ;;  %v2742_v16 = vmul.f32 %v5903_v18, %v2730_v38  ;;  %v2658_v24 = vmul.f32 %v2730_v38, %v5868_v35  ;;  %v2715_v39 = vmul.f32 %v5885_v62, %v2703_v61  ;;  %v2770_v5 = vmul.f32 %v5923_v41, %v2758_v31 }
 0x341   : > { %v2804_v44 = vadd.f32 %v5948_v4, %v2789_v12  ;;  %v2792_v10 = vmul.f32 %v5938_v56, %v2777_v47  ;;  %v2722_v2 = vadd.f32 %v2714_v54, %v2693_v19  ;;  %v2638_v32 = vadd.f32 %v2630_v30, %v2610_v48 }
 0x342   : > { %v2686_v43 = vmul.f32 %v2758_v31, %v5881_v42  ;;  %v2821_v40 = vmin.f32 %v2813_v14, 6.0  ;;  %v2743_v35 = vmul.f32 %v5903_v18, %v2731_v28  ;;  %v2771_v15 = vmul.f32 %v5923_v41, %v2759_v33 }
 0x343   : > { %v2812_v25 = vmax.f32 %v2804_v44, 0.0  ;;  %v2807_v55 = vadd.f32 %v5948_v4, %v2792_v10  ;;  %v2750_v11 = vadd.f32 %v2742_v16, %v2722_v2  ;;  %v2666_v21 = vadd.f32 %v2658_v24, %v2638_v32 }
 0x345   : > { %v2820_v6 = vmin.f32 %v2812_v25, 6.0  ;;  %v2815_v8 = vmax.f32 %v2807_v55, 0.0  ;;  %v2778_v37 = vadd.f32 %v2770_v5, %v2750_v11  ;;  %v2694_v45 = vadd.f32 %v2686_v43, %v2666_v21 }
 0x347   : > { %3303 = vmatprep.mubr.msk.f32.mxu0 %vm2500_vm5, %v2820_v6  ;;  %v2823_v22 = vmin.f32 %v2815_v8, 6.0  ;;  %v2793_v62 = vmul.f32 %v5938_v56, %v2778_v37  ;;  %v2723_v1 = vadd.f32 %v2715_v39, %v2694_v45 }
 0x348   : > { %3304 = vmatmul.mubr.msk.f32.gmra.mrb[2].mxu0 %vm2500_vm5, %v2821_v40 }
 0x349   : > { %3307 = vmatmul.mubr.msk.f32.vlgmr.msra.gmra.mrb[0].mxu1 %vm2500_vm5, %v2823_v22  ;;  %v2808_v42 = vadd.f32 %v5948_v4, %v2793_v62  ;;  %v2751_v46 = vadd.f32 %v2743_v35, %v2723_v1 }
 0x34b   : > { %v2816_v27 = vmax.f32 %v2808_v42, 0.0  ;;  %v2779_v0 = vadd.f32 %v2771_v15, %v2751_v46 }
 0x34d   : > { %v2824_v51 = vmin.f32 %v2816_v27, 6.0  ;;  %v2794_v18 = vmul.f32 %v5938_v56, %v2779_v0 }
 0x34f   : > { %3309 = vmatprep.mubr.msk.f32.mxu1 %vm2500_vm5, %v2824_v51  ;;  %v2809_v52 = vadd.f32 %v5948_v4, %v2794_v18 }
 0x351   : > { %v2817_v58 = vmax.f32 %v2809_v52, 0.0 }
 0x353   : > { %v2825_v57 = vmin.f32 %v2817_v58, 6.0 }
 0x355   : > { %3310 = vmatmul.mubr.msk.f32.gmra.mrb[2].mxu1 %vm2500_vm5, %v2825_v57 }
 0x413   : > { %v3302_v41 = vpop.f32.mrb[0].mxu0 }
 0x414   : > { %v2964_v20 = vmul.f32 %v3302_v41, %v3280_v29  ;;  %v2917_v17 = vpop.f32.mrb[1].mxu0 }
 0x415   : > { %v2963_v9 = vmul.f32 %v3280_v29, %v2917_v17 }
 0x416   : > { %v2979_v50 = vadd.f32 %v3281_v26, %v2964_v20 }
 0x417   : > { %v2978_v7 = vadd.f32 %v3281_v26, %v2963_v9 }
 0x418   : > { %2988 = vst.msk [vmem:[%s612_s14 + $0x8] sm:$0xff] %vm2986_vm8, %v2979_v50 }
 0x419   : > { %2987 = vst.msk [vmem:[%s612_s14] sm:$0xff] %vm2986_vm8, %v2978_v7 }
 0x41b   : > { %v3305_v56 = vpop.f32.mrb[2].mxu0 }
 0x41c   : > { %v2966_v4 = vmul.f32 %v3305_v56, %v3280_v29  ;;  %v2927_v34 = vpop.f32.mrb[3].mxu0  ;;  %v3308_v60 = vpop.f32.mrb[0].mxu1 }
 0x41d   : > { %v2965_v53 = vmul.f32 %v3280_v29, %v2927_v34  ;;  %v2968_v3 = vmul.f32 %v3308_v60, %v3280_v29  ;;  %v2937_v63 = vpop.f32.mrb[1].mxu1 }
 0x41e   : > { %v2981_v23 = vadd.f32 %v3281_v26, %v2966_v4  ;;  %v2967_v49 = vmul.f32 %v3280_v29, %v2937_v63 }
 0x41f   : > { %v2980_v13 = vadd.f32 %v3281_v26, %v2965_v53  ;;  %v2983_v59 = vadd.f32 %v3281_v26, %v2968_v3 }
 0x420   : > { %2990 = vst.msk [vmem:[%s612_s14 + $0x18] sm:$0xff] %vm2986_vm8, %v2981_v23  ;;  %v2982_v36 = vadd.f32 %v3281_v26, %v2967_v49 }
 0x421   : > { %2989 = vst.msk [vmem:[%s612_s14 + $0x10] sm:$0xff] %vm2986_vm8, %v2980_v13  ;;  %2992 = vst.msk [vmem:[%s612_s14 + $0x28] sm:$0xff] %vm2986_vm8, %v2983_v59 }
 0x422   : > { %2991 = vst.msk [vmem:[%s612_s14 + $0x20] sm:$0xff] %vm2986_vm8, %v2982_v36 }
 0x428   : > { %v3311_v12 = vpop.f32.mrb[2].mxu1 }
 0x429   : > { %v2970_v47 = vmul.f32 %v3311_v12, %v3280_v29  ;;  %v2947_v38 = vpop.f32.mrb[3].mxu1 }
 0x42a   : > { %v2969_v30 = vmul.f32 %v3280_v29, %v2947_v38 }
 0x42b   : > { %v2985_v19 = vadd.f32 %v3281_v26, %v2970_v47 }
 0x42c   : > { %v2984_v54 = vadd.f32 %v3281_v26, %v2969_v30 }
 0x42d   : > { %2994 = vst.msk [vmem:[%s612_s14 + $0x38] sm:$0xff] %vm2986_vm8, %v2985_v19 }
 0x42e   : > { %2993 = vst.msk [vmem:[%s612_s14 + $0x30] sm:$0xff] %vm2986_vm8, %v2984_v54 }
 0x42f   : > { %3906 = shalt.err (!%p3903_p7)
}
 0x430   : > { %s3907_s14 = scalar_lea.hbm %s6035_s15, 1024  ;;  %s3911_s16 = scalar_lea.hbm %s6259_s24, 2048 }
 0x431   : > { %p3908_p6 = scmp.ne.s32.totalorder %s6035_s15, %s3907_s14  ;;  %p3912_p1 = scmp.lt.u32.totalorder %s6035_s15, %s6259_s24 }
 0x432   : > { %p3913_p13 = scmp.lt.u32.totalorder %s3911_s16, %s3907_s14  ;;  %p3915_p2 = scmp.lt.u32.totalorder %s3907_s14, %s6035_s15 }
 0x433   : > { %p3909_p9 = pnand %p3908_p6, %p6260_p8 }
 0x434   : > { %p3914_p0 = por %p3913_p13, %p3912_p1 }
 0x435   : > { %p3910_p12 = pneg %p3909_p9 }
 0x436   : > { %p3916_p4 = por %p3915_p2, %p3914_p0 }
 0x438   : > { %p3917_p10 = pnand %p3916_p4, %p3910_p12 }
 0x43a   : > { %3920 = shalt.err (!%p3917_p10)
}
 0x43b   : > { %s4006_s0 = smov 128   ;;  %s4007_s2 = smov 8  }
 0x43c   : > { %3364 = dma.vmem_to_hbm [thread:$0]  (%p6260_p8), %s6037_s29, 1024, %s6035_s15, %s2996_s13, %s4006_s0, %s4006_s0, %s4007_s2  }
 0x43d PF: > { %s6261_s25 = sld [smem:[#allocation34_spill]]  ;;  %p6262_p11 = scmp.ne.s32.totalorder %s6179_s20, 0 }
 0x43e   : > { %p6263_p3 = scmp.ge.s32.totalorder %s3983_s28, 2 }
 0x440   : > { %p3408_p5 = pnand %p6263_p3, %p6262_p11 }
 0x443   : > { %s3024_s23 = sand.u32 1, %s6261_s25  }
 0x444   : > { %s3025_s14 = scalar_lea.sflag [#allocation6], %s3024_s23 }
 0x445   : > { %3966 = dma.done.wait (!%p3408_p5), %s3025_s14, 1024  }
 0x446   : > { %3968 = vsyncadd (!%p3408_p5), %s3025_s14, 4294966272  ;;  %p32_p7 = scmp.ge.s32.totalorder %s4370_s18, 4   ;;  %s6264_s25 = smov %s3975_s26 }
 0x447   : > { %s6265_s26 = smov %s3979_s27  ;;  %s6266_s27 = smov %s4381_s19 }
 0x448   : > { %s6267_s28 = smov %s4370_s18  ;;  %34 = sbr.rel (!%p32_p7) target bundleno = 16 (0x10), region = 245 }
 0x44f   :  { %3030 = vsyncpa [#allocation5], 1 }
 0x450   :  { %3032 = vsyncpa [#allocation5 + $0x1], 1 }
 0x451   :  { %3033 = vsyncpa [#allocation8], 1 }
 0x452   :  { %3034 = vsyncpa [#allocation11], 1 }
 0x453   :  { %3035 = vsyncpa [#allocation14], 1 }
 0x454   :  { %3036 = vsyncpa [#allocation17], 1 }
 0x455   :  { %3037 = vsyncpa [#allocation20], 1 }
 0x456   :  { %3038 = vsyncpa [#allocation23], 1 }
 0x457   :  { %3039 = vsyncpa [#allocation6], 1 }
 0x458   :  { %3041 = vsyncpa [#allocation6 + $0x1], 1 }

</bundles_post_ra>
